<compile_context>
chip_gen: v5e
topology: v5e:2x2
jax: 0.10.0
libtpu: 0.0.40
codegen_flags: <defaults>
</compile_context>

<pallas_src>
import functools

import jax
import jax.numpy as jnp
from jax import lax
from jax.experimental import pallas as pl
from jax.experimental.pallas import tpu as pltpu


# ----------------------------------------------------------------------------
# Kernel 1 (fused): per time-tile input projection + LSTM recurrence.
#   gx[tile] = x[tile] @ W_ih^T + (b_ih + b_hh)        (one big MXU matmul, VMEM scratch)
#   for t in tile:  gates = gx[t] + h @ W_hh^T ; standard LSTM cell update
# Grid iterates over time tiles (sequential, "arbitrary"); h/c state lives in VMEM scratch
# and persists across grid iterations.  Gate order matches PyTorch: [i | f | g | o].
# ----------------------------------------------------------------------------
def lstm_layer_kernel(x_ref, h0_ref, c0_ref, wih_ref, whh_ref, b_ref,
                      y_ref, hT_ref, cT_ref,
                      h_scr, c_scr, gx_scr):
    tt_idx = pl.program_id(0)
    TT, B, Din = x_ref.shape
    H = h0_ref.shape[-1]
    G = whh_ref.shape[-1]                              # 4H

    @pl.when(tt_idx == 0)
    def _init():
        h_scr[...] = h0_ref[...]
        c_scr[...] = c0_ref[...]

    # Time-parallel input projection for this tile (TT*B rows -> good MXU fill).
    x2d = x_ref[...].reshape(TT * B, Din)              # layout-preserving (B % 16 == 0, bf16)
    gx_scr[...] = (jnp.dot(x2d, wih_ref[...], preferred_element_type=jnp.float32)
                   + b_ref[...]).reshape(TT, B, G)

    w_hh = whh_ref[...]                                # (H, 4H) bf16, resident in VMEM

    def step(i, carry):
        h = h_scr[...]                                 # (B, H) f32
        c = c_scr[...]                                 # (B, H) f32
        gates = gx_scr[i] + jnp.dot(h.astype(w_hh.dtype), w_hh,
                                    preferred_element_type=jnp.float32)   # (B, 4H) f32
        i_g = jax.nn.sigmoid(gates[:, 0 * H:1 * H])
        f_g = jax.nn.sigmoid(gates[:, 1 * H:2 * H])
        g_g = jnp.tanh(gates[:, 2 * H:3 * H])
        o_g = jax.nn.sigmoid(gates[:, 3 * H:4 * H])
        c_new = f_g * c + i_g * g_g
        h_new = o_g * jnp.tanh(c_new)
        h_scr[...] = h_new
        c_scr[...] = c_new
        y_ref[i] = h_new.astype(y_ref.dtype)
        return carry

    lax.fori_loop(0, TT, step, 0, unroll=True)

    @pl.when(tt_idx == pl.num_programs(0) - 1)
    def _final():
        hT_ref[...] = h_scr[...]
        cT_ref[...] = c_scr[...]


def lstm_layer(x, h0, c0, w_ih_t, w_hh_t, b, *, tt, out_dtype):
    """x: (T, B, Din) bf16, h0/c0: (B, H) f32, w_ih_t: (Din, 4H) bf16,
    w_hh_t: (H, 4H) bf16, b: (1, 4H) f32 -> y (T, B, H) bf16, hT, cT (B, H) f32."""
    T, B, Din = x.shape
    H = h0.shape[-1]
    G = w_hh_t.shape[-1]
    assert T % tt == 0 and B % 16 == 0                 # bf16 layout-preserving row fold
    return pl.pallas_call(
        lstm_layer_kernel,
        out_shape=(jax.ShapeDtypeStruct((T, B, H), out_dtype),
                   jax.ShapeDtypeStruct((B, H), jnp.float32),
                   jax.ShapeDtypeStruct((B, H), jnp.float32)),
        grid_spec=pltpu.PrefetchScalarGridSpec(
            num_scalar_prefetch=0,
            grid=(T // tt,),
            in_specs=[pl.BlockSpec((tt, B, Din), lambda i: (i, 0, 0)),
                      pl.BlockSpec((B, H), lambda i: (0, 0)),
                      pl.BlockSpec((B, H), lambda i: (0, 0)),
                      pl.BlockSpec((Din, G), lambda i: (0, 0)),   # W_ih: fetched once
                      pl.BlockSpec((H, G), lambda i: (0, 0)),     # W_hh: fetched once
                      pl.BlockSpec((1, G), lambda i: (0, 0))],
            out_specs=(pl.BlockSpec((tt, B, H), lambda i: (i, 0, 0)),
                       pl.BlockSpec((B, H), lambda i: (0, 0)),
                       pl.BlockSpec((B, H), lambda i: (0, 0))),
            scratch_shapes=[pltpu.VMEM((B, H), jnp.float32),       # h state
                            pltpu.VMEM((B, H), jnp.float32),       # c state
                            pltpu.VMEM((tt, B, G), jnp.float32)]), # gx tile
        compiler_params=pltpu.CompilerParams(
            dimension_semantics=("arbitrary",),   # time tiles carry h/c state -> sequential
            vmem_limit_bytes=64 * 1024 * 1024),
    )(x, h0, c0, w_ih_t, w_hh_t, b)


# ----------------------------------------------------------------------------
# Kernel 2: decoder matmul + log_softmax over the BATCH axis (dim=1 of (T, B, V),
# exactly as F.log_softmax(decoded, dim=1)).  Grid = (time slabs, vocab tiles); the
# batch-axis reduction is within each (TT, B, TV) block, so V tiles are independent.
# Called with one big time slab so the decoder weight is streamed from HBM once and
# the MXU LHS has TT*B >= 256 rows.
# ----------------------------------------------------------------------------
def decoder_kernel(y_ref, w_ref, b_ref, out_ref):
    TT, B, H = y_ref.shape
    TV = w_ref.shape[-1]
    y2d = y_ref[...].reshape(TT * B, H)                # layout-preserving (B % 16 == 0, bf16)
    logits = (jnp.dot(y2d, w_ref[...], preferred_element_type=jnp.float32)
              + b_ref[...]).reshape(TT, B, TV)
    m = jnp.max(logits, axis=1, keepdims=True)                      # over batch (dim=1)
    lse = jnp.log(jnp.sum(jnp.exp(logits - m), axis=1, keepdims=True)) + m
    out_ref[...] = logits - lse
    # TODO(synk): emit bf16 output here if downstream tolerates it (halves the largest store).


def decoder_logsoftmax(y, w_dec_t, b_dec, *, tt, tv):
    """y: (T, B, H) bf16, w_dec_t: (H, V) bf16, b_dec: (1, V) f32 -> (T, B, V) f32."""
    T, B, H = y.shape
    V = w_dec_t.shape[-1]
    assert T % tt == 0 and V % tv == 0 and B % 16 == 0
    return pl.pallas_call(
        decoder_kernel,
        out_shape=jax.ShapeDtypeStruct((T, B, V), jnp.float32),
        grid_spec=pltpu.PrefetchScalarGridSpec(
            num_scalar_prefetch=0,
            grid=(T // tt, V // tv),
            in_specs=[pl.BlockSpec((tt, B, H), lambda ti, vi: (ti, 0, 0)),
                      pl.BlockSpec((H, tv), lambda ti, vi: (0, vi)),
                      pl.BlockSpec((1, tv), lambda ti, vi: (0, vi))],
            out_specs=pl.BlockSpec((tt, B, tv), lambda ti, vi: (ti, 0, vi))),
        compiler_params=pltpu.CompilerParams(
            dimension_semantics=("parallel", "parallel"),
            vmem_limit_bytes=64 * 1024 * 1024),
    )(y, w_dec_t, b_dec)


# ----------------------------------------------------------------------------
# Model wrapper (parameter init + glue in plain JAX, hot path in Pallas)
# ----------------------------------------------------------------------------
def init_params(key, vocab_size, input_size, hidden_size, num_layers,
                param_dtype=jnp.bfloat16):
    initrange = 0.1
    keys = jax.random.split(key, 3 + 4 * num_layers)
    params = {}
    # encoder: uniform(-0.1, 0.1)
    params["embedding"] = jax.random.uniform(
        keys[0], (vocab_size, input_size), jnp.float32,
        -initrange, initrange).astype(param_dtype)
    # decoder: weight uniform(-0.1, 0.1); bias keeps default Linear init
    params["dec_w_t"] = jax.random.uniform(
        keys[1], (hidden_size, vocab_size), jnp.float32,
        -initrange, initrange).astype(param_dtype)
    bound = 1.0 / float(hidden_size) ** 0.5
    params["dec_b"] = jax.random.uniform(
        keys[2], (1, vocab_size), jnp.float32, -bound, bound)
    # LSTM layers: default PyTorch init uniform(-1/sqrt(H), 1/sqrt(H)); gate order [i|f|g|o]
    layers = []
    for l in range(num_layers):
        din = input_size if l == 0 else hidden_size
        k = keys[3 + 4 * l: 3 + 4 * (l + 1)]
        w_ih_t = jax.random.uniform(k[0], (din, 4 * hidden_size), jnp.float32, -bound, bound)
        w_hh_t = jax.random.uniform(k[1], (hidden_size, 4 * hidden_size), jnp.float32, -bound, bound)
        b_ih = jax.random.uniform(k[2], (1, 4 * hidden_size), jnp.float32, -bound, bound)
        b_hh = jax.random.uniform(k[3], (1, 4 * hidden_size), jnp.float32, -bound, bound)
        layers.append({"w_ih_t": w_ih_t.astype(param_dtype),
                       "w_hh_t": w_hh_t.astype(param_dtype),
                       "b": b_ih + b_hh})            # bias kept f32 (added to f32 gx)
    params["lstm"] = layers
    return params


@functools.partial(jax.jit, static_argnames=("tt", "tv"))
def rnn_model_forward(params, token_ids, hidden, *, tt=8, tv=128):
    """token_ids: (T, B) int32; hidden: (h0, c0) each (num_layers, B, H) f32."""
    h0_all, c0_all = hidden
    act_dtype = params["embedding"].dtype
    T = token_ids.shape[0]
    # Encoder (embedding gather) — glue in plain JAX.
    # TODO(synk): fuse the gather into the layer-0 kernel via scalar-prefetched token ids.
    x = jnp.take(params["embedding"], token_ids, axis=0)        # (T, B, Din) bf16
    # Dropout -> identity (eval mode).
    h_finals, c_finals = [], []
    for l, layer in enumerate(params["lstm"]):
        x, hT, cT = lstm_layer(x, h0_all[l], c0_all[l],
                               layer["w_ih_t"], layer["w_hh_t"], layer["b"],
                               tt=tt, out_dtype=act_dtype)       # (T, B, H) bf16
        h_finals.append(hT)
        c_finals.append(cT)
        # inter-layer dropout -> identity (eval mode)
    # Decoder: single time slab so the (H, V) weight is streamed from HBM exactly once.
    out = decoder_logsoftmax(x, params["dec_w_t"], params["dec_b"], tt=T, tv=tv)
    new_hidden = (jnp.stack(h_finals, axis=0), jnp.stack(c_finals, axis=0))
    return out, new_hidden


# ----------------------------------------------------------------------------
# Pure-JAX reference (mirrors the kernels' bf16 weight / f32 accumulate numerics)
# ----------------------------------------------------------------------------
def reference_forward(params, token_ids, hidden):
    bf16, f32 = jnp.bfloat16, jnp.float32
    h0_all, c0_all = hidden
    x = jnp.take(params["embedding"], token_ids, axis=0)        # bf16
    T = x.shape[0]
    h_finals, c_finals = [], []
    for l, layer in enumerate(params["lstm"]):
        w_ih = layer["w_ih_t"].astype(f32)
        w_hh = layer["w_hh_t"].astype(f32)
        H = w_hh.shape[0]
        gx = jnp.einsum("tbd,dg->tbg", x.astype(f32), w_ih) + layer["b"]
        h, c = h0_all[l], c0_all[l]
        ys = []
        for t in range(T):
            g = gx[t] + jnp.dot(h.astype(bf16).astype(f32), w_hh)
            i_g = jax.nn.sigmoid(g[:, 0 * H:1 * H])
            f_g = jax.nn.sigmoid(g[:, 1 * H:2 * H])
            g_g = jnp.tanh(g[:, 2 * H:3 * H])
            o_g = jax.nn.sigmoid(g[:, 3 * H:4 * H])
            c = f_g * c + i_g * g_g
            h = o_g * jnp.tanh(c)
            ys.append(h.astype(bf16))
        x = jnp.stack(ys, axis=0)
        h_finals.append(h)
        c_finals.append(c)
    logits = jnp.einsum("tbh,hv->tbv", x.astype(f32),
                        params["dec_w_t"].astype(f32)) + params["dec_b"]
    out = jax.nn.log_softmax(logits, axis=1)
    return out, (jnp.stack(h_finals, 0), jnp.stack(c_finals, 0))


if __name__ == "__main__":
    # Small but hardware-friendly shapes: B mult of 16 (bf16 sublane pack -> layout-preserving
    # row folds and full vector stores), H/V mult of 128 (lane-aligned gates), T divisible by
    # the time tile.
    vocab_size, input_size, hidden_size, num_layers = 256, 128, 128, 2
    seq_len, batch = 16, 16
    tt, tv = 8, 128

    key = jax.random.PRNGKey(0)
    pkey, dkey = jax.random.split(key)
    params = init_params(pkey, vocab_size, input_size, hidden_size, num_layers)

    token_ids = jax.random.randint(dkey, (seq_len, batch), 0, vocab_size, dtype=jnp.int32)
    hidden = (jnp.zeros((num_layers, batch, hidden_size), jnp.float32),
              jnp.zeros((num_layers, batch, hidden_size), jnp.float32))

    log_probs, (h_n, c_n) = rnn_model_forward(params, token_ids, hidden, tt=tt, tv=tv)
    jax.block_until_ready((log_probs, h_n, c_n))

    assert log_probs.shape == (seq_len, batch, vocab_size)
    assert h_n.shape == (num_layers, batch, hidden_size)
    assert c_n.shape == (num_layers, batch, hidden_size)
    # dim=1 log_softmax => exp sums to 1 along the batch axis
    s = jnp.exp(log_probs).sum(axis=1)
    assert jnp.allclose(s, jnp.ones_like(s), atol=1e-4)

    # Numerical check against a pure-JAX reference with matching precision policy.
    ref_out, (ref_h, ref_c) = reference_forward(params, token_ids, hidden)
    assert jnp.allclose(log_probs, ref_out, atol=1e-2), float(jnp.max(jnp.abs(log_probs - ref_out)))
    assert jnp.allclose(h_n, ref_h, atol=1e-2)
    assert jnp.allclose(c_n, ref_c, atol=1e-2)

    print("KERNEL_OK")
</pallas_src>

<mosaic_0001>
module attributes {stable_mosaic.version = 11 : i64} {
  func.func @decoder_kernel(%arg0: i32, %arg1: i32, %arg2: memref<16x16x128xbf16, #tpu.memory_space<vmem>>, %arg3: memref<128x128xbf16, #tpu.memory_space<vmem>>, %arg4: memref<1x128xf32, #tpu.memory_space<vmem>>, %arg5: memref<16x16x128xf32, #tpu.memory_space<vmem>>) attributes {dimension_semantics = [#tpu.dimension_semantics<parallel>, #tpu.dimension_semantics<parallel>], iteration_bounds = array<i64: 1, 2>, scalar_prefetch = 0 : i64, scratch_operands = 0 : i64, tpu.core_type = #tpu.core_type<tc>, window_params = [{transform_indices = @transform_0, window_bounds = array<i64: 16, 16, 128>}, {transform_indices = @transform_1, window_bounds = array<i64: 128, 128>}, {transform_indices = @transform_2, window_bounds = array<i64: 1, 128>}, {transform_indices = @transform_3, window_bounds = array<i64: 16, 16, 128>}]} {
    %c0 = arith.constant 0 : index
    %c0_0 = arith.constant 0 : index
    %c0_1 = arith.constant 0 : index
    %0 = vector.load %arg2[%c0, %c0_0, %c0_1] : memref<16x16x128xbf16, #tpu.memory_space<vmem>>, vector<16x16x128xbf16>
    %1 = vector.shape_cast %0 : vector<16x16x128xbf16> to vector<256x128xbf16>
    %c0_2 = arith.constant 0 : index
    %c0_3 = arith.constant 0 : index
    %2 = vector.load %arg3[%c0_2, %c0_3] : memref<128x128xbf16, #tpu.memory_space<vmem>>, vector<128x128xbf16>
    %cst = arith.constant dense<0.000000e+00> : vector<256x128xf32>
    %3 = tpu.matmul %1, %2, %cst {dimension_numbers = #tpu.dot_dimension_numbers<[1], [0], [0], [1], [0, 0, 1, 1], [], []>} : vector<256x128xbf16>, vector<128x128xbf16>, vector<256x128xf32> -> vector<256x128xf32>
    %c0_4 = arith.constant 0 : index
    %c0_5 = arith.constant 0 : index
    %4 = vector.load %arg4[%c0_4, %c0_5] : memref<1x128xf32, #tpu.memory_space<vmem>>, vector<1x128xf32>
    %5 = vector.broadcast %4 : vector<1x128xf32> to vector<256x128xf32>
    %6 = arith.addf %3, %5 : vector<256x128xf32>
    %7 = vector.shape_cast %6 : vector<256x128xf32> to vector<16x16x128xf32>
    %cst_6 = arith.constant dense<0xFF800000> : vector<16x128xf32>
    %8 = vector.multi_reduction <maximumf>, %7, %cst_6 [1] : vector<16x16x128xf32> to vector<16x128xf32>
    %9 = vector.shape_cast %8 : vector<16x128xf32> to vector<16x1x128xf32>
    %10 = vector.broadcast %9 : vector<16x1x128xf32> to vector<16x16x128xf32>
    %11 = arith.subf %7, %10 : vector<16x16x128xf32>
    %12 = math.exp %11 : vector<16x16x128xf32>
    %cst_7 = arith.constant dense<0.000000e+00> : vector<16x128xf32>
    %13 = vector.multi_reduction <add>, %12, %cst_7 [1] : vector<16x16x128xf32> to vector<16x128xf32>
    %14 = vector.shape_cast %13 : vector<16x128xf32> to vector<16x1x128xf32>
    %15 = math.log %14 : vector<16x1x128xf32>
    %16 = arith.addf %15, %9 : vector<16x1x128xf32>
    %17 = vector.broadcast %16 : vector<16x1x128xf32> to vector<16x16x128xf32>
    %18 = arith.subf %7, %17 : vector<16x16x128xf32>
    %c0_8 = arith.constant 0 : index
    %c0_9 = arith.constant 0 : index
    %c0_10 = arith.constant 0 : index
    %19 = vector.load %arg5[%c0_8, %c0_9, %c0_10] : memref<16x16x128xf32, #tpu.memory_space<vmem>>, vector<16x16x128xf32>
    tpu.vector_store %arg5[%c0_8, %c0_9, %c0_10], %18 {strides = array<i32>} : memref<16x16x128xf32, #tpu.memory_space<vmem>>, vector<16x16x128xf32>,
    return
  }
  func.func @transform_0(%arg0: i32, %arg1: i32) -> (i32, i32, i32) {
    %c0_i32 = arith.constant 0 : i32
    %c0_i32_0 = arith.constant 0 : i32
    %c0_i32_1 = arith.constant 0 : i32
    return %arg0, %c0_i32, %c0_i32_0 : i32, i32, i32
  }
  func.func @transform_1(%arg0: i32, %arg1: i32) -> (i32, i32) {
    %c0_i32 = arith.constant 0 : i32
    %c0_i32_0 = arith.constant 0 : i32
    return %c0_i32, %arg1 : i32, i32
  }
  func.func @transform_2(%arg0: i32, %arg1: i32) -> (i32, i32) {
    %c0_i32 = arith.constant 0 : i32
    %c0_i32_0 = arith.constant 0 : i32
    return %c0_i32, %arg1 : i32, i32
  }
  func.func @transform_3(%arg0: i32, %arg1: i32) -> (i32, i32, i32) {
    %c0_i32 = arith.constant 0 : i32
    %c0_i32_0 = arith.constant 0 : i32
    return %arg0, %c0_i32, %arg1 : i32, i32, i32
  }
}

module attributes {stable_mosaic.version = 11 : i64} {
  func.func @lstm_layer_kernel(%arg0: i32, %arg1: memref<8x16x128xbf16, #tpu.memory_space<vmem>>, %arg2: memref<16x128xf32, #tpu.memory_space<vmem>>, %arg3: memref<16x128xf32, #tpu.memory_space<vmem>>, %arg4: memref<128x512xbf16, #tpu.memory_space<vmem>>, %arg5: memref<128x512xbf16, #tpu.memory_space<vmem>>, %arg6: memref<1x512xf32, #tpu.memory_space<vmem>>, %arg7: memref<8x16x128xbf16, #tpu.memory_space<vmem>>, %arg8: memref<16x128xf32, #tpu.memory_space<vmem>>, %arg9: memref<16x128xf32, #tpu.memory_space<vmem>>, %arg10: memref<16x128xf32, #tpu.memory_space<vmem>>, %arg11: memref<16x128xf32, #tpu.memory_space<vmem>>, %arg12: memref<8x16x512xf32, #tpu.memory_space<vmem>>) attributes {dimension_semantics = [#tpu.dimension_semantics<arbitrary>], iteration_bounds = array<i64: 2>, scalar_prefetch = 0 : i64, scratch_operands = 3 : i64, tpu.core_type = #tpu.core_type<tc>, window_params = [{transform_indices = @transform_0, window_bounds = array<i64: 8, 16, 128>}, {pipeline_mode = #tpu.pipeline_mode<synchronous>, transform_indices = @transform_1, window_bounds = array<i64: 16, 128>}, {pipeline_mode = #tpu.pipeline_mode<synchronous>, transform_indices = @transform_2, window_bounds = array<i64: 16, 128>}, {pipeline_mode = #tpu.pipeline_mode<synchronous>, transform_indices = @transform_3, window_bounds = array<i64: 128, 512>}, {pipeline_mode = #tpu.pipeline_mode<synchronous>, transform_indices = @transform_4, window_bounds = array<i64: 128, 512>}, {pipeline_mode = #tpu.pipeline_mode<synchronous>, transform_indices = @transform_5, window_bounds = array<i64: 1, 512>}, {transform_indices = @transform_6, window_bounds = array<i64: 8, 16, 128>}, {pipeline_mode = #tpu.pipeline_mode<synchronous>, transform_indices = @transform_7, window_bounds = array<i64: 16, 128>}, {pipeline_mode = #tpu.pipeline_mode<synchronous>, transform_indices = @transform_8, window_bounds = array<i64: 16, 128>}]} {
    %c0_i32 = arith.constant 0 : i32
    %0 = arith.cmpi eq, %arg0, %c0_i32 : i32
    %1 = arith.extui %0 : i1 to i32
    %c0_i32_0 = arith.constant 0 : i32
    %2 = arith.cmpi ne, %1, %c0_i32_0 : i32
    scf.if %2 {
      %c0_143 = arith.constant 0 : index
      %c0_144 = arith.constant 0 : index
      %336 = vector.load %arg2[%c0_143, %c0_144] : memref<16x128xf32, #tpu.memory_space<vmem>>, vector<16x128xf32>
      %c0_145 = arith.constant 0 : index
      %c0_146 = arith.constant 0 : index
      %337 = vector.load %arg10[%c0_145, %c0_146] : memref<16x128xf32, #tpu.memory_space<vmem>>, vector<16x128xf32>
      tpu.vector_store %arg10[%c0_145, %c0_146], %336 {strides = array<i32>} : memref<16x128xf32, #tpu.memory_space<vmem>>, vector<16x128xf32>,
      %c0_147 = arith.constant 0 : index
      %c0_148 = arith.constant 0 : index
      %338 = vector.load %arg3[%c0_147, %c0_148] : memref<16x128xf32, #tpu.memory_space<vmem>>, vector<16x128xf32>
      %c0_149 = arith.constant 0 : index
      %c0_150 = arith.constant 0 : index
      %339 = vector.load %arg11[%c0_149, %c0_150] : memref<16x128xf32, #tpu.memory_space<vmem>>, vector<16x128xf32>
      tpu.vector_store %arg11[%c0_149, %c0_150], %338 {strides = array<i32>} : memref<16x128xf32, #tpu.memory_space<vmem>>, vector<16x128xf32>,
    } else {
    }
    %c0 = arith.constant 0 : index
    %c0_1 = arith.constant 0 : index
    %c0_2 = arith.constant 0 : index
    %3 = vector.load %arg1[%c0, %c0_1, %c0_2] : memref<8x16x128xbf16, #tpu.memory_space<vmem>>, vector<8x16x128xbf16>
    %4 = vector.shape_cast %3 : vector<8x16x128xbf16> to vector<128x128xbf16>
    %c0_3 = arith.constant 0 : index
    %c0_4 = arith.constant 0 : index
    %5 = vector.load %arg4[%c0_3, %c0_4] : memref<128x512xbf16, #tpu.memory_space<vmem>>, vector<128x512xbf16>
    %cst = arith.constant dense<0.000000e+00> : vector<128x512xf32>
    %6 = tpu.matmul %4, %5, %cst {dimension_numbers = #tpu.dot_dimension_numbers<[1], [0], [0], [1], [0, 0, 1, 1], [], []>} : vector<128x128xbf16>, vector<128x512xbf16>, vector<128x512xf32> -> vector<128x512xf32>
    %c0_5 = arith.constant 0 : index
    %c0_6 = arith.constant 0 : index
    %7 = vector.load %arg6[%c0_5, %c0_6] : memref<1x512xf32, #tpu.memory_space<vmem>>, vector<1x512xf32>
    %8 = vector.broadcast %7 : vector<1x512xf32> to vector<128x512xf32>
    %9 = arith.addf %6, %8 : vector<128x512xf32>
    %10 = vector.shape_cast %9 : vector<128x512xf32> to vector<8x16x512xf32>
    %c0_7 = arith.constant 0 : index
    %c0_8 = arith.constant 0 : index
    %c0_9 = arith.constant 0 : index
    %11 = vector.load %arg12[%c0_7, %c0_8, %c0_9] : memref<8x16x512xf32, #tpu.memory_space<vmem>>, vector<8x16x512xf32>
    tpu.vector_store %arg12[%c0_7, %c0_8, %c0_9], %10 {strides = array<i32>} : memref<8x16x512xf32, #tpu.memory_space<vmem>>, vector<8x16x512xf32>,
    %c0_10 = arith.constant 0 : index
    %c0_11 = arith.constant 0 : index
    %12 = vector.load %arg5[%c0_10, %c0_11] : memref<128x512xbf16, #tpu.memory_space<vmem>>, vector<128x512xbf16>
    %c0_i32_12 = arith.constant 0 : i32
    %c0_13 = arith.constant 0 : index
    %c0_14 = arith.constant 0 : index
    %13 = vector.load %arg10[%c0_13, %c0_14] : memref<16x128xf32, #tpu.memory_space<vmem>>, vector<16x128xf32>
    %c0_15 = arith.constant 0 : index
    %c0_16 = arith.constant 0 : index
    %14 = vector.load %arg11[%c0_15, %c0_16] : memref<16x128xf32, #tpu.memory_space<vmem>>, vector<16x128xf32>
    %15 = arith.index_cast %c0_i32_12 : i32 to index
    %c0_17 = arith.constant 0 : index
    %c0_18 = arith.constant 0 : index
    %16 = vector.load %arg12[%15, %c0_17, %c0_18] : memref<8x16x512xf32, #tpu.memory_space<vmem>>, vector<1x16x512xf32>
    %17 = vector.shape_cast %16 : vector<1x16x512xf32> to vector<16x512xf32>
    %18 = arith.truncf %13 : vector<16x128xf32> to vector<16x128xbf16>
    %cst_19 = arith.constant dense<0.000000e+00> : vector<16x512xf32>
    %19 = tpu.matmul %18, %12, %cst_19 {dimension_numbers = #tpu.dot_dimension_numbers<[1], [0], [0], [1], [0, 0, 1, 1], [], []>} : vector<16x128xbf16>, vector<128x512xbf16>, vector<16x512xf32> -> vector<16x512xf32>
    %20 = arith.addf %17, %19 : vector<16x512xf32>
    %21 = vector.extract_strided_slice %20 {offsets = [0, 0], sizes = [16, 128], strides = [1, 1]} : vector<16x512xf32> to vector<16x128xf32>
    %22 = arith.negf %21 : vector<16x128xf32>
    %23 = math.exp %22 : vector<16x128xf32>
    %cst_20 = arith.constant 1.000000e+00 : f32
    %24 = vector.broadcast %cst_20 : f32 to vector<16x128xf32>
    %25 = arith.addf %24, %23 : vector<16x128xf32>
    %26 = arith.divf %24, %25 : vector<16x128xf32>
    %27 = vector.extract_strided_slice %20 {offsets = [0, 128], sizes = [16, 128], strides = [1, 1]} : vector<16x512xf32> to vector<16x128xf32>
    %28 = arith.negf %27 : vector<16x128xf32>
    %29 = math.exp %28 : vector<16x128xf32>
    %cst_21 = arith.constant 1.000000e+00 : f32
    %30 = vector.broadcast %cst_21 : f32 to vector<16x128xf32>
    %31 = arith.addf %30, %29 : vector<16x128xf32>
    %32 = arith.divf %30, %31 : vector<16x128xf32>
    %33 = vector.extract_strided_slice %20 {offsets = [0, 256], sizes = [16, 128], strides = [1, 1]} : vector<16x512xf32> to vector<16x128xf32>
    %34 = math.tanh %33 : vector<16x128xf32>
    %35 = vector.extract_strided_slice %20 {offsets = [0, 384], sizes = [16, 128], strides = [1, 1]} : vector<16x512xf32> to vector<16x128xf32>
    %36 = arith.negf %35 : vector<16x128xf32>
    %37 = math.exp %36 : vector<16x128xf32>
    %cst_22 = arith.constant 1.000000e+00 : f32
    %38 = vector.broadcast %cst_22 : f32 to vector<16x128xf32>
    %39 = arith.addf %38, %37 : vector<16x128xf32>
    %40 = arith.divf %38, %39 : vector<16x128xf32>
    %41 = arith.mulf %32, %14 : vector<16x128xf32>
    %42 = arith.mulf %26, %34 : vector<16x128xf32>
    %43 = arith.addf %41, %42 : vector<16x128xf32>
    %44 = math.tanh %43 : vector<16x128xf32>
    %45 = arith.mulf %40, %44 : vector<16x128xf32>
    %c0_23 = arith.constant 0 : index
    %c0_24 = arith.constant 0 : index
    %46 = vector.load %arg10[%c0_23, %c0_24] : memref<16x128xf32, #tpu.memory_space<vmem>>, vector<16x128xf32>
    tpu.vector_store %arg10[%c0_23, %c0_24], %45 {strides = array<i32>} : memref<16x128xf32, #tpu.memory_space<vmem>>, vector<16x128xf32>,
    %c0_25 = arith.constant 0 : index
    %c0_26 = arith.constant 0 : index
    %47 = vector.load %arg11[%c0_25, %c0_26] : memref<16x128xf32, #tpu.memory_space<vmem>>, vector<16x128xf32>
    tpu.vector_store %arg11[%c0_25, %c0_26], %43 {strides = array<i32>} : memref<16x128xf32, #tpu.memory_space<vmem>>, vector<16x128xf32>,
    %48 = arith.truncf %45 : vector<16x128xf32> to vector<16x128xbf16>
    %49 = arith.index_cast %c0_i32_12 : i32 to index
    %c0_27 = arith.constant 0 : index
    %c0_28 = arith.constant 0 : index
    %50 = vector.load %arg7[%49, %c0_27, %c0_28] : memref<8x16x128xbf16, #tpu.memory_space<vmem>>, vector<1x16x128xbf16>
    %51 = vector.shape_cast %50 : vector<1x16x128xbf16> to vector<16x128xbf16>
    %52 = vector.shape_cast %48 : vector<16x128xbf16> to vector<1x16x128xbf16>
    tpu.vector_store %arg7[%49, %c0_27, %c0_28], %52 {strides = array<i32>} : memref<8x16x128xbf16, #tpu.memory_space<vmem>>, vector<1x16x128xbf16>,
    %c1_i32 = arith.constant 1 : i32
    %c0_29 = arith.constant 0 : index
    %c0_30 = arith.constant 0 : index
    %53 = vector.load %arg10[%c0_29, %c0_30] : memref<16x128xf32, #tpu.memory_space<vmem>>, vector<16x128xf32>
    %c0_31 = arith.constant 0 : index
    %c0_32 = arith.constant 0 : index
    %54 = vector.load %arg11[%c0_31, %c0_32] : memref<16x128xf32, #tpu.memory_space<vmem>>, vector<16x128xf32>
    %55 = arith.index_cast %c1_i32 : i32 to index
    %c0_33 = arith.constant 0 : index
    %c0_34 = arith.constant 0 : index
    %56 = vector.load %arg12[%55, %c0_33, %c0_34] : memref<8x16x512xf32, #tpu.memory_space<vmem>>, vector<1x16x512xf32>
    %57 = vector.shape_cast %56 : vector<1x16x512xf32> to vector<16x512xf32>
    %58 = arith.truncf %53 : vector<16x128xf32> to vector<16x128xbf16>
    %cst_35 = arith.constant dense<0.000000e+00> : vector<16x512xf32>
    %59 = tpu.matmul %58, %12, %cst_35 {dimension_numbers = #tpu.dot_dimension_numbers<[1], [0], [0], [1], [0, 0, 1, 1], [], []>} : vector<16x128xbf16>, vector<128x512xbf16>, vector<16x512xf32> -> vector<16x512xf32>
    %60 = arith.addf %57, %59 : vector<16x512xf32>
    %61 = vector.extract_strided_slice %60 {offsets = [0, 0], sizes = [16, 128], strides = [1, 1]} : vector<16x512xf32> to vector<16x128xf32>
    %62 = arith.negf %61 : vector<16x128xf32>
    %63 = math.exp %62 : vector<16x128xf32>
    %cst_36 = arith.constant 1.000000e+00 : f32
    %64 = vector.broadcast %cst_36 : f32 to vector<16x128xf32>
    %65 = arith.addf %64, %63 : vector<16x128xf32>
    %66 = arith.divf %64, %65 : vector<16x128xf32>
    %67 = vector.extract_strided_slice %60 {offsets = [0, 128], sizes = [16, 128], strides = [1, 1]} : vector<16x512xf32> to vector<16x128xf32>
    %68 = arith.negf %67 : vector<16x128xf32>
    %69 = math.exp %68 : vector<16x128xf32>
    %cst_37 = arith.constant 1.000000e+00 : f32
    %70 = vector.broadcast %cst_37 : f32 to vector<16x128xf32>
    %71 = arith.addf %70, %69 : vector<16x128xf32>
    %72 = arith.divf %70, %71 : vector<16x128xf32>
    %73 = vector.extract_strided_slice %60 {offsets = [0, 256], sizes = [16, 128], strides = [1, 1]} : vector<16x512xf32> to vector<16x128xf32>
    %74 = math.tanh %73 : vector<16x128xf32>
    %75 = vector.extract_strided_slice %60 {offsets = [0, 384], sizes = [16, 128], strides = [1, 1]} : vector<16x512xf32> to vector<16x128xf32>
    %76 = arith.negf %75 : vector<16x128xf32>
    %77 = math.exp %76 : vector<16x128xf32>
    %cst_38 = arith.constant 1.000000e+00 : f32
    %78 = vector.broadcast %cst_38 : f32 to vector<16x128xf32>
    %79 = arith.addf %78, %77 : vector<16x128xf32>
    %80 = arith.divf %78, %79 : vector<16x128xf32>
    %81 = arith.mulf %72, %54 : vector<16x128xf32>
    %82 = arith.mulf %66, %74 : vector<16x128xf32>
    %83 = arith.addf %81, %82 : vector<16x128xf32>
    %84 = math.tanh %83 : vector<16x128xf32>
    %85 = arith.mulf %80, %84 : vector<16x128xf32>
    %c0_39 = arith.constant 0 : index
    %c0_40 = arith.constant 0 : index
    %86 = vector.load %arg10[%c0_39, %c0_40] : memref<16x128xf32, #tpu.memory_space<vmem>>, vector<16x128xf32>
    tpu.vector_store %arg10[%c0_39, %c0_40], %85 {strides = array<i32>} : memref<16x128xf32, #tpu.memory_space<vmem>>, vector<16x128xf32>,
    %c0_41 = arith.constant 0 : index
    %c0_42 = arith.constant 0 : index
    %87 = vector.load %arg11[%c0_41, %c0_42] : memref<16x128xf32, #tpu.memory_space<vmem>>, vector<16x128xf32>
    tpu.vector_store %arg11[%c0_41, %c0_42], %83 {strides = array<i32>} : memref<16x128xf32, #tpu.memory_space<vmem>>, vector<16x128xf32>,
    %88 = arith.truncf %85 : vector<16x128xf32> to vector<16x128xbf16>
    %89 = arith.index_cast %c1_i32 : i32 to index
    %c0_43 = arith.constant 0 : index
    %c0_44 = arith.constant 0 : index
    %90 = vector.load %arg7[%89, %c0_43, %c0_44] : memref<8x16x128xbf16, #tpu.memory_space<vmem>>, vector<1x16x128xbf16>
    %91 = vector.shape_cast %90 : vector<1x16x128xbf16> to vector<16x128xbf16>
    %92 = vector.shape_cast %88 : vector<16x128xbf16> to vector<1x16x128xbf16>
    tpu.vector_store %arg7[%89, %c0_43, %c0_44], %92 {strides = array<i32>} : memref<8x16x128xbf16, #tpu.memory_space<vmem>>, vector<1x16x128xbf16>,
    %c2_i32 = arith.constant 2 : i32
    %c0_45 = arith.constant 0 : index
    %c0_46 = arith.constant 0 : index
    %93 = vector.load %arg10[%c0_45, %c0_46] : memref<16x128xf32, #tpu.memory_space<vmem>>, vector<16x128xf32>
    %c0_47 = arith.constant 0 : index
    %c0_48 = arith.constant 0 : index
    %94 = vector.load %arg11[%c0_47, %c0_48] : memref<16x128xf32, #tpu.memory_space<vmem>>, vector<16x128xf32>
    %95 = arith.index_cast %c2_i32 : i32 to index
    %c0_49 = arith.constant 0 : index
    %c0_50 = arith.constant 0 : index
    %96 = vector.load %arg12[%95, %c0_49, %c0_50] : memref<8x16x512xf32, #tpu.memory_space<vmem>>, vector<1x16x512xf32>
    %97 = vector.shape_cast %96 : vector<1x16x512xf32> to vector<16x512xf32>
    %98 = arith.truncf %93 : vector<16x128xf32> to vector<16x128xbf16>
    %cst_51 = arith.constant dense<0.000000e+00> : vector<16x512xf32>
    %99 = tpu.matmul %98, %12, %cst_51 {dimension_numbers = #tpu.dot_dimension_numbers<[1], [0], [0], [1], [0, 0, 1, 1], [], []>} : vector<16x128xbf16>, vector<128x512xbf16>, vector<16x512xf32> -> vector<16x512xf32>
    %100 = arith.addf %97, %99 : vector<16x512xf32>
    %101 = vector.extract_strided_slice %100 {offsets = [0, 0], sizes = [16, 128], strides = [1, 1]} : vector<16x512xf32> to vector<16x128xf32>
    %102 = arith.negf %101 : vector<16x128xf32>
    %103 = math.exp %102 : vector<16x128xf32>
    %cst_52 = arith.constant 1.000000e+00 : f32
    %104 = vector.broadcast %cst_52 : f32 to vector<16x128xf32>
    %105 = arith.addf %104, %103 : vector<16x128xf32>
    %106 = arith.divf %104, %105 : vector<16x128xf32>
    %107 = vector.extract_strided_slice %100 {offsets = [0, 128], sizes = [16, 128], strides = [1, 1]} : vector<16x512xf32> to vector<16x128xf32>
    %108 = arith.negf %107 : vector<16x128xf32>
    %109 = math.exp %108 : vector<16x128xf32>
    %cst_53 = arith.constant 1.000000e+00 : f32
    %110 = vector.broadcast %cst_53 : f32 to vector<16x128xf32>
    %111 = arith.addf %110, %109 : vector<16x128xf32>
    %112 = arith.divf %110, %111 : vector<16x128xf32>
    %113 = vector.extract_strided_slice %100 {offsets = [0, 256], sizes = [16, 128], strides = [1, 1]} : vector<16x512xf32> to vector<16x128xf32>
    %114 = math.tanh %113 : vector<16x128xf32>
    %115 = vector.extract_strided_slice %100 {offsets = [0, 384], sizes = [16, 128], strides = [1, 1]} : vector<16x512xf32> to vector<16x128xf32>
    %116 = arith.negf %115 : vector<16x128xf32>
    %117 = math.exp %116 : vector<16x128xf32>
    %cst_54 = arith.constant 1.000000e+00 : f32
    %118 = vector.broadcast %cst_54 : f32 to vector<16x128xf32>
    %119 = arith.addf %118, %117 : vector<16x128xf32>
    %120 = arith.divf %118, %119 : vector<16x128xf32>
    %121 = arith.mulf %112, %94 : vector<16x128xf32>
    %122 = arith.mulf %106, %114 : vector<16x128xf32>
    %123 = arith.addf %121, %122 : vector<16x128xf32>
    %124 = math.tanh %123 : vector<16x128xf32>
    %125 = arith.mulf %120, %124 : vector<16x128xf32>
    %c0_55 = arith.constant 0 : index
    %c0_56 = arith.constant 0 : index
    %126 = vector.load %arg10[%c0_55, %c0_56] : memref<16x128xf32, #tpu.memory_space<vmem>>, vector<16x128xf32>
    tpu.vector_store %arg10[%c0_55, %c0_56], %125 {strides = array<i32>} : memref<16x128xf32, #tpu.memory_space<vmem>>, vector<16x128xf32>,
    %c0_57 = arith.constant 0 : index
    %c0_58 = arith.constant 0 : index
    %127 = vector.load %arg11[%c0_57, %c0_58] : memref<16x128xf32, #tpu.memory_space<vmem>>, vector<16x128xf32>
    tpu.vector_store %arg11[%c0_57, %c0_58], %123 {strides = array<i32>} : memref<16x128xf32, #tpu.memory_space<vmem>>, vector<16x128xf32>,
    %128 = arith.truncf %125 : vector<16x128xf32> to vector<16x128xbf16>
    %129 = arith.index_cast %c2_i32 : i32 to index
    %c0_59 = arith.constant 0 : index
    %c0_60 = arith.constant 0 : index
    %130 = vector.load %arg7[%129, %c0_59, %c0_60] : memref<8x16x128xbf16, #tpu.memory_space<vmem>>, vector<1x16x128xbf16>
    %131 = vector.shape_cast %130 : vector<1x16x128xbf16> to vector<16x128xbf16>
    %132 = vector.shape_cast %128 : vector<16x128xbf16> to vector<1x16x128xbf16>
    tpu.vector_store %arg7[%129, %c0_59, %c0_60], %132 {strides = array<i32>} : memref<8x16x128xbf16, #tpu.memory_space<vmem>>, vector<1x16x128xbf16>,
    %c3_i32 = arith.constant 3 : i32
    %c0_61 = arith.constant 0 : index
    %c0_62 = arith.constant 0 : index
    %133 = vector.load %arg10[%c0_61, %c0_62] : memref<16x128xf32, #tpu.memory_space<vmem>>, vector<16x128xf32>
    %c0_63 = arith.constant 0 : index
    %c0_64 = arith.constant 0 : index
    %134 = vector.load %arg11[%c0_63, %c0_64] : memref<16x128xf32, #tpu.memory_space<vmem>>, vector<16x128xf32>
    %135 = arith.index_cast %c3_i32 : i32 to index
    %c0_65 = arith.constant 0 : index
    %c0_66 = arith.constant 0 : index
    %136 = vector.load %arg12[%135, %c0_65, %c0_66] : memref<8x16x512xf32, #tpu.memory_space<vmem>>, vector<1x16x512xf32>
    %137 = vector.shape_cast %136 : vector<1x16x512xf32> to vector<16x512xf32>
    %138 = arith.truncf %133 : vector<16x128xf32> to vector<16x128xbf16>
    %cst_67 = arith.constant dense<0.000000e+00> : vector<16x512xf32>
    %139 = tpu.matmul %138, %12, %cst_67 {dimension_numbers = #tpu.dot_dimension_numbers<[1], [0], [0], [1], [0, 0, 1, 1], [], []>} : vector<16x128xbf16>, vector<128x512xbf16>, vector<16x512xf32> -> vector<16x512xf32>
    %140 = arith.addf %137, %139 : vector<16x512xf32>
    %141 = vector.extract_strided_slice %140 {offsets = [0, 0], sizes = [16, 128], strides = [1, 1]} : vector<16x512xf32> to vector<16x128xf32>
    %142 = arith.negf %141 : vector<16x128xf32>
    %143 = math.exp %142 : vector<16x128xf32>
    %cst_68 = arith.constant 1.000000e+00 : f32
    %144 = vector.broadcast %cst_68 : f32 to vector<16x128xf32>
    %145 = arith.addf %144, %143 : vector<16x128xf32>
    %146 = arith.divf %144, %145 : vector<16x128xf32>
    %147 = vector.extract_strided_slice %140 {offsets = [0, 128], sizes = [16, 128], strides = [1, 1]} : vector<16x512xf32> to vector<16x128xf32>
    %148 = arith.negf %147 : vector<16x128xf32>
    %149 = math.exp %148 : vector<16x128xf32>
    %cst_69 = arith.constant 1.000000e+00 : f32
    %150 = vector.broadcast %cst_69 : f32 to vector<16x128xf32>
    %151 = arith.addf %150, %149 : vector<16x128xf32>
    %152 = arith.divf %150, %151 : vector<16x128xf32>
    %153 = vector.extract_strided_slice %140 {offsets = [0, 256], sizes = [16, 128], strides = [1, 1]} : vector<16x512xf32> to vector<16x128xf32>
    %154 = math.tanh %153 : vector<16x128xf32>
    %155 = vector.extract_strided_slice %140 {offsets = [0, 384], sizes = [16, 128], strides = [1, 1]} : vector<16x512xf32> to vector<16x128xf32>
    %156 = arith.negf %155 : vector<16x128xf32>
    %157 = math.exp %156 : vector<16x128xf32>
    %cst_70 = arith.constant 1.000000e+00 : f32
    %158 = vector.broadcast %cst_70 : f32 to vector<16x128xf32>
    %159 = arith.addf %158, %157 : vector<16x128xf32>
    %160 = arith.divf %158, %159 : vector<16x128xf32>
    %161 = arith.mulf %152, %134 : vector<16x128xf32>
    %162 = arith.mulf %146, %154 : vector<16x128xf32>
    %163 = arith.addf %161, %162 : vector<16x128xf32>
    %164 = math.tanh %163 : vector<16x128xf32>
    %165 = arith.mulf %160, %164 : vector<16x128xf32>
    %c0_71 = arith.constant 0 : index
    %c0_72 = arith.constant 0 : index
    %166 = vector.load %arg10[%c0_71, %c0_72] : memref<16x128xf32, #tpu.memory_space<vmem>>, vector<16x128xf32>
    tpu.vector_store %arg10[%c0_71, %c0_72], %165 {strides = array<i32>} : memref<16x128xf32, #tpu.memory_space<vmem>>, vector<16x128xf32>,
    %c0_73 = arith.constant 0 : index
    %c0_74 = arith.constant 0 : index
    %167 = vector.load %arg11[%c0_73, %c0_74] : memref<16x128xf32, #tpu.memory_space<vmem>>, vector<16x128xf32>
    tpu.vector_store %arg11[%c0_73, %c0_74], %163 {strides = array<i32>} : memref<16x128xf32, #tpu.memory_space<vmem>>, vector<16x128xf32>,
    %168 = arith.truncf %165 : vector<16x128xf32> to vector<16x128xbf16>
    %169 = arith.index_cast %c3_i32 : i32 to index
    %c0_75 = arith.constant 0 : index
    %c0_76 = arith.constant 0 : index
    %170 = vector.load %arg7[%169, %c0_75, %c0_76] : memref<8x16x128xbf16, #tpu.memory_space<vmem>>, vector<1x16x128xbf16>
    %171 = vector.shape_cast %170 : vector<1x16x128xbf16> to vector<16x128xbf16>
    %172 = vector.shape_cast %168 : vector<16x128xbf16> to vector<1x16x128xbf16>
    tpu.vector_store %arg7[%169, %c0_75, %c0_76], %172 {strides = array<i32>} : memref<8x16x128xbf16, #tpu.memory_space<vmem>>, vector<1x16x128xbf16>,
    %c4_i32 = arith.constant 4 : i32
    %c0_77 = arith.constant 0 : index
    %c0_78 = arith.constant 0 : index
    %173 = vector.load %arg10[%c0_77, %c0_78] : memref<16x128xf32, #tpu.memory_space<vmem>>, vector<16x128xf32>
    %c0_79 = arith.constant 0 : index
    %c0_80 = arith.constant 0 : index
    %174 = vector.load %arg11[%c0_79, %c0_80] : memref<16x128xf32, #tpu.memory_space<vmem>>, vector<16x128xf32>
    %175 = arith.index_cast %c4_i32 : i32 to index
    %c0_81 = arith.constant 0 : index
    %c0_82 = arith.constant 0 : index
    %176 = vector.load %arg12[%175, %c0_81, %c0_82] : memref<8x16x512xf32, #tpu.memory_space<vmem>>, vector<1x16x512xf32>
    %177 = vector.shape_cast %176 : vector<1x16x512xf32> to vector<16x512xf32>
    %178 = arith.truncf %173 : vector<16x128xf32> to vector<16x128xbf16>
    %cst_83 = arith.constant dense<0.000000e+00> : vector<16x512xf32>
    %179 = tpu.matmul %178, %12, %cst_83 {dimension_numbers = #tpu.dot_dimension_numbers<[1], [0], [0], [1], [0, 0, 1, 1], [], []>} : vector<16x128xbf16>, vector<128x512xbf16>, vector<16x512xf32> -> vector<16x512xf32>
    %180 = arith.addf %177, %179 : vector<16x512xf32>
    %181 = vector.extract_strided_slice %180 {offsets = [0, 0], sizes = [16, 128], strides = [1, 1]} : vector<16x512xf32> to vector<16x128xf32>
    %182 = arith.negf %181 : vector<16x128xf32>
    %183 = math.exp %182 : vector<16x128xf32>
    %cst_84 = arith.constant 1.000000e+00 : f32
    %184 = vector.broadcast %cst_84 : f32 to vector<16x128xf32>
    %185 = arith.addf %184, %183 : vector<16x128xf32>
    %186 = arith.divf %184, %185 : vector<16x128xf32>
    %187 = vector.extract_strided_slice %180 {offsets = [0, 128], sizes = [16, 128], strides = [1, 1]} : vector<16x512xf32> to vector<16x128xf32>
    %188 = arith.negf %187 : vector<16x128xf32>
    %189 = math.exp %188 : vector<16x128xf32>
    %cst_85 = arith.constant 1.000000e+00 : f32
    %190 = vector.broadcast %cst_85 : f32 to vector<16x128xf32>
    %191 = arith.addf %190, %189 : vector<16x128xf32>
    %192 = arith.divf %190, %191 : vector<16x128xf32>
    %193 = vector.extract_strided_slice %180 {offsets = [0, 256], sizes = [16, 128], strides = [1, 1]} : vector<16x512xf32> to vector<16x128xf32>
    %194 = math.tanh %193 : vector<16x128xf32>
    %195 = vector.extract_strided_slice %180 {offsets = [0, 384], sizes = [16, 128], strides = [1, 1]} : vector<16x512xf32> to vector<16x128xf32>
    %196 = arith.negf %195 : vector<16x128xf32>
    %197 = math.exp %196 : vector<16x128xf32>
    %cst_86 = arith.constant 1.000000e+00 : f32
    %198 = vector.broadcast %cst_86 : f32 to vector<16x128xf32>
    %199 = arith.addf %198, %197 : vector<16x128xf32>
    %200 = arith.divf %198, %199 : vector<16x128xf32>
    %201 = arith.mulf %192, %174 : vector<16x128xf32>
    %202 = arith.mulf %186, %194 : vector<16x128xf32>
    %203 = arith.addf %201, %202 : vector<16x128xf32>
    %204 = math.tanh %203 : vector<16x128xf32>
    %205 = arith.mulf %200, %204 : vector<16x128xf32>
    %c0_87 = arith.constant 0 : index
    %c0_88 = arith.constant 0 : index
    %206 = vector.load %arg10[%c0_87, %c0_88] : memref<16x128xf32, #tpu.memory_space<vmem>>, vector<16x128xf32>
    tpu.vector_store %arg10[%c0_87, %c0_88], %205 {strides = array<i32>} : memref<16x128xf32, #tpu.memory_space<vmem>>, vector<16x128xf32>,
    %c0_89 = arith.constant 0 : index
    %c0_90 = arith.constant 0 : index
    %207 = vector.load %arg11[%c0_89, %c0_90] : memref<16x128xf32, #tpu.memory_space<vmem>>, vector<16x128xf32>
    tpu.vector_store %arg11[%c0_89, %c0_90], %203 {strides = array<i32>} : memref<16x128xf32, #tpu.memory_space<vmem>>, vector<16x128xf32>,
    %208 = arith.truncf %205 : vector<16x128xf32> to vector<16x128xbf16>
    %209 = arith.index_cast %c4_i32 : i32 to index
    %c0_91 = arith.constant 0 : index
    %c0_92 = arith.constant 0 : index
    %210 = vector.load %arg7[%209, %c0_91, %c0_92] : memref<8x16x128xbf16, #tpu.memory_space<vmem>>, vector<1x16x128xbf16>
    %211 = vector.shape_cast %210 : vector<1x16x128xbf16> to vector<16x128xbf16>
    %212 = vector.shape_cast %208 : vector<16x128xbf16> to vector<1x16x128xbf16>
    tpu.vector_store %arg7[%209, %c0_91, %c0_92], %212 {strides = array<i32>} : memref<8x16x128xbf16, #tpu.memory_space<vmem>>, vector<1x16x128xbf16>,
    %c5_i32 = arith.constant 5 : i32
    %c0_93 = arith.constant 0 : index
    %c0_94 = arith.constant 0 : index
    %213 = vector.load %arg10[%c0_93, %c0_94] : memref<16x128xf32, #tpu.memory_space<vmem>>, vector<16x128xf32>
    %c0_95 = arith.constant 0 : index
    %c0_96 = arith.constant 0 : index
    %214 = vector.load %arg11[%c0_95, %c0_96] : memref<16x128xf32, #tpu.memory_space<vmem>>, vector<16x128xf32>
    %215 = arith.index_cast %c5_i32 : i32 to index
    %c0_97 = arith.constant 0 : index
    %c0_98 = arith.constant 0 : index
    %216 = vector.load %arg12[%215, %c0_97, %c0_98] : memref<8x16x512xf32, #tpu.memory_space<vmem>>, vector<1x16x512xf32>
    %217 = vector.shape_cast %216 : vector<1x16x512xf32> to vector<16x512xf32>
    %218 = arith.truncf %213 : vector<16x128xf32> to vector<16x128xbf16>
    %cst_99 = arith.constant dense<0.000000e+00> : vector<16x512xf32>
    %219 = tpu.matmul %218, %12, %cst_99 {dimension_numbers = #tpu.dot_dimension_numbers<[1], [0], [0], [1], [0, 0, 1, 1], [], []>} : vector<16x128xbf16>, vector<128x512xbf16>, vector<16x512xf32> -> vector<16x512xf32>
    %220 = arith.addf %217, %219 : vector<16x512xf32>
    %221 = vector.extract_strided_slice %220 {offsets = [0, 0], sizes = [16, 128], strides = [1, 1]} : vector<16x512xf32> to vector<16x128xf32>
    %222 = arith.negf %221 : vector<16x128xf32>
    %223 = math.exp %222 : vector<16x128xf32>
    %cst_100 = arith.constant 1.000000e+00 : f32
    %224 = vector.broadcast %cst_100 : f32 to vector<16x128xf32>
    %225 = arith.addf %224, %223 : vector<16x128xf32>
    %226 = arith.divf %224, %225 : vector<16x128xf32>
    %227 = vector.extract_strided_slice %220 {offsets = [0, 128], sizes = [16, 128], strides = [1, 1]} : vector<16x512xf32> to vector<16x128xf32>
    %228 = arith.negf %227 : vector<16x128xf32>
    %229 = math.exp %228 : vector<16x128xf32>
    %cst_101 = arith.constant 1.000000e+00 : f32
    %230 = vector.broadcast %cst_101 : f32 to vector<16x128xf32>
    %231 = arith.addf %230, %229 : vector<16x128xf32>
    %232 = arith.divf %230, %231 : vector<16x128xf32>
    %233 = vector.extract_strided_slice %220 {offsets = [0, 256], sizes = [16, 128], strides = [1, 1]} : vector<16x512xf32> to vector<16x128xf32>
    %234 = math.tanh %233 : vector<16x128xf32>
    %235 = vector.extract_strided_slice %220 {offsets = [0, 384], sizes = [16, 128], strides = [1, 1]} : vector<16x512xf32> to vector<16x128xf32>
    %236 = arith.negf %235 : vector<16x128xf32>
    %237 = math.exp %236 : vector<16x128xf32>
    %cst_102 = arith.constant 1.000000e+00 : f32
    %238 = vector.broadcast %cst_102 : f32 to vector<16x128xf32>
    %239 = arith.addf %238, %237 : vector<16x128xf32>
    %240 = arith.divf %238, %239 : vector<16x128xf32>
    %241 = arith.mulf %232, %214 : vector<16x128xf32>
    %242 = arith.mulf %226, %234 : vector<16x128xf32>
    %243 = arith.addf %241, %242 : vector<16x128xf32>
    %244 = math.tanh %243 : vector<16x128xf32>
    %245 = arith.mulf %240, %244 : vector<16x128xf32>
    %c0_103 = arith.constant 0 : index
    %c0_104 = arith.constant 0 : index
    %246 = vector.load %arg10[%c0_103, %c0_104] : memref<16x128xf32, #tpu.memory_space<vmem>>, vector<16x128xf32>
    tpu.vector_store %arg10[%c0_103, %c0_104], %245 {strides = array<i32>} : memref<16x128xf32, #tpu.memory_space<vmem>>, vector<16x128xf32>,
    %c0_105 = arith.constant 0 : index
    %c0_106 = arith.constant 0 : index
    %247 = vector.load %arg11[%c0_105, %c0_106] : memref<16x128xf32, #tpu.memory_space<vmem>>, vector<16x128xf32>
    tpu.vector_store %arg11[%c0_105, %c0_106], %243 {strides = array<i32>} : memref<16x128xf32, #tpu.memory_space<vmem>>, vector<16x128xf32>,
    %248 = arith.truncf %245 : vector<16x128xf32> to vector<16x128xbf16>
    %249 = arith.index_cast %c5_i32 : i32 to index
    %c0_107 = arith.constant 0 : index
    %c0_108 = arith.constant 0 : index
    %250 = vector.load %arg7[%249, %c0_107, %c0_108] : memref<8x16x128xbf16, #tpu.memory_space<vmem>>, vector<1x16x128xbf16>
    %251 = vector.shape_cast %250 : vector<1x16x128xbf16> to vector<16x128xbf16>
    %252 = vector.shape_cast %248 : vector<16x128xbf16> to vector<1x16x128xbf16>
    tpu.vector_store %arg7[%249, %c0_107, %c0_108], %252 {strides = array<i32>} : memref<8x16x128xbf16, #tpu.memory_space<vmem>>, vector<1x16x128xbf16>,
    %c6_i32 = arith.constant 6 : i32
    %c0_109 = arith.constant 0 : index
    %c0_110 = arith.constant 0 : index
    %253 = vector.load %arg10[%c0_109, %c0_110] : memref<16x128xf32, #tpu.memory_space<vmem>>, vector<16x128xf32>
    %c0_111 = arith.constant 0 : index
    %c0_112 = arith.constant 0 : index
    %254 = vector.load %arg11[%c0_111, %c0_112] : memref<16x128xf32, #tpu.memory_space<vmem>>, vector<16x128xf32>
    %255 = arith.index_cast %c6_i32 : i32 to index
    %c0_113 = arith.constant 0 : index
    %c0_114 = arith.constant 0 : index
    %256 = vector.load %arg12[%255, %c0_113, %c0_114] : memref<8x16x512xf32, #tpu.memory_space<vmem>>, vector<1x16x512xf32>
    %257 = vector.shape_cast %256 : vector<1x16x512xf32> to vector<16x512xf32>
    %258 = arith.truncf %253 : vector<16x128xf32> to vector<16x128xbf16>
    %cst_115 = arith.constant dense<0.000000e+00> : vector<16x512xf32>
    %259 = tpu.matmul %258, %12, %cst_115 {dimension_numbers = #tpu.dot_dimension_numbers<[1], [0], [0], [1], [0, 0, 1, 1], [], []>} : vector<16x128xbf16>, vector<128x512xbf16>, vector<16x512xf32> -> vector<16x512xf32>
    %260 = arith.addf %257, %259 : vector<16x512xf32>
    %261 = vector.extract_strided_slice %260 {offsets = [0, 0], sizes = [16, 128], strides = [1, 1]} : vector<16x512xf32> to vector<16x128xf32>
    %262 = arith.negf %261 : vector<16x128xf32>
    %263 = math.exp %262 : vector<16x128xf32>
    %cst_116 = arith.constant 1.000000e+00 : f32
    %264 = vector.broadcast %cst_116 : f32 to vector<16x128xf32>
    %265 = arith.addf %264, %263 : vector<16x128xf32>
    %266 = arith.divf %264, %265 : vector<16x128xf32>
    %267 = vector.extract_strided_slice %260 {offsets = [0, 128], sizes = [16, 128], strides = [1, 1]} : vector<16x512xf32> to vector<16x128xf32>
    %268 = arith.negf %267 : vector<16x128xf32>
    %269 = math.exp %268 : vector<16x128xf32>
    %cst_117 = arith.constant 1.000000e+00 : f32
    %270 = vector.broadcast %cst_117 : f32 to vector<16x128xf32>
    %271 = arith.addf %270, %269 : vector<16x128xf32>
    %272 = arith.divf %270, %271 : vector<16x128xf32>
    %273 = vector.extract_strided_slice %260 {offsets = [0, 256], sizes = [16, 128], strides = [1, 1]} : vector<16x512xf32> to vector<16x128xf32>
    %274 = math.tanh %273 : vector<16x128xf32>
    %275 = vector.extract_strided_slice %260 {offsets = [0, 384], sizes = [16, 128], strides = [1, 1]} : vector<16x512xf32> to vector<16x128xf32>
    %276 = arith.negf %275 : vector<16x128xf32>
    %277 = math.exp %276 : vector<16x128xf32>
    %cst_118 = arith.constant 1.000000e+00 : f32
    %278 = vector.broadcast %cst_118 : f32 to vector<16x128xf32>
    %279 = arith.addf %278, %277 : vector<16x128xf32>
    %280 = arith.divf %278, %279 : vector<16x128xf32>
    %281 = arith.mulf %272, %254 : vector<16x128xf32>
    %282 = arith.mulf %266, %274 : vector<16x128xf32>
    %283 = arith.addf %281, %282 : vector<16x128xf32>
    %284 = math.tanh %283 : vector<16x128xf32>
    %285 = arith.mulf %280, %284 : vector<16x128xf32>
    %c0_119 = arith.constant 0 : index
    %c0_120 = arith.constant 0 : index
    %286 = vector.load %arg10[%c0_119, %c0_120] : memref<16x128xf32, #tpu.memory_space<vmem>>, vector<16x128xf32>
    tpu.vector_store %arg10[%c0_119, %c0_120], %285 {strides = array<i32>} : memref<16x128xf32, #tpu.memory_space<vmem>>, vector<16x128xf32>,
    %c0_121 = arith.constant 0 : index
    %c0_122 = arith.constant 0 : index
    %287 = vector.load %arg11[%c0_121, %c0_122] : memref<16x128xf32, #tpu.memory_space<vmem>>, vector<16x128xf32>
    tpu.vector_store %arg11[%c0_121, %c0_122], %283 {strides = array<i32>} : memref<16x128xf32, #tpu.memory_space<vmem>>, vector<16x128xf32>,
    %288 = arith.truncf %285 : vector<16x128xf32> to vector<16x128xbf16>
    %289 = arith.index_cast %c6_i32 : i32 to index
    %c0_123 = arith.constant 0 : index
    %c0_124 = arith.constant 0 : index
    %290 = vector.load %arg7[%289, %c0_123, %c0_124] : memref<8x16x128xbf16, #tpu.memory_space<vmem>>, vector<1x16x128xbf16>
    %291 = vector.shape_cast %290 : vector<1x16x128xbf16> to vector<16x128xbf16>
    %292 = vector.shape_cast %288 : vector<16x128xbf16> to vector<1x16x128xbf16>
    tpu.vector_store %arg7[%289, %c0_123, %c0_124], %292 {strides = array<i32>} : memref<8x16x128xbf16, #tpu.memory_space<vmem>>, vector<1x16x128xbf16>,
    %c7_i32 = arith.constant 7 : i32
    %c0_125 = arith.constant 0 : index
    %c0_126 = arith.constant 0 : index
    %293 = vector.load %arg10[%c0_125, %c0_126] : memref<16x128xf32, #tpu.memory_space<vmem>>, vector<16x128xf32>
    %c0_127 = arith.constant 0 : index
    %c0_128 = arith.constant 0 : index
    %294 = vector.load %arg11[%c0_127, %c0_128] : memref<16x128xf32, #tpu.memory_space<vmem>>, vector<16x128xf32>
    %295 = arith.index_cast %c7_i32 : i32 to index
    %c0_129 = arith.constant 0 : index
    %c0_130 = arith.constant 0 : index
    %296 = vector.load %arg12[%295, %c0_129, %c0_130] : memref<8x16x512xf32, #tpu.memory_space<vmem>>, vector<1x16x512xf32>
    %297 = vector.shape_cast %296 : vector<1x16x512xf32> to vector<16x512xf32>
    %298 = arith.truncf %293 : vector<16x128xf32> to vector<16x128xbf16>
    %cst_131 = arith.constant dense<0.000000e+00> : vector<16x512xf32>
    %299 = tpu.matmul %298, %12, %cst_131 {dimension_numbers = #tpu.dot_dimension_numbers<[1], [0], [0], [1], [0, 0, 1, 1], [], []>} : vector<16x128xbf16>, vector<128x512xbf16>, vector<16x512xf32> -> vector<16x512xf32>
    %300 = arith.addf %297, %299 : vector<16x512xf32>
    %301 = vector.extract_strided_slice %300 {offsets = [0, 0], sizes = [16, 128], strides = [1, 1]} : vector<16x512xf32> to vector<16x128xf32>
    %302 = arith.negf %301 : vector<16x128xf32>
    %303 = math.exp %302 : vector<16x128xf32>
    %cst_132 = arith.constant 1.000000e+00 : f32
    %304 = vector.broadcast %cst_132 : f32 to vector<16x128xf32>
    %305 = arith.addf %304, %303 : vector<16x128xf32>
    %306 = arith.divf %304, %305 : vector<16x128xf32>
    %307 = vector.extract_strided_slice %300 {offsets = [0, 128], sizes = [16, 128], strides = [1, 1]} : vector<16x512xf32> to vector<16x128xf32>
    %308 = arith.negf %307 : vector<16x128xf32>
    %309 = math.exp %308 : vector<16x128xf32>
    %cst_133 = arith.constant 1.000000e+00 : f32
    %310 = vector.broadcast %cst_133 : f32 to vector<16x128xf32>
    %311 = arith.addf %310, %309 : vector<16x128xf32>
    %312 = arith.divf %310, %311 : vector<16x128xf32>
    %313 = vector.extract_strided_slice %300 {offsets = [0, 256], sizes = [16, 128], strides = [1, 1]} : vector<16x512xf32> to vector<16x128xf32>
    %314 = math.tanh %313 : vector<16x128xf32>
    %315 = vector.extract_strided_slice %300 {offsets = [0, 384], sizes = [16, 128], strides = [1, 1]} : vector<16x512xf32> to vector<16x128xf32>
    %316 = arith.negf %315 : vector<16x128xf32>
    %317 = math.exp %316 : vector<16x128xf32>
    %cst_134 = arith.constant 1.000000e+00 : f32
    %318 = vector.broadcast %cst_134 : f32 to vector<16x128xf32>
    %319 = arith.addf %318, %317 : vector<16x128xf32>
    %320 = arith.divf %318, %319 : vector<16x128xf32>
    %321 = arith.mulf %312, %294 : vector<16x128xf32>
    %322 = arith.mulf %306, %314 : vector<16x128xf32>
    %323 = arith.addf %321, %322 : vector<16x128xf32>
    %324 = math.tanh %323 : vector<16x128xf32>
    %325 = arith.mulf %320, %324 : vector<16x128xf32>
    %c0_135 = arith.constant 0 : index
    %c0_136 = arith.constant 0 : index
    %326 = vector.load %arg10[%c0_135, %c0_136] : memref<16x128xf32, #tpu.memory_space<vmem>>, vector<16x128xf32>
    tpu.vector_store %arg10[%c0_135, %c0_136], %325 {strides = array<i32>} : memref<16x128xf32, #tpu.memory_space<vmem>>, vector<16x128xf32>,
    %c0_137 = arith.constant 0 : index
    %c0_138 = arith.constant 0 : index
    %327 = vector.load %arg11[%c0_137, %c0_138] : memref<16x128xf32, #tpu.memory_space<vmem>>, vector<16x128xf32>
    tpu.vector_store %arg11[%c0_137, %c0_138], %323 {strides = array<i32>} : memref<16x128xf32, #tpu.memory_space<vmem>>, vector<16x128xf32>,
    %328 = arith.truncf %325 : vector<16x128xf32> to vector<16x128xbf16>
    %329 = arith.index_cast %c7_i32 : i32 to index
    %c0_139 = arith.constant 0 : index
    %c0_140 = arith.constant 0 : index
    %330 = vector.load %arg7[%329, %c0_139, %c0_140] : memref<8x16x128xbf16, #tpu.memory_space<vmem>>, vector<1x16x128xbf16>
    %331 = vector.shape_cast %330 : vector<1x16x128xbf16> to vector<16x128xbf16>
    %332 = vector.shape_cast %328 : vector<16x128xbf16> to vector<1x16x128xbf16>
    tpu.vector_store %arg7[%329, %c0_139, %c0_140], %332 {strides = array<i32>} : memref<8x16x128xbf16, #tpu.memory_space<vmem>>, vector<1x16x128xbf16>,
    %c8_i32 = arith.constant 8 : i32
    %c1_i32_141 = arith.constant 1 : i32
    %333 = arith.cmpi eq, %arg0, %c1_i32_141 : i32
    %334 = arith.extui %333 : i1 to i32
    %c0_i32_142 = arith.constant 0 : i32
    %335 = arith.cmpi ne, %334, %c0_i32_142 : i32
    scf.if %335 {
      %c0_143 = arith.constant 0 : index
      %c0_144 = arith.constant 0 : index
      %336 = vector.load %arg10[%c0_143, %c0_144] : memref<16x128xf32, #tpu.memory_space<vmem>>, vector<16x128xf32>
      %c0_145 = arith.constant 0 : index
      %c0_146 = arith.constant 0 : index
      %337 = vector.load %arg8[%c0_145, %c0_146] : memref<16x128xf32, #tpu.memory_space<vmem>>, vector<16x128xf32>
      tpu.vector_store %arg8[%c0_145, %c0_146], %336 {strides = array<i32>} : memref<16x128xf32, #tpu.memory_space<vmem>>, vector<16x128xf32>,
      %c0_147 = arith.constant 0 : index
      %c0_148 = arith.constant 0 : index
      %338 = vector.load %arg11[%c0_147, %c0_148] : memref<16x128xf32, #tpu.memory_space<vmem>>, vector<16x128xf32>
      %c0_149 = arith.constant 0 : index
      %c0_150 = arith.constant 0 : index
      %339 = vector.load %arg9[%c0_149, %c0_150] : memref<16x128xf32, #tpu.memory_space<vmem>>, vector<16x128xf32>
      tpu.vector_store %arg9[%c0_149, %c0_150], %338 {strides = array<i32>} : memref<16x128xf32, #tpu.memory_space<vmem>>, vector<16x128xf32>,
    } else {
    }
    return
  }
  func.func @transform_0(%arg0: i32) -> (i32, i32, i32) {
    %c0_i32 = arith.constant 0 : i32
    %c0_i32_0 = arith.constant 0 : i32
    %c0_i32_1 = arith.constant 0 : i32
    return %arg0, %c0_i32, %c0_i32_0 : i32, i32, i32
  }
  func.func @transform_1(%arg0: i32) -> (i32, i32) {
    %c0_i32 = arith.constant 0 : i32
    %c0_i32_0 = arith.constant 0 : i32
    %c0_i32_1 = arith.constant 0 : i32
    return %c0_i32, %c0_i32_0 : i32, i32
  }
  func.func @transform_2(%arg0: i32) -> (i32, i32) {
    %c0_i32 = arith.constant 0 : i32
    %c0_i32_0 = arith.constant 0 : i32
    %c0_i32_1 = arith.constant 0 : i32
    return %c0_i32, %c0_i32_0 : i32, i32
  }
  func.func @transform_3(%arg0: i32) -> (i32, i32) {
    %c0_i32 = arith.constant 0 : i32
    %c0_i32_0 = arith.constant 0 : i32
    %c0_i32_1 = arith.constant 0 : i32
    return %c0_i32, %c0_i32_0 : i32, i32
  }
  func.func @transform_4(%arg0: i32) -> (i32, i32) {
    %c0_i32 = arith.constant 0 : i32
    %c0_i32_0 = arith.constant 0 : i32
    %c0_i32_1 = arith.constant 0 : i32
    return %c0_i32, %c0_i32_0 : i32, i32
  }
  func.func @transform_5(%arg0: i32) -> (i32, i32) {
    %c0_i32 = arith.constant 0 : i32
    %c0_i32_0 = arith.constant 0 : i32
    %c0_i32_1 = arith.constant 0 : i32
    return %c0_i32, %c0_i32_0 : i32, i32
  }
  func.func @transform_6(%arg0: i32) -> (i32, i32, i32) {
    %c0_i32 = arith.constant 0 : i32
    %c0_i32_0 = arith.constant 0 : i32
    %c0_i32_1 = arith.constant 0 : i32
    return %arg0, %c0_i32, %c0_i32_0 : i32, i32, i32
  }
  func.func @transform_7(%arg0: i32) -> (i32, i32) {
    %c0_i32 = arith.constant 0 : i32
    %c0_i32_0 = arith.constant 0 : i32
    %c0_i32_1 = arith.constant 0 : i32
    return %c0_i32, %c0_i32_0 : i32, i32
  }
  func.func @transform_8(%arg0: i32) -> (i32, i32) {
    %c0_i32 = arith.constant 0 : i32
    %c0_i32_0 = arith.constant 0 : i32
    %c0_i32_1 = arith.constant 0 : i32
    return %c0_i32, %c0_i32_0 : i32, i32
  }
}

</mosaic_0001>

<bundles_post_ra>
// kernel: rnn_model_forward.5
= control target key start
LH: loop header
LB: loop body
LE: loop exit
PB: predicated region body
PF: predicated region fallthrough
CT: control target
= control target key end

     0   :  { %8 = vsyncpa [#allocation4], 0  ;;  %s2086_s0 = inlined_call_operand.vmem [shape: bf16[16,16,128], index: 0, kind: input, shape index: {}]   ;;  %s2087_s1 = inlined_call_operand.vmem [shape: bf16[128,256], index: 1, kind: input, shape index: {}]   ;;  %s2088_s2 = inlined_call_operand.vmem [shape: f32[1,256], index: 2, kind: input, shape index: {}]   ;;  %s2089_s3 = inlined_call_operand.hbm [shape: f32[16,16,256], index: 3, kind: output, shape index: {}]  }
   0x1   :  { %10 = vsyncpa [#allocation4 + $0x1], 0  ;;  %s1579_s12 = smov 0   ;;  %s1581_s13 = smov 0  }
   0x2   :  { %s1583_s14 = smov 0   ;;  %s1585_s15 = smov 0  }
   0x3   :  { %s1587_s16 = smov 0   ;;  %s1589_s17 = smov 0  }
   0x4 LB: > { %s1163_s18 = sadd.s32 4294967295, %s1554_s17   ;;  %s1164_s19 = sadd.s32 4294967294, %s1554_s17   ;;  %s1554_s17 = sphi %s1589_s17, %s16_s17   ;;  %s1550_s16 = sphi %s1587_s16, %s2096_s16   ;;  %s1546_s15 = sphi %s1585_s15, %s2095_s15   ;;  %s1542_s14 = sphi %s1583_s14, %s2094_s14   ;;  %s1538_s13 = sphi %s1581_s13, %s2093_s13   ;;  %s1534_s12 = sphi %s1579_s12, %s2092_s12  }
   0x5   : > { %s25_s20 = sadd.s32 1, %s1550_s16  ;;  %s61_s21 = sadd.s32 1, %s1542_s14 }
   0x6   : > { %p26_p0 = scmp.ge.s32.totalorder %s25_s20, 2  ;;  %p68_p1 = scmp.ne.s32.totalorder %s1542_s14, %s1538_s13 }
   0x7   : > { %p69_p2 = scmp.eq.s32.totalorder %s1554_s17, 0  ;;  %p126_p3 = scmp.eq.s32.totalorder %s1163_s18, 1 }
   0x8   : > { %s2098_s20 = smov (%p26_p0, %s25_s20), 0  ;;  %p131_p6 = scmp.ne.s32.totalorder %s1538_s13, %s1534_s12 }
   0x9   : > { %p70_p4 = por %p69_p2, %p68_p1  ;;  %p1618_p5 = por %p126_p3, %p68_p1 }
   0xa   : > { %s58_s23 = ssub.s32 %s1550_s16, %s2098_s20  ;;  %p132_p8 = scmp.eq.s32.totalorder %s1164_s19, 1 }
   0xb   : > { %p59_p7 = scmp.eq.s32.totalorder %s58_s23, 0  ;;  %p1167_p10 = scmp.ge.s32.totalorder %s1554_s17, 2 }
   0xc   : > { %p1629_p9 = por %p132_p8, %p131_p6 }
   0xd   : > { %s1627_s24 = scalar_select %p59_p7, %s1542_s14, %s61_s21  }
   0xe   : > { %158 = sbr.rel (%p1167_p10) target bundleno = 39 (0x27), region = 20 }
  0x13   : > { %161 = sbr.rel (!%p70_p4) target bundleno = 39 (0x27), region = 24  ;;  %s163_s26 = sand.u32 (%p70_p4), 1, %s1542_s14  }
  0x14   : > { %s1169_s27 = sshll.u32 (%p70_p4), %s1550_s16, 2  ;;  %s1168_s28 = sshll.u32 (%p70_p4), %s163_s26, 6 }
  0x15   : > { %s1641_s4 = scalar_lea.vmem (%p70_p4), %s2087_s1, %s1169_s27  ;;  %s165_s5 = scalar_lea.vmem (%p70_p4), [#allocation2], %s1168_s28 }
  0x16   : > { %v184_v0 = vld [vmem:[%s1641_s4] sm:$0xf] (%p70_p4)  ;;  %v186_v1 = vld [vmem:[%s1641_s4 + $0x8] sm:$0xf] (%p70_p4)  ;;  %v188_v2 = vld [vmem:[%s1641_s4 + $0x10] sm:$0xf] (%p70_p4) }
  0x17   : > { %185 = vst [vmem:[%s165_s5] sm:$0xf] (%p70_p4), %v184_v0  ;;  %v190_v3 = vld [vmem:[%s1641_s4 + $0x18] sm:$0xf] (%p70_p4)  ;;  %v192_v4 = vld [vmem:[%s1641_s4 + $0x20] sm:$0xf] (%p70_p4) }
  0x18   : > { %187 = vst [vmem:[%s165_s5 + $0x4] sm:$0xf] %v186_v1  ;;  %v194_v5 = vld [vmem:[%s1641_s4 + $0x28] sm:$0xf]  ;;  %v196_v6 = vld [vmem:[%s1641_s4 + $0x30] sm:$0xf] }
  0x19   : > { %189 = vst [vmem:[%s165_s5 + $0x8] sm:$0xf] %v188_v2  ;;  %v198_v7 = vld [vmem:[%s1641_s4 + $0x38] sm:$0xf]  ;;  %v200_v8 = vld [vmem:[%s1641_s4 + $0x40] sm:$0xf] }
  0x1a   : > { %191 = vst [vmem:[%s165_s5 + $0xc] sm:$0xf] %v190_v3  ;;  %v202_v9 = vld [vmem:[%s1641_s4 + $0x48] sm:$0xf]  ;;  %v204_v10 = vld [vmem:[%s1641_s4 + $0x50] sm:$0xf] }
  0x1b   : > { %193 = vst [vmem:[%s165_s5 + $0x10] sm:$0xf] %v192_v4  ;;  %v206_v11 = vld [vmem:[%s1641_s4 + $0x58] sm:$0xf]  ;;  %v208_v12 = vld [vmem:[%s1641_s4 + $0x60] sm:$0xf] }
  0x1c   : > { %195 = vst [vmem:[%s165_s5 + $0x14] sm:$0xf] %v194_v5  ;;  %v210_v13 = vld [vmem:[%s1641_s4 + $0x68] sm:$0xf]  ;;  %v212_v14 = vld [vmem:[%s1641_s4 + $0x70] sm:$0xf] }
  0x1d   : > { %197 = vst [vmem:[%s165_s5 + $0x18] sm:$0xf] %v196_v6  ;;  %v214_v15 = vld [vmem:[%s1641_s4 + $0x78] sm:$0xf] }
  0x1e   : > { %199 = vst [vmem:[%s165_s5 + $0x1c] sm:$0xf] %v198_v7 }
  0x1f   : > { %201 = vst [vmem:[%s165_s5 + $0x20] sm:$0xf] %v200_v8 }
  0x20   : > { %203 = vst [vmem:[%s165_s5 + $0x24] sm:$0xf] %v202_v9 }
  0x21   : > { %205 = vst [vmem:[%s165_s5 + $0x28] sm:$0xf] %v204_v10 }
  0x22   : > { %207 = vst [vmem:[%s165_s5 + $0x2c] sm:$0xf] %v206_v11 }
  0x23   : > { %209 = vst [vmem:[%s165_s5 + $0x30] sm:$0xf] %v208_v12 }
  0x24   : > { %211 = vst [vmem:[%s165_s5 + $0x34] sm:$0xf] %v210_v13 }
  0x25   : > { %213 = vst [vmem:[%s165_s5 + $0x38] sm:$0xf] %v212_v14 }
  0x26   : > { %215 = vst [vmem:[%s165_s5 + $0x3c] sm:$0xf] %v214_v15 }
  0x27 PF: > { %p1170_p11 = scmp.ge.s32.totalorder %s1554_s17, 1  ;;  %p276_p12 = scmp.lt.s32.totalorder %s1554_s17, 3 }
  0x29   : > { %p277_p13 = pnand %p1170_p11, %p276_p12 }
  0x2a   : > { %s1662_s6 = sand.u32 (!%p277_p13), 1, %s1538_s13   ;;  %p322_p0 = scmp.lt.s32.totalorder (!%p277_p13), %s1546_s15, 1 }
  0x2b   : > { %280 = sbr.rel (%p277_p13) target bundleno = 364 (0x16c), region = 69  ;;  %s1171_s7 = sshll.u32 (!%p277_p13), %s1662_s6, 6 }
  0x2c   : > { %s1666_s8 = scalar_lea.vmem (!%p277_p13), [#allocation2], %s1171_s7  ;;  %s1270_s29 = sshll.u32 (!%p277_p13), %s1546_s15, 3 }
  0x2d   : > { %s1057_s5 = scalar_lea.hbm (!%p277_p13), %s2089_s3, %s1270_s29  ;;  %s1496_s23 = scalar_lea.hbm (!%p277_p13), %s2089_s3, 512 }
  0x30   : > { %v1296_v16 = vld [vmem:[%s1666_s8 + $0x38] sm:$0xff]  ;;  %s1670_s9 = scalar_select %p322_p0, %s1546_s15, 1  ;;  %v1295_v17 = vld [vmem:[%s1666_s8 + $0x30] sm:$0xff]  ;;  %v1294_v18 = vld [vmem:[%s1666_s8 + $0x28] sm:$0xff] }
  0x31   : > { %522 = vmatpush.bf16.msra.mxu0 %v1296_v16  ;;  %1297 = vmatpush.bf16.msra.mxu1 %v1296_v16  ;;  %v1293_v19 = vld [vmem:[%s1666_s8 + $0x20] sm:$0xff]  ;;  %v1292_v20 = vld [vmem:[%s1666_s8 + $0x18] sm:$0xff]  ;;  %v1291_v21 = vld [vmem:[%s1666_s8 + $0x10] sm:$0xff]  ;;  %s1044_s15 = scalar_lea.sflag [#allocation4], %s1662_s6 }
  0x32   : > { %1298 = vmatpush.bf16.msra.mxu2 %v1296_v16  ;;  %1299 = vmatpush.bf16.msra.mxu3 %v1296_v16  ;;  %s324_s18 = scalar_lea.vmem %s2088_s2, %s1670_s9  ;;  %v1290_v22 = vld [vmem:[%s1666_s8 + $0x8] sm:$0xff]  ;;  %v1289_v23 = vld [vmem:[%s1666_s8] sm:$0xff]  ;;  %v1275_v32 = vld [vmem:[%s2086_s0 + $0x10] sm:$0xff]  ;;  %s1172_s9 = sshll.u32 %s1662_s6, 8 }
  0x33   : > { %v1273_v24 = vld [vmem:[%s2086_s0] sm:$0xff]  ;;  %v1274_v28 = vld [vmem:[%s2086_s0 + $0x8] sm:$0xff]  ;;  %v1279_v33 = vld [vmem:[%s2086_s0 + $0x30] sm:$0xff]  ;;  %s1060_s8 = sshll.u32 %s1057_s5, 4  ;;  %s1061_s8 = int_to_ptr.hbm [resolvable:$true] %s1060_s8 }
  0x34   : > { %v1277_v25 = vld [vmem:[%s2086_s0 + $0x20] sm:$0xff]  ;;  %v1278_v29 = vld [vmem:[%s2086_s0 + $0x28] sm:$0xff]  ;;  %v1283_v34 = vld [vmem:[%s2086_s0 + $0x50] sm:$0xff]  ;;  %s1490_s10 = sshra.s32 %s1061_s8, 4  ;;  %s1491_s10 = int_to_ptr.hbm [resolvable:$true] %s1490_s10 }
  0x35   : > { %523 = vmatpush.bf16.msra.mxu0 %v1295_v17  ;;  %1300 = vmatpush.bf16.msra.mxu1 %v1295_v17  ;;  %v1281_v26 = vld [vmem:[%s2086_s0 + $0x40] sm:$0xff]  ;;  %v1282_v30 = vld [vmem:[%s2086_s0 + $0x48] sm:$0xff]  ;;  %v1287_v35 = vld [vmem:[%s2086_s0 + $0x70] sm:$0xff]  ;;  %s1492_s11 = scalar_lea.hbm %s1491_s10, 256  ;;  %p1497_p4 = scmp.lt.s32.totalorder %s1491_s10, %s2089_s3 }
  0x36   : > { %1301 = vmatpush.bf16.msra.mxu2 %v1295_v17  ;;  %1302 = vmatpush.bf16.msra.mxu3 %v1295_v17  ;;  %v1285_v27 = vld [vmem:[%s2086_s0 + $0x60] sm:$0xff]  ;;  %v1286_v31 = vld [vmem:[%s2086_s0 + $0x68] sm:$0xff]  ;;  %v1276_v36 = vld [vmem:[%s2086_s0 + $0x18] sm:$0xff]  ;;  %p1493_p1 = scmp.ne.s32.totalorder %s1491_s10, %s1492_s11  ;;  %p1498_p6 = scmp.lt.s32.totalorder %s1496_s23, %s1492_s11 }
  0x37   : > { %v1280_v37 = vld [vmem:[%s2086_s0 + $0x38] sm:$0xff]  ;;  %v1736_v42 = vld [vmem:[%s324_s18] ss:$0 sm:$0xff]  ;;  %s1879_s18 = scalar_lea.vmem [#allocation3], %s1172_s9 }
  0x38   : > { %v1284_v38 = vld [vmem:[%s2086_s0 + $0x58] sm:$0xff]  ;;  %s1058_s7 = sshll.u32 %s1879_s18, 4  ;;  %p1494_p2 = pnand %p1493_p1, %p1618_p5  ;;  %s1059_s7 = int_to_ptr.vmem [resolvable:$true] %s1058_s7 }
  0x39   : > { %524 = vmatpush.bf16.msra.mxu0 %v1294_v18  ;;  %1303 = vmatpush.bf16.msra.mxu1 %v1294_v18  ;;  %v1288_v39 = vld [vmem:[%s2086_s0 + $0x78] sm:$0xff]  ;;  %p1499_p7 = por %p1498_p6, %p1497_p4 }
  0x3a   : > { %1304 = vmatpush.bf16.msra.mxu2 %v1294_v18  ;;  %1305 = vmatpush.bf16.msra.mxu3 %v1294_v18  ;;  %p1495_p3 = pneg %p1494_p2 }
  0x3c   : > { %p1500_p8 = pnand %p1499_p7, %p1495_p3 }
  0x3d   : > { %525 = vmatpush.bf16.msra.mxu0 %v1293_v19  ;;  %1306 = vmatpush.bf16.msra.mxu1 %v1293_v19 }
  0x3e   : > { %1307 = vmatpush.bf16.msra.mxu2 %v1293_v19  ;;  %1308 = vmatpush.bf16.msra.mxu3 %v1293_v19 }
  0x41   : > { %526 = vmatpush.bf16.msra.mxu0 %v1292_v20  ;;  %1309 = vmatpush.bf16.msra.mxu1 %v1292_v20 }
  0x42   : > { %1310 = vmatpush.bf16.msra.mxu2 %v1292_v20  ;;  %1311 = vmatpush.bf16.msra.mxu3 %v1292_v20 }
  0x45   : > { %527 = vmatpush.bf16.msra.mxu0 %v1291_v21  ;;  %1312 = vmatpush.bf16.msra.mxu1 %v1291_v21 }
  0x46   : > { %1313 = vmatpush.bf16.msra.mxu2 %v1291_v21  ;;  %1314 = vmatpush.bf16.msra.mxu3 %v1291_v21 }
  0x49   : > { %528 = vmatpush.bf16.msra.mxu0 %v1290_v22  ;;  %1315 = vmatpush.bf16.msra.mxu1 %v1290_v22 }
  0x4a   : > { %1316 = vmatpush.bf16.msra.mxu2 %v1290_v22  ;;  %1317 = vmatpush.bf16.msra.mxu3 %v1290_v22 }
  0x4d   : > { %529 = vmatpush.bf16.msra.mxu0 %v1289_v23  ;;  %1318 = vmatpush.bf16.msra.mxu1 %v1289_v23 }
  0x4e   : > { %1319 = vmatpush.bf16.msra.mxu2 %v1289_v23  ;;  %1320 = vmatpush.bf16.msra.mxu3 %v1289_v23 }
  0x50   : > { %530 = vmatmul.bf16.vlgmr.msra.gmra.mxu0 %v1273_v24  ;;  %550 = vmatmul.bf16.vlgmr.msra.gmra.mxu1 %v1277_v25 }
  0x51   : > { %570 = vmatmul.bf16.vlgmr.msra.gmra.mxu2 %v1281_v26  ;;  %590 = vmatmul.bf16.vlgmr.msra.gmra.mxu3 %v1285_v27 }
  0x60   : > { %535 = vmatmul.bf16.gmra.mxu0 %v1274_v28  ;;  %555 = vmatmul.bf16.gmra.mxu1 %v1278_v29 }
  0x61   : > { %575 = vmatmul.bf16.gmra.mxu2 %v1282_v30  ;;  %595 = vmatmul.bf16.gmra.mxu3 %v1286_v31 }
  0x70   : > { %540 = vmatmul.bf16.gmra.mxu0 %v1275_v32  ;;  %560 = vmatmul.bf16.gmra.mxu1 %v1279_v33 }
  0x71   : > { %580 = vmatmul.bf16.gmra.mxu2 %v1283_v34  ;;  %600 = vmatmul.bf16.gmra.mxu3 %v1287_v35 }
  0x80   : > { %545 = vmatmul.bf16.gmra.mxu0 %v1276_v36  ;;  %565 = vmatmul.bf16.gmra.mxu1 %v1280_v37 }
  0x81   : > { %585 = vmatmul.bf16.gmra.mxu2 %v1284_v38  ;;  %605 = vmatmul.bf16.gmra.mxu3 %v1288_v39 }
  0xcd   : > { %v531_v40 = vpop.f32.mrf.mxu0  ;;  %v551_v41 = vpop.f32.mrf.mxu1 }
  0xce   : > { %v1739_v47 = vadd.f32 %v1736_v42, %v531_v40  ;;  %v1742_v48 = vadd.f32 %v1736_v42, %v551_v41 }
  0xd4   : > { %v571_v43 = vpop.f32.mrf.mxu2  ;;  %v591_v44 = vpop.f32.mrf.mxu3 }
  0xd5   : > { %v533_v45 = vpop.f32.mrf.mxu0  ;;  %v553_v46 = vpop.f32.mrf.mxu1  ;;  %v1755_v59 = vadd.f32 %v1736_v42, %v571_v43  ;;  %v1758_v60 = vadd.f32 %v1736_v42, %v591_v44 }
  0xd6   : > { %v1745_v49 = vadd.f32 %v1736_v42, %v533_v45  ;;  %v1748_v50 = vadd.f32 %v1736_v42, %v553_v46 }
  0xd8   : > { %v611_v51 = vmax.f32 %v1739_v47, %v1745_v49  ;;  %v639_v52 = vmax.f32 %v1742_v48, %v1748_v50 }
  0xda   : > { %v612_v53 = vrot.slane %v611_v51, 4  ;;  %v640_v54 = vrot.slane %v639_v52, 4 }
  0xdc   : > { %v613_v55 = vmax.f32 %v611_v51, %v612_v53  ;;  %v641_v56 = vmax.f32 %v639_v52, %v640_v54  ;;  %v573_v57 = vpop.f32.mrf.mxu2  ;;  %v593_v58 = vpop.f32.mrf.mxu3 }
  0xdd   : > { %v1761_v61 = vadd.f32 %v1736_v42, %v573_v57  ;;  %v1764_v62 = vadd.f32 %v1736_v42, %v593_v58  ;;  %v536_v63 = vpop.f32.mrf.mxu0  ;;  %v556_v0 = vpop.f32.mrf.mxu1 }
  0xde   : > { %v614_v1 = vrot.slane %v613_v55, 2  ;;  %v642_v2 = vrot.slane %v641_v56, 2  ;;  %v1775_v19 = vadd.f32 %v1736_v42, %v536_v63  ;;  %v1792_v33 = vadd.f32 %v1736_v42, %v556_v0 }
  0xdf   : > { %v667_v3 = vmax.f32 %v1755_v59, %v1761_v61  ;;  %v695_v4 = vmax.f32 %v1758_v60, %v1764_v62 }
  0xe0   : > { %v615_v5 = vmax.f32 %v613_v55, %v614_v1  ;;  %v643_v6 = vmax.f32 %v641_v56, %v642_v2 }
  0xe1   : > { %v668_v7 = vrot.slane %v667_v3, 4  ;;  %v696_v8 = vrot.slane %v695_v4, 4 }
  0xe2   : > { %v616_v9 = vrot.slane %v615_v5, 1  ;;  %v644_v10 = vrot.slane %v643_v6, 1 }
  0xe3   : > { %v669_v11 = vmax.f32 %v667_v3, %v668_v7  ;;  %v697_v12 = vmax.f32 %v695_v4, %v696_v8 }
  0xe4   : > { %v1770_v13 = vmax.f32 %v615_v5, %v616_v9  ;;  %v1772_v14 = vmax.f32 %v643_v6, %v644_v10  ;;  %v576_v15 = vpop.f32.mrf.mxu2  ;;  %v596_v16 = vpop.f32.mrf.mxu3 }
  0xe5   : > { %v670_v17 = vrot.slane %v669_v11, 2  ;;  %v698_v18 = vrot.slane %v697_v12, 2  ;;  %v538_v20 = vpop.f32.mrf.mxu0  ;;  %v558_v21 = vpop.f32.mrf.mxu1  ;;  %v1803_v43 = vadd.f32 %v1736_v42, %v576_v15  ;;  %v1806_v44 = vadd.f32 %v1736_v42, %v596_v16 }
  0xe6   : > { %v723_v22 = vsub.f32 %v1739_v47, %v1770_v13  ;;  %v724_v23 = vsub.f32 %v1745_v49, %v1770_v13  ;;  %v731_v24 = vsub.f32 %v1742_v48, %v1772_v14  ;;  %v732_v25 = vsub.f32 %v1748_v50, %v1772_v14 }
  0xe7   : > { %v671_v26 = vmax.f32 %v669_v11, %v670_v17  ;;  %v699_v27 = vmax.f32 %v697_v12, %v698_v18  ;;  %v1786_v28 = vadd.f32 %v1736_v42, %v538_v20  ;;  %v1789_v29 = vadd.f32 %v1736_v42, %v558_v21 }
  0xe8   : > { %v755_v30 = vmul.f32 1.442695, %v723_v22  ;;  %v757_v31 = vmul.f32 1.442695, %v724_v23  ;;  %v771_v32 = vmul.f32 1.442695, %v731_v24 }
  0xe9   : > { %v773_v34 = vmul.f32 1.442695, %v732_v25  ;;  %v672_v35 = vrot.slane %v671_v26, 1  ;;  %v700_v36 = vrot.slane %v699_v27, 1  ;;  %v618_v37 = vmax.f32 %v1775_v19, %v1786_v28 }
  0xea   : > { %1380 = vpow2.f32 %v755_v30  ;;  %v646_v38 = vmax.f32 %v1792_v33, %v1789_v29 }
  0xeb   : > { %1382 = vpow2.f32 %v757_v31  ;;  %v1798_v39 = vmax.f32 %v671_v26, %v672_v35  ;;  %v1800_v40 = vmax.f32 %v699_v27, %v700_v36  ;;  %v619_v41 = vrot.slane %v618_v37, 4 }
  0xec   : > { %1384 = vpow2.f32 %v771_v32  ;;  %v647_v45 = vrot.slane %v646_v38, 4  ;;  %v578_v46 = vpop.f32.mrf.mxu2  ;;  %v598_v51 = vpop.f32.mrf.mxu3 }
  0xed   : > { %1386 = vpow2.f32 %v773_v34  ;;  %v739_v52 = vsub.f32 %v1755_v59, %v1798_v39  ;;  %v740_v53 = vsub.f32 %v1761_v61, %v1798_v39  ;;  %v747_v54 = vsub.f32 %v1758_v60, %v1800_v40  ;;  %v541_v55 = vpop.f32.mrf.mxu0  ;;  %v561_v18 = vpop.f32.mrf.mxu1 }
  0xee   : > { %v748_v56 = vsub.f32 %v1764_v62, %v1800_v40  ;;  %v620_v57 = vmax.f32 %v618_v37, %v619_v41  ;;  %v648_v58 = vmax.f32 %v646_v38, %v647_v45  ;;  %v1817_v63 = vadd.f32 %v1736_v42, %v578_v46 }
  0xef   : > { %v787_v0 = vmul.f32 1.442695, %v739_v52  ;;  %v789_v1 = vmul.f32 1.442695, %v740_v53  ;;  %v803_v2 = vmul.f32 1.442695, %v747_v54  ;;  %v1820_v3 = vadd.f32 %v1736_v42, %v598_v51 }
  0xf0   : > { %v1381_v4 = vpop.eup %1380  ;;  %v805_v5 = vmul.f32 1.442695, %v748_v56  ;;  %v621_v6 = vrot.slane %v620_v57, 2  ;;  %v649_v7 = vrot.slane %v648_v58, 2  ;;  %v674_v8 = vmax.f32 %v1803_v43, %v1817_v63 }
  0xf1   : > { %v1383_v9 = vpop.eup %1382  ;;  %1388 = vpow2.f32 %v787_v0  ;;  %v702_v10 = vmax.f32 %v1806_v44, %v1820_v3  ;;  %v1827_v11 = vadd.f32 %v1736_v42, %v541_v55  ;;  %v1830_v23 = vadd.f32 %v1736_v42, %v561_v18 }
  0xf2   : > { %v1385_v12 = vpop.eup %1384  ;;  %v819_v15 = vadd.f32 %v1383_v9, %v1381_v4  ;;  %1390 = vpow2.f32 %v789_v1  ;;  %v622_v16 = vmax.f32 %v620_v57, %v621_v6  ;;  %v650_v17 = vmax.f32 %v648_v58, %v649_v7 }
  0xf3   : > { %v1387_v20 = vpop.eup %1386  ;;  %1392 = vpow2.f32 %v803_v2  ;;  %v675_v21 = vrot.slane %v674_v8, 4  ;;  %v703_v22 = vrot.slane %v702_v10, 4 }
  0xf4   : > { %v820_v24 = vrot.slane %v819_v15, 4  ;;  %v847_v25 = vadd.f32 %v1387_v20, %v1385_v12  ;;  %1394 = vpow2.f32 %v805_v5  ;;  %v623_v26 = vrot.slane %v622_v16, 1  ;;  %v581_v27 = vpop.f32.mrf.mxu2  ;;  %v601_v30 = vpop.f32.mrf.mxu3 }
  0xf5   : > { %v651_v31 = vrot.slane %v650_v17, 1  ;;  %v676_v32 = vmax.f32 %v674_v8, %v675_v21  ;;  %v704_v34 = vmax.f32 %v702_v10, %v703_v22  ;;  %v1833_v35 = vadd.f32 %v1736_v42, %v581_v27  ;;  %v543_v36 = vpop.f32.mrf.mxu0 }
  0xf6   : > { %v821_v37 = vadd.f32 %v820_v24, %v819_v15  ;;  %v848_v38 = vrot.slane %v847_v25, 4  ;;  %v1835_v41 = vmax.f32 %v622_v16, %v623_v26  ;;  %v1838_v45 = vadd.f32 %v1736_v42, %v601_v30 }
  0xf7   : > { %v1389_v46 = vpop.eup %1388  ;;  %v1840_v51 = vmax.f32 %v650_v17, %v651_v31  ;;  %v677_v52 = vrot.slane %v676_v32, 2  ;;  %v705_v53 = vrot.slane %v704_v34, 2  ;;  %v1843_v54 = vadd.f32 %v1736_v42, %v543_v36 }
  0xf8   : > { %v1391_v55 = vpop.eup %1390  ;;  %v822_v56 = vrot.slane %v821_v37, 2  ;;  %v849_v57 = vadd.f32 %v848_v38, %v847_v25  ;;  %v725_v58 = vsub.f32 %v1775_v19, %v1835_v41  ;;  %v726_v0 = vsub.f32 %v1786_v28, %v1835_v41  ;;  %v563_v38 = vpop.f32.mrf.mxu1 }
  0xf9   : > { %v1393_v1 = vpop.eup %1392  ;;  %v875_v2 = vadd.f32 %v1391_v55, %v1389_v46  ;;  %v733_v4 = vsub.f32 %v1792_v33, %v1840_v51  ;;  %v734_v5 = vsub.f32 %v1789_v29, %v1840_v51  ;;  %v678_v6 = vmax.f32 %v676_v32, %v677_v52 }
  0xfa   : > { %v1395_v7 = vpop.eup %1394  ;;  %v823_v8 = vadd.f32 %v822_v56, %v821_v37  ;;  %v850_v9 = vrot.slane %v849_v57, 2  ;;  %v759_v10 = vmul.f32 1.442695, %v725_v58  ;;  %v761_v12 = vmul.f32 1.442695, %v726_v0 }
  0xfb   : > { %v876_v15 = vrot.slane %v875_v2, 4  ;;  %v903_v16 = vadd.f32 %v1395_v7, %v1393_v1  ;;  %v775_v17 = vmul.f32 1.442695, %v733_v4  ;;  %v777_v18 = vmul.f32 1.442695, %v734_v5 }
  0xfc   : > { %v824_v20 = vrot.slane %v823_v8, 1  ;;  %v851_v21 = vadd.f32 %v850_v9, %v849_v57  ;;  %1396 = vpow2.f32 %v759_v10  ;;  %v679_v22 = vrot.slane %v678_v6, 1 }
  0xfd   : > { %v877_v24 = vadd.f32 %v876_v15, %v875_v2  ;;  %v904_v25 = vrot.slane %v903_v16, 4  ;;  %1398 = vpow2.f32 %v761_v12  ;;  %v706_v26 = vmax.f32 %v704_v34, %v705_v53 }
  0xfe   : > { %v825_v27 = vadd.f32 %v824_v20, %v823_v8  ;;  %v852_v30 = vrot.slane %v851_v21, 1  ;;  %1400 = vpow2.f32 %v775_v17  ;;  %v1853_v31 = vmax.f32 %v678_v6, %v679_v22 }
  0xff   : > { %v878_v32 = vrot.slane %v877_v24, 2  ;;  %v905_v36 = vadd.f32 %v904_v25, %v903_v16  ;;  %1402 = vpow2.f32 %v777_v18  ;;  %v707_v37 = vrot.slane %v706_v26, 1 }
 0x100   : > { %1404 = vlog2.f32 %v825_v27  ;;  %v853_v46 = vadd.f32 %v852_v30, %v851_v21  ;;  %v741_v52 = vsub.f32 %v1803_v43, %v1853_v31  ;;  %v742_v55 = vsub.f32 %v1817_v63, %v1853_v31 }
 0x101   : > { %v879_v56 = vadd.f32 %v878_v32, %v877_v24  ;;  %v906_v34 = vrot.slane %v905_v36, 2  ;;  %v1859_v53 = vmax.f32 %v706_v26, %v707_v37  ;;  %v625_v57 = vmax.f32 %v1827_v11, %v1843_v54 }
 0x102   : > { %v1397_v58 = vpop.eup %1396  ;;  %1406 = vlog2.f32 %v853_v46  ;;  %v791_v0 = vmul.f32 1.442695, %v741_v52  ;;  %v793_v1 = vmul.f32 1.442695, %v742_v55  ;;  %v1864_v2 = vadd.f32 %v1736_v42, %v563_v38  ;;  %v583_v52 = vpop.f32.mrf.mxu2 }
 0x103   : > { %v1399_v4 = vpop.eup %1398  ;;  %v880_v5 = vrot.slane %v879_v56, 1  ;;  %v907_v6 = vadd.f32 %v906_v34, %v905_v36  ;;  %v749_v7 = vsub.f32 %v1806_v44, %v1859_v53  ;;  %v750_v8 = vsub.f32 %v1820_v3, %v1859_v53 }
 0x104   : > { %v1401_v9 = vpop.eup %1400  ;;  %v826_v10 = vadd.f32 %v1399_v4, %v1397_v58  ;;  %1408 = vpow2.f32 %v791_v0  ;;  %v626_v12 = vrot.slane %v625_v57, 4  ;;  %v653_v15 = vmax.f32 %v1830_v23, %v1864_v2 }
 0x105   : > { %v1403_v16 = vpop.eup %1402  ;;  %v881_v17 = vadd.f32 %v880_v5, %v879_v56  ;;  %v908_v18 = vrot.slane %v907_v6, 1  ;;  %1410 = vpow2.f32 %v793_v1  ;;  %v807_v20 = vmul.f32 1.442695, %v749_v7 }
 0x106   : > { %v1405_v21 = vpop.eup %1404  ;;  %v827_v22 = vrot.slane %v826_v10, 4  ;;  %v854_v24 = vadd.f32 %v1403_v16, %v1401_v9  ;;  %v809_v25 = vmul.f32 1.442695, %v750_v8  ;;  %v627_v26 = vmax.f32 %v625_v57, %v626_v12  ;;  %v603_v16 = vpop.f32.mrf.mxu3 }
 0x107   : > { %v932_v27 = vmul.f32 0.6931472, %v1405_v21  ;;  %1412 = vlog2.f32 %v881_v17  ;;  %v909_v30 = vadd.f32 %v908_v18, %v907_v6  ;;  %v654_v32 = vrot.slane %v653_v15, 4 }
 0x108   : > { %v1407_v36 = vpop.eup %1406  ;;  %v828_v37 = vadd.f32 %v827_v22, %v826_v10  ;;  %v855_v38 = vrot.slane %v854_v24, 4  ;;  %1414 = vpow2.f32 %v807_v20  ;;  %v628_v46 = vrot.slane %v627_v26, 2 }
 0x109   : > { %v963_v55 = vadd.f32 %v932_v27, %v1770_v13  ;;  %v940_v56 = vmul.f32 0.6931472, %v1407_v36  ;;  %1416 = vlog2.f32 %v909_v30  ;;  %v655_v34 = vmax.f32 %v653_v15, %v654_v32 }
 0x10a   : > { %v1409_v58 = vpop.eup %1408  ;;  %v829_v0 = vrot.slane %v828_v37, 2  ;;  %v856_v57 = vadd.f32 %v855_v38, %v854_v24  ;;  %1418 = vpow2.f32 %v809_v25  ;;  %v629_v1 = vmax.f32 %v627_v26, %v628_v46 }
 0x10b   : > { %v1411_v4 = vpop.eup %1410  ;;  %v979_v5 = vsub.f32 %v1739_v47, %v963_v55  ;;  %v980_v6 = vsub.f32 %v1745_v49, %v963_v55  ;;  %v967_v7 = vadd.f32 %v940_v56, %v1772_v14  ;;  %v656_v8 = vrot.slane %v655_v34, 2 }
 0x10c   : > { %v830_v9 = vadd.f32 %v829_v0, %v828_v37  ;;  %v857_v10 = vrot.slane %v856_v57, 2  ;;  %v882_v13 = vadd.f32 %v1411_v4, %v1409_v58  ;;  %v630_v12 = vrot.slane %v629_v1, 1 }
 0x10d   : > { %v1413_v15 = vpop.eup %1412  ;;  %1011 = vst [vmem:[%s1879_s18] sm:$0xff] %v979_v5  ;;  %v987_v47 = vsub.f32 %v1742_v48, %v967_v7  ;;  %v988_v49 = vsub.f32 %v1748_v50, %v967_v7  ;;  %v657_v14 = vmax.f32 %v655_v34, %v656_v8  ;;  %v1885_v17 = vadd.f32 %v1736_v42, %v583_v52  ;;  %v546_v34 = vpop.f32.mrf.mxu0 }
 0x10e   : > { %v1415_v18 = vpop.eup %1414  ;;  %1012 = vst [vmem:[%s1879_s18 + $0x8] sm:$0xff] %v980_v6  ;;  %v948_v20 = vmul.f32 0.6931472, %v1413_v15  ;;  %v831_v21 = vrot.slane %v830_v9, 1  ;;  %v858_v22 = vadd.f32 %v857_v10, %v856_v57  ;;  %v883_v24 = vrot.slane %v882_v13, 4  ;;  %v566_v57 = vpop.f32.mrf.mxu1 }
 0x10f   : > { %v1417_v25 = vpop.eup %1416  ;;  %1019 = vst [vmem:[%s1879_s18 + $0x40] sm:$0xff] %v987_v47  ;;  %v1889_v26 = vmax.f32 %v629_v1, %v630_v12  ;;  %v658_v27 = vrot.slane %v657_v14, 1  ;;  %v681_v48 = vmax.f32 %v1833_v35, %v1885_v17  ;;  %v1894_v50 = vadd.f32 %v1736_v42, %v603_v16  ;;  %v586_v1 = vpop.f32.mrf.mxu2 }
 0x110   : > { %v1419_v30 = vpop.eup %1418  ;;  %1020 = vst [vmem:[%s1879_s18 + $0x48] sm:$0xff] %v988_v49  ;;  %v971_v32 = vadd.f32 %v948_v20, %v1798_v39  ;;  %v956_v36 = vmul.f32 0.6931472, %v1417_v25  ;;  %v832_v37 = vadd.f32 %v831_v21, %v830_v9  ;;  %v859_v38 = vrot.slane %v858_v22, 1 }
 0x111   : > { %v884_v46 = vadd.f32 %v883_v24, %v882_v13  ;;  %v910_v52 = vadd.f32 %v1419_v30, %v1415_v18  ;;  %v727_v55 = vsub.f32 %v1827_v11, %v1889_v26  ;;  %v728_v56 = vsub.f32 %v1843_v54, %v1889_v26  ;;  %v606_v30 = vpop.f32.mrf.mxu3 }
 0x112   : > { %v995_v58 = vsub.f32 %v1755_v59, %v971_v32  ;;  %v996_v0 = vsub.f32 %v1761_v61, %v971_v32  ;;  %v975_v39 = vadd.f32 %v956_v36, %v1800_v40  ;;  %1420 = vlog2.f32 %v832_v37 }
 0x113   : > { %v860_v4 = vadd.f32 %v859_v38, %v858_v22  ;;  %v885_v5 = vrot.slane %v884_v46, 2  ;;  %v911_v6 = vrot.slane %v910_v52, 4  ;;  %v763_v7 = vmul.f32 1.442695, %v727_v55 }
 0x114   : > { %1027 = vst [vmem:[%s1879_s18 + $0x80] sm:$0xff] %v995_v58  ;;  %v1003_v8 = vsub.f32 %v1758_v60, %v975_v39  ;;  %v1004_v9 = vsub.f32 %v1764_v62, %v975_v39  ;;  %v765_v10 = vmul.f32 1.442695, %v728_v56  ;;  %v1908_v59 = vmax.f32 %v657_v14, %v658_v27 }
 0x115   : > { %1028 = vst [vmem:[%s1879_s18 + $0x88] sm:$0xff] %v996_v0  ;;  %1422 = vlog2.f32 %v860_v4  ;;  %v886_v61 = vadd.f32 %v885_v5, %v884_v46  ;;  %v912_v40 = vadd.f32 %v911_v6, %v910_v52  ;;  %v682_v13 = vrot.slane %v681_v48, 4  ;;  %v548_v55 = vpop.f32.mrf.mxu0 }
 0x116   : > { %1035 = vst [vmem:[%s1879_s18 + $0xc0] sm:$0xff] %v1003_v8  ;;  %1424 = vpow2.f32 %v763_v7  ;;  %v735_v12 = vsub.f32 %v1830_v23, %v1908_v59  ;;  %v736_v16 = vsub.f32 %v1864_v2, %v1908_v59  ;;  %v709_v60 = vmax.f32 %v1838_v45, %v1894_v50  ;;  %v568_v39 = vpop.f32.mrf.mxu1 }
 0x117   : > { %1036 = vst [vmem:[%s1879_s18 + $0xc8] sm:$0xff] %v1004_v9  ;;  %v887_v62 = vrot.slane %v886_v61, 1  ;;  %v913_v15 = vrot.slane %v912_v40, 2  ;;  %1426 = vpow2.f32 %v765_v10  ;;  %v683_v47 = vmax.f32 %v681_v48, %v682_v13 }
 0x118   : > { %v1421_v49 = vpop.eup %1420  ;;  %v779_v14 = vmul.f32 1.442695, %v735_v12  ;;  %v781_v18 = vmul.f32 1.442695, %v736_v16  ;;  %v710_v20 = vrot.slane %v709_v60, 4  ;;  %v1920_v21 = vadd.f32 %v1736_v42, %v546_v34 }
 0x119   : > { %v934_v22 = vmul.f32 0.6931472, %v1421_v49  ;;  %v888_v24 = vadd.f32 %v887_v62, %v886_v61  ;;  %v914_v25 = vadd.f32 %v913_v15, %v912_v40  ;;  %v684_v27 = vrot.slane %v683_v47, 2 }
 0x11a   : > { %1428 = vpow2.f32 %v779_v14  ;;  %v711_v32 = vmax.f32 %v709_v60, %v710_v20  ;;  %v1923_v36 = vadd.f32 %v1736_v42, %v566_v57  ;;  %v1926_v37 = vadd.f32 %v1736_v42, %v586_v1  ;;  %v588_v57 = vpop.f32.mrf.mxu2 }
 0x11b   : > { %v1423_v48 = vpop.eup %1422  ;;  %v964_v38 = vadd.f32 %v934_v22, %v1835_v41  ;;  %1430 = vlog2.f32 %v888_v24  ;;  %v915_v46 = vrot.slane %v914_v25, 1  ;;  %v685_v52 = vmax.f32 %v683_v47, %v684_v27 }
 0x11c   : > { %v1425_v56 = vpop.eup %1424  ;;  %v942_v34 = vmul.f32 0.6931472, %v1423_v48  ;;  %1432 = vpow2.f32 %v781_v18  ;;  %v712_v58 = vrot.slane %v711_v32, 2  ;;  %v1930_v0 = vadd.f32 %v1736_v42, %v606_v30 }
 0x11d   : > { %v1427_v1 = vpop.eup %1426  ;;  %v981_v4 = vsub.f32 %v1775_v19, %v964_v38  ;;  %v982_v41 = vsub.f32 %v1786_v28, %v964_v38  ;;  %v916_v5 = vadd.f32 %v915_v46, %v914_v25  ;;  %v686_v6 = vrot.slane %v685_v52, 1 }
 0x11e   : > { %v968_v7 = vadd.f32 %v942_v34, %v1840_v51  ;;  %v833_v8 = vadd.f32 %v1427_v1, %v1425_v56  ;;  %v713_v9 = vmax.f32 %v711_v32, %v712_v58  ;;  %v1936_v10 = vadd.f32 %v1736_v42, %v548_v55 }
 0x11f   : > { %1013 = vst [vmem:[%s1879_s18 + $0x10] sm:$0xff] %v981_v4  ;;  %1434 = vlog2.f32 %v916_v5  ;;  %v1939_v61 = vmax.f32 %v685_v52, %v686_v6  ;;  %v1942_v40 = vadd.f32 %v1736_v42, %v568_v39  ;;  %v1945_v19 = vadd.f32 %v1736_v42, %v588_v57  ;;  %v608_v57 = vpop.f32.mrf.mxu3 }
 0x120   : > { %v1429_v28 = vpop.eup %1428  ;;  %1014 = vst [vmem:[%s1879_s18 + $0x18] sm:$0xff] %v982_v41  ;;  %v989_v51 = vsub.f32 %v1792_v33, %v968_v7  ;;  %v990_v13 = vsub.f32 %v1789_v29, %v968_v7  ;;  %v834_v12 = vrot.slane %v833_v8, 4  ;;  %v714_v16 = vrot.slane %v713_v9, 1 }
 0x121   : > { %v1431_v60 = vpop.eup %1430  ;;  %v743_v62 = vsub.f32 %v1833_v35, %v1939_v61  ;;  %v744_v15 = vsub.f32 %v1885_v17, %v1939_v61  ;;  %v632_v47 = vmax.f32 %v1920_v21, %v1936_v10  ;;  %v660_v49 = vmax.f32 %v1923_v36, %v1942_v40 }
 0x122   : > { %v1433_v14 = vpop.eup %1432  ;;  %1021 = vst [vmem:[%s1879_s18 + $0x50] sm:$0xff] %v989_v51  ;;  %v950_v33 = vmul.f32 0.6931472, %v1431_v60  ;;  %v835_v18 = vadd.f32 %v834_v12, %v833_v8  ;;  %v1959_v29 = vmax.f32 %v713_v9, %v714_v16  ;;  %v688_v20 = vmax.f32 %v1926_v37, %v1945_v19 }
 0x123   : > { %1022 = vst [vmem:[%s1879_s18 + $0x58] sm:$0xff] %v990_v13  ;;  %v861_v22 = vadd.f32 %v1433_v14, %v1429_v28  ;;  %v795_v24 = vmul.f32 1.442695, %v743_v62  ;;  %v797_v25 = vmul.f32 1.442695, %v744_v15  ;;  %v633_v27 = vrot.slane %v632_v47, 4 }
 0x124   : > { %v972_v30 = vadd.f32 %v950_v33, %v1853_v31  ;;  %v836_v32 = vrot.slane %v835_v18, 2  ;;  %v751_v48 = vsub.f32 %v1838_v45, %v1959_v29  ;;  %v752_v38 = vsub.f32 %v1894_v50, %v1959_v29 }
 0x125   : > { %v1435_v46 = vpop.eup %1434  ;;  %v862_v52 = vrot.slane %v861_v22, 4  ;;  %1436 = vpow2.f32 %v795_v24  ;;  %v634_v55 = vmax.f32 %v632_v47, %v633_v27  ;;  %v661_v56 = vrot.slane %v660_v49, 4 }
 0x126   : > { %v997_v34 = vsub.f32 %v1803_v43, %v972_v30  ;;  %v998_v58 = vsub.f32 %v1817_v63, %v972_v30  ;;  %v958_v39 = vmul.f32 0.6931472, %v1435_v46  ;;  %v837_v31 = vadd.f32 %v836_v32, %v835_v18 }
 0x127   : > { %v863_v1 = vadd.f32 %v862_v52, %v861_v22  ;;  %1438 = vpow2.f32 %v797_v25  ;;  %v811_v4 = vmul.f32 1.442695, %v751_v48  ;;  %v813_v41 = vmul.f32 1.442695, %v752_v38 }
 0x128   : > { %1029 = vst [vmem:[%s1879_s18 + $0x90] sm:$0xff] %v997_v34  ;;  %v976_v5 = vadd.f32 %v958_v39, %v1859_v53  ;;  %v838_v6 = vrot.slane %v837_v31, 1  ;;  %v635_v7 = vrot.slane %v634_v55, 2  ;;  %v662_v8 = vmax.f32 %v660_v49, %v661_v56 }
 0x129   : > { %1030 = vst [vmem:[%s1879_s18 + $0x98] sm:$0xff] %v998_v58  ;;  %v864_v9 = vrot.slane %v863_v1, 2  ;;  %1440 = vpow2.f32 %v811_v4  ;;  %v689_v43 = vrot.slane %v688_v20, 4  ;;  %v1975_v63 = vadd.f32 %v1736_v42, %v608_v57 }
 0x12a   : > { %v1005_v28 = vsub.f32 %v1806_v44, %v976_v5  ;;  %v1006_v51 = vsub.f32 %v1820_v3, %v976_v5  ;;  %v839_v13 = vadd.f32 %v838_v6, %v837_v31  ;;  %1442 = vpow2.f32 %v813_v41 }
 0x12b   : > { %v1437_v12 = vpop.eup %1436  ;;  %v865_v53 = vadd.f32 %v864_v9, %v863_v1  ;;  %v636_v16 = vmax.f32 %v634_v55, %v635_v7  ;;  %v663_v60 = vrot.slane %v662_v8, 2  ;;  %v690_v62 = vmax.f32 %v688_v20, %v689_v43 }
 0x12c   : > { %1037 = vst [vmem:[%s1879_s18 + $0xd0] sm:$0xff] %v1005_v28  ;;  %1444 = vlog2.f32 %v839_v13  ;;  %v716_v15 = vmax.f32 %v1930_v0, %v1975_v63 }
 0x12d   : > { %v1439_v47 = vpop.eup %1438  ;;  %1038 = vst [vmem:[%s1879_s18 + $0xd8] sm:$0xff] %v1006_v51  ;;  %v866_v42 = vrot.slane %v865_v53, 1  ;;  %v637_v49 = vrot.slane %v636_v16, 1  ;;  %v664_v14 = vmax.f32 %v662_v8, %v663_v60  ;;  %v691_v44 = vrot.slane %v690_v62, 2 }
 0x12e   : > { %v889_v33 = vadd.f32 %v1439_v47, %v1437_v12  ;;  %v717_v3 = vrot.slane %v716_v15, 4 }
 0x12f   : > { %v1441_v18 = vpop.eup %1440  ;;  %v867_v22 = vadd.f32 %v866_v42, %v865_v53  ;;  %v1983_v24 = vmax.f32 %v636_v16, %v637_v49  ;;  %v665_v25 = vrot.slane %v664_v14, 1  ;;  %v692_v27 = vmax.f32 %v690_v62, %v691_v44 }
 0x130   : > { %v1443_v20 = vpop.eup %1442  ;;  %v890_v30 = vrot.slane %v889_v33, 4  ;;  %v718_v32 = vmax.f32 %v716_v15, %v717_v3 }
 0x131   : > { %1446 = vlog2.f32 %v867_v22  ;;  %v917_v48 = vadd.f32 %v1443_v20, %v1441_v18  ;;  %v729_v38 = vsub.f32 %v1920_v21, %v1983_v24  ;;  %v730_v46 = vsub.f32 %v1936_v10, %v1983_v24 }
 0x132   : > { %v1445_v52 = vpop.eup %1444  ;;  %v891_v55 = vadd.f32 %v890_v30, %v889_v33  ;;  %v1989_v56 = vmax.f32 %v664_v14, %v665_v25  ;;  %v693_v34 = vrot.slane %v692_v27, 1  ;;  %v719_v57 = vrot.slane %v718_v32, 2 }
 0x133   : > { %v936_v58 = vmul.f32 0.6931472, %v1445_v52  ;;  %v918_v39 = vrot.slane %v917_v48, 4  ;;  %v767_v31 = vmul.f32 1.442695, %v729_v38 }
 0x134   : > { %v892_v1 = vrot.slane %v891_v55, 2  ;;  %v769_v4 = vmul.f32 1.442695, %v730_v46  ;;  %v737_v41 = vsub.f32 %v1923_v36, %v1989_v56  ;;  %v738_v5 = vsub.f32 %v1942_v40, %v1989_v56 }
 0x135   : > { %v965_v6 = vadd.f32 %v936_v58, %v1889_v26  ;;  %v919_v7 = vadd.f32 %v918_v39, %v917_v48  ;;  %1448 = vpow2.f32 %v767_v31  ;;  %v1996_v8 = vmax.f32 %v692_v27, %v693_v34 }
 0x136   : > { %v893_v9 = vadd.f32 %v892_v1, %v891_v55  ;;  %1450 = vpow2.f32 %v769_v4  ;;  %v783_v43 = vmul.f32 1.442695, %v737_v41  ;;  %v785_v28 = vmul.f32 1.442695, %v738_v5 }
 0x137   : > { %v1447_v51 = vpop.eup %1446  ;;  %v983_v13 = vsub.f32 %v1827_v11, %v965_v6  ;;  %v984_v12 = vsub.f32 %v1843_v54, %v965_v6  ;;  %v920_v53 = vrot.slane %v919_v7, 2  ;;  %v745_v16 = vsub.f32 %v1926_v37, %v1996_v8 }
 0x138   : > { %v944_v26 = vmul.f32 0.6931472, %v1447_v51  ;;  %v894_v60 = vrot.slane %v893_v9, 1  ;;  %1452 = vpow2.f32 %v783_v43  ;;  %v746_v62 = vsub.f32 %v1945_v19, %v1996_v8 }
 0x139   : > { %1015 = vst [vmem:[%s1879_s18 + $0x20] sm:$0xff] %v983_v13  ;;  %v921_v15 = vadd.f32 %v920_v53, %v919_v7  ;;  %1454 = vpow2.f32 %v785_v28  ;;  %v799_v47 = vmul.f32 1.442695, %v745_v16  ;;  %v720_v42 = vmax.f32 %v718_v32, %v719_v57 }
 0x13a   : > { %1016 = vst [vmem:[%s1879_s18 + $0x28] sm:$0xff] %v984_v12  ;;  %v969_v11 = vadd.f32 %v944_v26, %v1908_v59  ;;  %v895_v54 = vadd.f32 %v894_v60, %v893_v9  ;;  %v801_v49 = vmul.f32 1.442695, %v746_v62 }
 0x13b   : > { %v1449_v14 = vpop.eup %1448  ;;  %v922_v44 = vrot.slane %v921_v15, 1  ;;  %1456 = vpow2.f32 %v799_v47  ;;  %v721_v33 = vrot.slane %v720_v42, 1 }
 0x13c   : > { %v1451_v3 = vpop.eup %1450  ;;  %v991_v18 = vsub.f32 %v1830_v23, %v969_v11  ;;  %v992_v22 = vsub.f32 %v1864_v2, %v969_v11  ;;  %1458 = vlog2.f32 %v895_v54 }
 0x13d   : > { %v923_v25 = vadd.f32 %v922_v44, %v921_v15  ;;  %v840_v27 = vadd.f32 %v1451_v3, %v1449_v14  ;;  %1460 = vpow2.f32 %v801_v49  ;;  %v2009_v20 = vmax.f32 %v720_v42, %v721_v33 }
 0x13e   : > { %v1453_v59 = vpop.eup %1452  ;;  %1023 = vst [vmem:[%s1879_s18 + $0x60] sm:$0xff] %v991_v18 }
 0x13f   : > { %v1455_v30 = vpop.eup %1454  ;;  %1024 = vst [vmem:[%s1879_s18 + $0x68] sm:$0xff] %v992_v22  ;;  %1462 = vlog2.f32 %v923_v25  ;;  %v841_v32 = vrot.slane %v840_v27, 4  ;;  %v753_v48 = vsub.f32 %v1930_v0, %v2009_v20  ;;  %v754_v23 = vsub.f32 %v1975_v63, %v2009_v20 }
 0x140   : > { %v868_v38 = vadd.f32 %v1455_v30, %v1453_v59 }
 0x141   : > { %v1457_v2 = vpop.eup %1456  ;;  %v842_v46 = vadd.f32 %v841_v32, %v840_v27  ;;  %v815_v52 = vmul.f32 1.442695, %v753_v48  ;;  %v817_v55 = vmul.f32 1.442695, %v754_v23 }
 0x142   : > { %v1459_v34 = vpop.eup %1458  ;;  %v869_v58 = vrot.slane %v868_v38, 4 }
 0x143   : > { %v1461_v39 = vpop.eup %1460  ;;  %v952_v31 = vmul.f32 0.6931472, %v1459_v34  ;;  %v843_v57 = vrot.slane %v842_v46, 2  ;;  %1464 = vpow2.f32 %v815_v52 }
 0x144   : > { %v870_v1 = vadd.f32 %v869_v58, %v868_v38  ;;  %v896_v4 = vadd.f32 %v1461_v39, %v1457_v2  ;;  %1466 = vpow2.f32 %v817_v55 }
 0x145   : > { %v1463_v41 = vpop.eup %1462  ;;  %v973_v5 = vadd.f32 %v952_v31, %v1939_v61  ;;  %v844_v6 = vadd.f32 %v843_v57, %v842_v46 }
 0x146   : > { %v960_v7 = vmul.f32 0.6931472, %v1463_v41  ;;  %v871_v9 = vrot.slane %v870_v1, 2  ;;  %v897_v43 = vrot.slane %v896_v4, 4 }
 0x147   : > { %v999_v28 = vsub.f32 %v1833_v35, %v973_v5  ;;  %v1000_v51 = vsub.f32 %v1885_v17, %v973_v5  ;;  %v845_v13 = vrot.slane %v844_v6, 1 }
 0x148   : > { %v977_v12 = vadd.f32 %v960_v7, %v1959_v29  ;;  %v872_v53 = vadd.f32 %v871_v9, %v870_v1  ;;  %v898_v16 = vadd.f32 %v897_v43, %v896_v4 }
 0x149   : > { %v1465_v26 = vpop.eup %1464  ;;  %1031 = vst [vmem:[%s1879_s18 + $0xa0] sm:$0xff] %v999_v28  ;;  %v846_v60 = vadd.f32 %v845_v13, %v844_v6 }
 0x14a   : > { %v1467_v62 = vpop.eup %1466  ;;  %1032 = vst [vmem:[%s1879_s18 + $0xa8] sm:$0xff] %v1000_v51  ;;  %v1007_v61 = vsub.f32 %v1838_v45, %v977_v12  ;;  %v1008_v15 = vsub.f32 %v1894_v50, %v977_v12  ;;  %v873_v47 = vrot.slane %v872_v53, 1  ;;  %v899_v35 = vrot.slane %v898_v16, 2 }
 0x14b   : > { %1468 = vlog2.f32 %v846_v60  ;;  %v924_v17 = vadd.f32 %v1467_v62, %v1465_v26 }
 0x14c   : > { %1039 = vst [vmem:[%s1879_s18 + $0xe0] sm:$0xff] %v1007_v61  ;;  %v874_v42 = vadd.f32 %v873_v47, %v872_v53  ;;  %v900_v11 = vadd.f32 %v899_v35, %v898_v16 }
 0x14d   : > { %1040 = vst [vmem:[%s1879_s18 + $0xe8] sm:$0xff] %v1008_v15  ;;  %v925_v29 = vrot.slane %v924_v17, 4 }
 0x14e   : > { %1470 = vlog2.f32 %v874_v42  ;;  %v901_v54 = vrot.slane %v900_v11, 1 }
 0x14f   : > { %v926_v49 = vadd.f32 %v925_v29, %v924_v17 }
 0x150   : > { %v902_v14 = vadd.f32 %v901_v54, %v900_v11 }
 0x151   : > { %v1469_v44 = vpop.eup %1468  ;;  %v927_v33 = vrot.slane %v926_v49, 2 }
 0x152   : > { %v938_v45 = vmul.f32 0.6931472, %v1469_v44  ;;  %1472 = vlog2.f32 %v902_v14 }
 0x153   : > { %v928_v50 = vadd.f32 %v927_v33, %v926_v49 }
 0x154   : > { %v1471_v3 = vpop.eup %1470  ;;  %v966_v18 = vadd.f32 %v938_v45, %v1983_v24 }
 0x155   : > { %v946_v22 = vmul.f32 0.6931472, %v1471_v3  ;;  %v929_v25 = vrot.slane %v928_v50, 1 }
 0x156   : > { %v985_v27 = vsub.f32 %v1920_v21, %v966_v18  ;;  %v986_v59 = vsub.f32 %v1936_v10, %v966_v18 }
 0x157   : > { %v970_v30 = vadd.f32 %v946_v22, %v1989_v56  ;;  %v930_v32 = vadd.f32 %v929_v25, %v928_v50 }
 0x158   : > { %v1473_v48 = vpop.eup %1472  ;;  %1017 = vst [vmem:[%s1879_s18 + $0x30] sm:$0xff] %v985_v27 }
 0x159   : > { %1018 = vst [vmem:[%s1879_s18 + $0x38] sm:$0xff] %v986_v59  ;;  %v993_v23 = vsub.f32 %v1923_v36, %v970_v30  ;;  %v994_v24 = vsub.f32 %v1942_v40, %v970_v30  ;;  %v954_v38 = vmul.f32 0.6931472, %v1473_v48  ;;  %1474 = vlog2.f32 %v930_v32 }
 0x15b   : > { %1025 = vst [vmem:[%s1879_s18 + $0x70] sm:$0xff] %v993_v23  ;;  %v974_v21 = vadd.f32 %v954_v38, %v1996_v8 }
 0x15c   : > { %1026 = vst [vmem:[%s1879_s18 + $0x78] sm:$0xff] %v994_v24 }
 0x15d   : > { %v1001_v10 = vsub.f32 %v1926_v37, %v974_v21  ;;  %v1002_v56 = vsub.f32 %v1945_v19, %v974_v21 }
 0x15f   : > { %v1475_v36 = vpop.eup %1474  ;;  %1033 = vst [vmem:[%s1879_s18 + $0xb0] sm:$0xff] %v1001_v10 }
 0x160   : > { %1034 = vst [vmem:[%s1879_s18 + $0xb8] sm:$0xff] %v1002_v56  ;;  %v962_v40 = vmul.f32 0.6931472, %v1475_v36 }
 0x162   : > { %v978_v8 = vadd.f32 %v962_v40, %v2009_v20 }
 0x164   : > { %v1009_v2 = vsub.f32 %v1930_v0, %v978_v8  ;;  %v1010_v37 = vsub.f32 %v1975_v63, %v978_v8 }
 0x166   : > { %1041 = vst [vmem:[%s1879_s18 + $0xf0] sm:$0xff] %v1009_v2 }
 0x167   : > { %1042 = vst [vmem:[%s1879_s18 + $0xf8] sm:$0xff] %v1010_v37 }
 0x168   : > { %1503 = shalt.err (!%p1500_p8)
}
 0x169   : > { %s1556_s6 = smov 128   ;;  %s1557_s28 = smov 256  }
 0x16a   : > { %s1558_s9 = smov 8  }
 0x16b   : > { %1321 = dma.vmem_to_hbm [thread:$0]  (%p1618_p5), %s1059_s7, 4096, %s1061_s8, %s1044_s15, %s1556_s6, %s1557_s28, %s1558_s9  }
 0x16c PF: > { %s1075_s18 = sand.u32 1, %s1534_s12   ;;  %p1324_p11 = pnand %p1167_p10, %p1629_p9 }
 0x16d   : > { %s1076_s29 = scalar_lea.sflag [#allocation4], %s1075_s18 }
 0x16e   : > { %p1325_p12 = pneg %p1324_p11 }
 0x170   : > { %1529 = dma.done.wait (%p1325_p12), %s1076_s29, 4096  }
 0x171   : > { %1531 = vsyncadd (%p1325_p12), %s1076_s29, 4294963200  ;;  %s16_s17 = sadd.s32 1, %s1554_s17   ;;  %s2092_s12 = smov %s1538_s13 }
 0x172   : > { %p13_p13 = scmp.ge.s32.totalorder %s16_s17, 4   ;;  %s2093_s13 = smov %s1542_s14 }
 0x173   : > { %s2094_s14 = smov %s1627_s24  ;;  %s2095_s15 = smov %s1550_s16 }
 0x174   : > { %s2096_s16 = smov %s2098_s20  ;;  %15 = sbr.rel (!%p13_p13) target bundleno = 4 (0x4), region = 119 }
 0x179   :  { %1082 = vsyncpa [#allocation4], 1 }
 0x17a   :  { %1084 = vsyncpa [#allocation4 + $0x1], 1 }

// kernel: rnn_model_forward.3
= control target key start
LH: loop header
LB: loop body
LE: loop exit
PB: predicated region body
PF: predicated region fallthrough
CT: control target
= control target key end

     0   :  { %s3626_s27 = smov 0   ;;  %s4958_s0 = inlined_call_operand.vmem [shape: bf16[16,16,128], index: 0, kind: input, shape index: {}]   ;;  %s4959_s1 = inlined_call_operand.vmem [shape: f32[16,128], index: 1, kind: input, shape index: {}]   ;;  %s4960_s2 = inlined_call_operand.vmem [shape: f32[16,128], index: 2, kind: input, shape index: {}]   ;;  %s4961_s3 = inlined_call_operand.vmem [shape: bf16[128,512], index: 3, kind: input, shape index: {}]   ;;  %s4962_s4 = inlined_call_operand.vmem [shape: bf16[128,512], index: 4, kind: input, shape index: {}]   ;;  %s4963_s5 = inlined_call_operand.vmem [shape: f32[1,512], index: 5, kind: input, shape index: {}]   ;;  %s4964_s6 = inlined_call_operand.vmem [shape: bf16[16,16,128], index: 6, kind: output, shape index: {0}]   ;;  %s4965_s7 = inlined_call_operand.vmem [shape: f32[16,128], index: 7, kind: output, shape index: {1}]   ;;  %s4966_s8 = inlined_call_operand.vmem [shape: f32[16,128], index: 8, kind: output, shape index: {2}]  }
   0x1 LB: > { %s3632_s28 = sadd.s32 4294967295, %s3579_s27   ;;  %p2827_p0 = scmp.ge.s32.totalorder %s3579_s27, 1  ;;  %s3579_s27 = sphi %s3626_s27, %s19_s27  }
   0x2   : > { %p259_p1 = scmp.lt.s32.totalorder %s3579_s27, 3 }
   0x4   : > { %p260_p2 = pnand %p2827_p0, %p259_p1 }
   0x6   : > { %263 = sbr.rel (%p260_p2) target bundleno = 1651 (0x673), region = 44 }
   0xb   : > { %s2828_s29 = sshll.u32 %s3632_s28, 3  ;;  %p2834_p4 = scmp.ne.s32.totalorder %s3632_s28, 0 }
   0xc   : > { %p296_p3 = scmp.lt.s32.totalorder %s2828_s29, 15 }
   0xd   : > { %312 = sbr.rel (%p2834_p4) target bundleno = 23 (0x17), region = 48 }
   0xe   : > { %s5116_s29 = smov (!%p296_p3, %s2828_s29), 15 }
   0xf   : > { %s3188_s30 = sshll.u32 %s5116_s29, 3 }
  0x10   : > { %s3640_s11 = scalar_lea.vmem %s4958_s0, %s3188_s30  ;;  %s3645_s14 = scalar_lea.vmem %s4964_s6, %s3188_s30 }
  0x12   : > { %v313_v0 = vld [vmem:[%s4959_s1] sm:$0xff]  ;;  %v314_v1 = vld [vmem:[%s4959_s1 + $0x8] sm:$0xff] }
  0x13   : > { %v317_v2 = vld [vmem:[%s4960_s2] sm:$0xff]  ;;  %315 = vst [vmem:[#allocation2] sm:$0xff] %v313_v0  ;;  %v318_v3 = vld [vmem:[%s4960_s2 + $0x8] sm:$0xff] }
  0x14   : > { %316 = vst [vmem:[#allocation2 + $0x8] sm:$0xff] %v314_v1 }
  0x15   : > { %319 = vst [vmem:[#allocation3 + $0x8] sm:$0xff] %v317_v2 }
  0x16   : > { %320 = vst [vmem:[#allocation3] sm:$0xff] %v318_v3 }
  0x17 PF: > { %v2981_v4 = vld [vmem:[%s4961_s3 + $0xe0] sm:$0xf]  ;;  %v3228_v5 = vld [vmem:[%s4961_s3 + $0xec] sm:$0xf0]  ;;  %v3226_v6 = vld [vmem:[%s4961_s3 + $0xe4] sm:$0xf] }
  0x18   : > { %v2982_v7 = vor.u32 %v3228_v5, %v2981_v4  ;;  %v2983_v8 = vld [vmem:[%s4961_s3 + $0xf0] sm:$0xf0]  ;;  %v2989_v9 = vld [vmem:[%s4961_s3 + $0xe8] sm:$0xf]  ;;  %v3229_v10 = vld [vmem:[%s4961_s3 + $0xf4] sm:$0xf0] }
  0x19   : > { %v2986_v11 = vor.u32 %v3226_v6, %v2983_v8  ;;  %v2990_v12 = vor.u32 %v3229_v10, %v2989_v9  ;;  %v3227_v13 = vld [vmem:[%s4961_s3 + $0xec] sm:$0xf]  ;;  %v2991_v14 = vld [vmem:[%s4961_s3 + $0xf8] sm:$0xf0]  ;;  %v2965_v15 = vld [vmem:[%s4961_s3 + $0xc0] sm:$0xf] }
  0x1a   : > { %587 = vmatpush.bf16.msra.mxu0 %v2982_v7  ;;  %v2994_v16 = vor.u32 %v3227_v13, %v2991_v14  ;;  %v3224_v17 = vld [vmem:[%s4961_s3 + $0xcc] sm:$0xf0]  ;;  %v3222_v18 = vld [vmem:[%s4961_s3 + $0xc4] sm:$0xf]  ;;  %v2967_v19 = vld [vmem:[%s4961_s3 + $0xd0] sm:$0xf0] }
  0x1b   : > { %636 = vmatpush.bf16.msra.mxu1 %v2986_v11  ;;  %685 = vmatpush.bf16.msra.mxu2 %v2990_v12  ;;  %v2966_v20 = vor.u32 %v3224_v17, %v2965_v15  ;;  %v2970_v21 = vor.u32 %v3222_v18, %v2967_v19  ;;  %v2973_v22 = vld [vmem:[%s4961_s3 + $0xc8] sm:$0xf]  ;;  %v3225_v23 = vld [vmem:[%s4961_s3 + $0xd4] sm:$0xf0]  ;;  %v3223_v24 = vld [vmem:[%s4961_s3 + $0xcc] sm:$0xf] }
  0x1c   : > { %734 = vmatpush.bf16.msra.mxu3 %v2994_v16  ;;  %v2974_v25 = vor.u32 %v3225_v23, %v2973_v22  ;;  %v2975_v26 = vld [vmem:[%s4961_s3 + $0xd8] sm:$0xf0]  ;;  %v2949_v27 = vld [vmem:[%s4961_s3 + $0xa0] sm:$0xf]  ;;  %v3220_v28 = vld [vmem:[%s4961_s3 + $0xac] sm:$0xf0] }
  0x1d   : > { %v2978_v29 = vor.u32 %v3223_v24, %v2975_v26  ;;  %v3218_v30 = vld [vmem:[%s4961_s3 + $0xa4] sm:$0xf]  ;;  %v2951_v31 = vld [vmem:[%s4961_s3 + $0xb0] sm:$0xf0]  ;;  %v2957_v32 = vld [vmem:[%s4961_s3 + $0xa8] sm:$0xf]  ;;  %v2950_v33 = vor.u32 %v3220_v28, %v2949_v27 }
  0x1e   : > { %588 = vmatpush.bf16.msra.mxu0 %v2966_v20  ;;  %v3221_v34 = vld [vmem:[%s4961_s3 + $0xb4] sm:$0xf0]  ;;  %v3219_v35 = vld [vmem:[%s4961_s3 + $0xac] sm:$0xf]  ;;  %v2959_v36 = vld [vmem:[%s4961_s3 + $0xb8] sm:$0xf0]  ;;  %v2954_v37 = vor.u32 %v3218_v30, %v2951_v31 }
  0x1f   : > { %637 = vmatpush.bf16.msra.mxu1 %v2970_v21  ;;  %686 = vmatpush.bf16.msra.mxu2 %v2974_v25  ;;  %v2958_v38 = vor.u32 %v3221_v34, %v2957_v32  ;;  %v2933_v39 = vld [vmem:[%s4961_s3 + $0x80] sm:$0xf]  ;;  %v3216_v40 = vld [vmem:[%s4961_s3 + $0x8c] sm:$0xf0]  ;;  %v3214_v41 = vld [vmem:[%s4961_s3 + $0x84] sm:$0xf]  ;;  %v2962_v42 = vor.u32 %v3219_v35, %v2959_v36 }
  0x20   : > { %735 = vmatpush.bf16.msra.mxu3 %v2978_v29  ;;  %v2935_v43 = vld [vmem:[%s4961_s3 + $0x90] sm:$0xf0]  ;;  %v2941_v44 = vld [vmem:[%s4961_s3 + $0x88] sm:$0xf]  ;;  %v3217_v45 = vld [vmem:[%s4961_s3 + $0x94] sm:$0xf0]  ;;  %v2934_v48 = vor.u32 %v3216_v40, %v2933_v39 }
  0x21   : > { %v3215_v46 = vld [vmem:[%s4961_s3 + $0x8c] sm:$0xf]  ;;  %v2943_v47 = vld [vmem:[%s4961_s3 + $0x98] sm:$0xf0]  ;;  %v2938_v49 = vor.u32 %v3214_v41, %v2935_v43  ;;  %v2942_v50 = vor.u32 %v3217_v45, %v2941_v44  ;;  %v2917_v51 = vld [vmem:[%s4961_s3 + $0x60] sm:$0xf] }
  0x22   : > { %589 = vmatpush.bf16.msra.mxu0 %v2950_v33  ;;  %v3212_v52 = vld [vmem:[%s4961_s3 + $0x6c] sm:$0xf0]  ;;  %v3210_v53 = vld [vmem:[%s4961_s3 + $0x64] sm:$0xf]  ;;  %v2946_v54 = vor.u32 %v3215_v46, %v2943_v47  ;;  %v2919_v55 = vld [vmem:[%s4961_s3 + $0x70] sm:$0xf0] }
  0x23   : > { %638 = vmatpush.bf16.msra.mxu1 %v2954_v37  ;;  %687 = vmatpush.bf16.msra.mxu2 %v2958_v38  ;;  %v2925_v56 = vld [vmem:[%s4961_s3 + $0x68] sm:$0xf]  ;;  %v3213_v57 = vld [vmem:[%s4961_s3 + $0x74] sm:$0xf0]  ;;  %v3211_v58 = vld [vmem:[%s4961_s3 + $0x6c] sm:$0xf]  ;;  %v2918_v60 = vor.u32 %v3212_v52, %v2917_v51  ;;  %v2922_v61 = vor.u32 %v3210_v53, %v2919_v55 }
  0x24   : > { %736 = vmatpush.bf16.msra.mxu3 %v2962_v42  ;;  %v2927_v59 = vld [vmem:[%s4961_s3 + $0x78] sm:$0xf0]  ;;  %v2926_v62 = vor.u32 %v3213_v57, %v2925_v56  ;;  %v2901_v63 = vld [vmem:[%s4961_s3 + $0x40] sm:$0xf]  ;;  %v3208_v0 = vld [vmem:[%s4961_s3 + $0x4c] sm:$0xf0] }
  0x25   : > { %v3206_v1 = vld [vmem:[%s4961_s3 + $0x44] sm:$0xf]  ;;  %v2930_v2 = vor.u32 %v3211_v58, %v2927_v59  ;;  %v2903_v3 = vld [vmem:[%s4961_s3 + $0x50] sm:$0xf0]  ;;  %v2909_v4 = vld [vmem:[%s4961_s3 + $0x48] sm:$0xf]  ;;  %v2902_v8 = vor.u32 %v3208_v0, %v2901_v63 }
  0x26   : > { %590 = vmatpush.bf16.msra.mxu0 %v2934_v48  ;;  %v3209_v5 = vld [vmem:[%s4961_s3 + $0x54] sm:$0xf0]  ;;  %v3207_v6 = vld [vmem:[%s4961_s3 + $0x4c] sm:$0xf]  ;;  %v2911_v7 = vld [vmem:[%s4961_s3 + $0x58] sm:$0xf0]  ;;  %v2906_v9 = vor.u32 %v3206_v1, %v2903_v3 }
  0x27   : > { %639 = vmatpush.bf16.msra.mxu1 %v2938_v49  ;;  %688 = vmatpush.bf16.msra.mxu2 %v2942_v50  ;;  %v2910_v10 = vor.u32 %v3209_v5, %v2909_v4  ;;  %v2885_v11 = vld [vmem:[%s4961_s3 + $0x20] sm:$0xf]  ;;  %v3204_v12 = vld [vmem:[%s4961_s3 + $0x2c] sm:$0xf0]  ;;  %v3202_v13 = vld [vmem:[%s4961_s3 + $0x24] sm:$0xf]  ;;  %v2914_v14 = vor.u32 %v3207_v6, %v2911_v7 }
  0x28   : > { %737 = vmatpush.bf16.msra.mxu3 %v2946_v54  ;;  %v2887_v15 = vld [vmem:[%s4961_s3 + $0x30] sm:$0xf0]  ;;  %v2893_v16 = vld [vmem:[%s4961_s3 + $0x28] sm:$0xf]  ;;  %v3205_v17 = vld [vmem:[%s4961_s3 + $0x34] sm:$0xf0]  ;;  %v2886_v20 = vor.u32 %v3204_v12, %v2885_v11 }
  0x29   : > { %v3203_v18 = vld [vmem:[%s4961_s3 + $0x2c] sm:$0xf]  ;;  %v2895_v19 = vld [vmem:[%s4961_s3 + $0x38] sm:$0xf0]  ;;  %v2869_v21 = vld [vmem:[%s4961_s3] sm:$0xf]  ;;  %v2890_v22 = vor.u32 %v3202_v13, %v2887_v15  ;;  %v2894_v23 = vor.u32 %v3205_v17, %v2893_v16 }
  0x2a   : > { %591 = vmatpush.bf16.msra.mxu0 %v2918_v60  ;;  %v3200_v24 = vld [vmem:[%s4961_s3 + $0xc] sm:$0xf0]  ;;  %v3198_v25 = vld [vmem:[%s4961_s3 + $0x4] sm:$0xf]  ;;  %v2871_v26 = vld [vmem:[%s4961_s3 + $0x10] sm:$0xf0]  ;;  %v2898_v27 = vor.u32 %v3203_v18, %v2895_v19 }
  0x2b   : > { %640 = vmatpush.bf16.msra.mxu1 %v2922_v61  ;;  %689 = vmatpush.bf16.msra.mxu2 %v2926_v62  ;;  %v2877_v28 = vld [vmem:[%s4961_s3 + $0x8] sm:$0xf]  ;;  %v3201_v29 = vld [vmem:[%s4961_s3 + $0x14] sm:$0xf0]  ;;  %v3199_v30 = vld [vmem:[%s4961_s3 + $0xc] sm:$0xf]  ;;  %v2870_v34 = vor.u32 %v3200_v24, %v2869_v21  ;;  %v2874_v37 = vor.u32 %v3198_v25, %v2871_v26 }
  0x2c   : > { %738 = vmatpush.bf16.msra.mxu3 %v2930_v2  ;;  %v2879_v31 = vld [vmem:[%s4961_s3 + $0x18] sm:$0xf0]  ;;  %v3109_v32 = vld [vmem:[%s4962_s4 + $0xe0] sm:$0xf]  ;;  %v3260_v33 = vld [vmem:[%s4962_s4 + $0xec] sm:$0xf0]  ;;  %v2878_v38 = vor.u32 %v3201_v29, %v2877_v28 }
  0x2d   : > { %v3258_v35 = vld [vmem:[%s4962_s4 + $0xe4] sm:$0xf]  ;;  %v3111_v36 = vld [vmem:[%s4962_s4 + $0xf0] sm:$0xf0]  ;;  %v2882_v40 = vor.u32 %v3199_v30, %v2879_v31  ;;  %v3865_v41 = vor.u32 %v3260_v33, %v3109_v32  ;;  %v3259_v42 = vld [vmem:[%s4962_s4 + $0xec] sm:$0xf] }
  0x2e   : > { %592 = vmatpush.bf16.msra.mxu0 %v2902_v8  ;;  %v3190_v39 = vld [vmem:[%s3640_s11] sm:$0xff]  ;;  %v3117_v43 = vld [vmem:[%s4962_s4 + $0xe8] sm:$0xf]  ;;  %v3261_v44 = vld [vmem:[%s4962_s4 + $0xf4] sm:$0xf0]  ;;  %v3876_v45 = vor.u32 %v3258_v35, %v3111_v36  ;;  %p3185_p5 = scmp.ne.s32.totalorder %s3632_s28, 1 }
  0x2f   : > { %641 = vmatpush.bf16.msra.mxu1 %v2906_v9  ;;  %690 = vmatpush.bf16.msra.mxu2 %v2910_v10  ;;  %v3119_v46 = vld [vmem:[%s4962_s4 + $0xf8] sm:$0xf0]  ;;  %v3093_v47 = vld [vmem:[%s4962_s4 + $0xc0] sm:$0xf]  ;;  %v3256_v48 = vld [vmem:[%s4962_s4 + $0xcc] sm:$0xf0]  ;;  %v3893_v51 = vor.u32 %v3261_v44, %v3117_v43 }
  0x30   : > { %739 = vmatpush.bf16.msra.mxu3 %v2914_v14  ;;  %v3254_v49 = vld [vmem:[%s4962_s4 + $0xc4] sm:$0xf]  ;;  %v3095_v50 = vld [vmem:[%s4962_s4 + $0xd0] sm:$0xf0]  ;;  %v3896_v52 = vor.u32 %v3259_v42, %v3119_v46  ;;  %v3898_v53 = vor.u32 %v3256_v48, %v3093_v47  ;;  %v3101_v54 = vld [vmem:[%s4962_s4 + $0xc8] sm:$0xf] }
  0x31   : > { %v3257_v55 = vld [vmem:[%s4962_s4 + $0xd4] sm:$0xf0]  ;;  %v3907_v56 = vor.u32 %v3254_v49, %v3095_v50  ;;  %v3255_v57 = vld [vmem:[%s4962_s4 + $0xcc] sm:$0xf]  ;;  %v3103_v58 = vld [vmem:[%s4962_s4 + $0xd8] sm:$0xf0] }
  0x32   : > { %593 = vmatpush.bf16.msra.mxu0 %v2886_v20  ;;  %v3916_v59 = vor.u32 %v3257_v55, %v3101_v54  ;;  %v3077_v60 = vld [vmem:[%s4962_s4 + $0xa0] sm:$0xf]  ;;  %v3252_v61 = vld [vmem:[%s4962_s4 + $0xac] sm:$0xf0]  ;;  %v3250_v62 = vld [vmem:[%s4962_s4 + $0xa4] sm:$0xf]  ;;  %v3929_v63 = vor.u32 %v3255_v57, %v3103_v58 }
  0x33   : > { %642 = vmatpush.bf16.msra.mxu1 %v2890_v22  ;;  %691 = vmatpush.bf16.msra.mxu2 %v2894_v23  ;;  %v3931_v0 = vor.u32 %v3252_v61, %v3077_v60  ;;  %v3079_v1 = vld [vmem:[%s4962_s4 + $0xb0] sm:$0xf0]  ;;  %v3251_v2 = vld [vmem:[%s4962_s4 + $0xac] sm:$0xf]  ;;  %v3087_v4 = vld [vmem:[%s4962_s4 + $0xb8] sm:$0xf0] }
  0x34   : > { %740 = vmatpush.bf16.msra.mxu3 %v2898_v27  ;;  %v3940_v3 = vor.u32 %v3250_v62, %v3079_v1  ;;  %v3085_v5 = vld [vmem:[%s4962_s4 + $0xa8] sm:$0xf]  ;;  %v3253_v6 = vld [vmem:[%s4962_s4 + $0xb4] sm:$0xf0]  ;;  %v3956_v8 = vor.u32 %v3251_v2, %v3087_v4  ;;  %v3061_v10 = vld [vmem:[%s4962_s4 + $0x80] sm:$0xf] }
  0x35   : > { %v3952_v7 = vor.u32 %v3253_v6, %v3085_v5  ;;  %v3191_v9 = vld [vmem:[%s3640_s11 + $0x8] sm:$0xff]  ;;  %v3248_v11 = vld [vmem:[%s4962_s4 + $0x8c] sm:$0xf0]  ;;  %v3246_v12 = vld [vmem:[%s4962_s4 + $0x84] sm:$0xf] }
  0x36   : > { %594 = vmatpush.bf16.msra.mxu0 %v2870_v34  ;;  %v3971_v13 = vor.u32 %v3248_v11, %v3061_v10  ;;  %v3063_v14 = vld [vmem:[%s4962_s4 + $0x90] sm:$0xf0]  ;;  %v3247_v15 = vld [vmem:[%s4962_s4 + $0x8c] sm:$0xf]  ;;  %v3071_v16 = vld [vmem:[%s4962_s4 + $0x98] sm:$0xf0] }
  0x37   : > { %643 = vmatpush.bf16.msra.mxu1 %v2874_v37  ;;  %692 = vmatpush.bf16.msra.mxu2 %v2878_v38  ;;  %v3982_v17 = vor.u32 %v3246_v12, %v3063_v14  ;;  %v3984_v18 = vor.u32 %v3247_v15, %v3071_v16  ;;  %v3069_v19 = vld [vmem:[%s4962_s4 + $0x88] sm:$0xf]  ;;  %v3249_v20 = vld [vmem:[%s4962_s4 + $0x94] sm:$0xf0]  ;;  %v3192_v22 = vld [vmem:[%s3640_s11 + $0x10] sm:$0xff] }
  0x38   : > { %741 = vmatpush.bf16.msra.mxu3 %v2882_v40  ;;  %v3993_v21 = vor.u32 %v3249_v20, %v3069_v19  ;;  %v3045_v23 = vld [vmem:[%s4962_s4 + $0x60] sm:$0xf]  ;;  %v3244_v24 = vld [vmem:[%s4962_s4 + $0x6c] sm:$0xf0]  ;;  %v3242_v25 = vld [vmem:[%s4962_s4 + $0x64] sm:$0xf] }
  0x39   : > { %595 = vmatmul.bf16.vlgmr.msra.gmra.mxu0 %v3190_v39  ;;  %v4008_v26 = vor.u32 %v3244_v24, %v3045_v23  ;;  %v3047_v27 = vld [vmem:[%s4962_s4 + $0x70] sm:$0xf0]  ;;  %v3243_v28 = vld [vmem:[%s4962_s4 + $0x6c] sm:$0xf]  ;;  %v3055_v29 = vld [vmem:[%s4962_s4 + $0x78] sm:$0xf0] }
  0x3a   : > { %1052 = vmatpush.bf16.msrb.mxu0 %v3865_v41  ;;  %644 = vmatmul.bf16.vlgmr.msra.gmra.mxu1 %v3190_v39  ;;  %v4019_v30 = vor.u32 %v3242_v25, %v3047_v27  ;;  %v4021_v31 = vor.u32 %v3243_v28, %v3055_v29  ;;  %v3053_v32 = vld [vmem:[%s4962_s4 + $0x68] sm:$0xf]  ;;  %v3245_v33 = vld [vmem:[%s4962_s4 + $0x74] sm:$0xf0]  ;;  %v3029_v36 = vld [vmem:[%s4962_s4 + $0x40] sm:$0xf] }
  0x3b   : > { %1066 = vmatpush.bf16.msrb.mxu1 %v3876_v45  ;;  %693 = vmatmul.bf16.vlgmr.msra.gmra.mxu2 %v3190_v39  ;;  %v4030_v34 = vor.u32 %v3245_v33, %v3053_v32  ;;  %v3193_v35 = vld [vmem:[%s3640_s11 + $0x18] sm:$0xff]  ;;  %v3240_v37 = vld [vmem:[%s4962_s4 + $0x4c] sm:$0xf0]  ;;  %v3238_v38 = vld [vmem:[%s4962_s4 + $0x44] sm:$0xf] }
  0x3c   : > { %742 = vmatmul.bf16.vlgmr.msra.gmra.mxu3 %v3190_v39  ;;  %1080 = vmatpush.bf16.msrb.mxu2 %v3893_v51  ;;  %v4045_v39 = vor.u32 %v3240_v37, %v3029_v36  ;;  %v3031_v40 = vld [vmem:[%s4962_s4 + $0x50] sm:$0xf0]  ;;  %v3239_v42 = vld [vmem:[%s4962_s4 + $0x4c] sm:$0xf]  ;;  %v3039_v43 = vld [vmem:[%s4962_s4 + $0x58] sm:$0xf0] }
  0x3d   : > { %1094 = vmatpush.bf16.msrb.mxu3 %v3896_v52  ;;  %v4056_v44 = vor.u32 %v3238_v38, %v3031_v40  ;;  %v4058_v46 = vor.u32 %v3239_v42, %v3039_v43  ;;  %v3037_v47 = vld [vmem:[%s4962_s4 + $0x48] sm:$0xf]  ;;  %v3241_v48 = vld [vmem:[%s4962_s4 + $0x54] sm:$0xf0]  ;;  %v3194_v50 = vld [vmem:[%s3640_s11 + $0x20] sm:$0xff] }
  0x3e   : > { %1053 = vmatpush.bf16.msrb.mxu0 %v3898_v53  ;;  %v4067_v49 = vor.u32 %v3241_v48, %v3037_v47  ;;  %v3013_v54 = vld [vmem:[%s4962_s4 + $0x20] sm:$0xf]  ;;  %v3236_v55 = vld [vmem:[%s4962_s4 + $0x2c] sm:$0xf0]  ;;  %v3234_v57 = vld [vmem:[%s4962_s4 + $0x24] sm:$0xf] }
  0x3f   : > { %1067 = vmatpush.bf16.msrb.mxu1 %v3907_v56  ;;  %v4082_v58 = vor.u32 %v3236_v55, %v3013_v54  ;;  %v3015_v60 = vld [vmem:[%s4962_s4 + $0x30] sm:$0xf0]  ;;  %v3235_v61 = vld [vmem:[%s4962_s4 + $0x2c] sm:$0xf]  ;;  %v3023_v62 = vld [vmem:[%s4962_s4 + $0x38] sm:$0xf0] }
  0x40   : > { %1081 = vmatpush.bf16.msrb.mxu2 %v3916_v59  ;;  %v4093_v1 = vor.u32 %v3234_v57, %v3015_v60  ;;  %v4095_v2 = vor.u32 %v3235_v61, %v3023_v62  ;;  %v3021_v4 = vld [vmem:[%s4962_s4 + $0x28] sm:$0xf]  ;;  %v3237_v5 = vld [vmem:[%s4962_s4 + $0x34] sm:$0xf0]  ;;  %v2997_v10 = vld [vmem:[%s4962_s4] sm:$0xf] }
  0x41   : > { %1095 = vmatpush.bf16.msrb.mxu3 %v3929_v63  ;;  %v4104_v6 = vor.u32 %v3237_v5, %v3021_v4  ;;  %v3232_v11 = vld [vmem:[%s4962_s4 + $0xc] sm:$0xf0]  ;;  %v3230_v12 = vld [vmem:[%s4962_s4 + $0x4] sm:$0xf]  ;;  %v2999_v15 = vld [vmem:[%s4962_s4 + $0x10] sm:$0xf0] }
  0x42   : > { %1054 = vmatpush.bf16.msrb.mxu0 %v3931_v0  ;;  %v4119_v14 = vor.u32 %v3232_v11, %v2997_v10  ;;  %v3231_v16 = vld [vmem:[%s4962_s4 + $0xc] sm:$0xf]  ;;  %v3007_v19 = vld [vmem:[%s4962_s4 + $0x18] sm:$0xf0]  ;;  %v4130_v20 = vor.u32 %v3230_v12, %v2999_v15  ;;  %v3196_v23 = vld [vmem:[%s3640_s11 + $0x30] sm:$0xff] }
  0x43   : > { %1068 = vmatpush.bf16.msrb.mxu1 %v3940_v3  ;;  %v3005_v24 = vld [vmem:[%s4962_s4 + $0x8] sm:$0xf]  ;;  %v3233_v25 = vld [vmem:[%s4962_s4 + $0x14] sm:$0xf0]  ;;  %v879_v29 = vld [vmem:[#allocation2] sm:$0xff] }
  0x44   : > { %1082 = vmatpush.bf16.msrb.mxu2 %v3952_v7  ;;  %v4150_v27 = vor.u32 %v3233_v25, %v3005_v24  ;;  %v3197_v28 = vld [vmem:[%s3640_s11 + $0x38] sm:$0xff]  ;;  %v880_v32 = vld [vmem:[#allocation2 + $0x8] sm:$0xff] }
  0x45   : > { %1096 = vmatpush.bf16.msrb.mxu3 %v3956_v8  ;;  %v891_v33 = vpack.c.bf16 %v880_v32, %v879_v29 }
  0x46   : > { %1055 = vmatpush.bf16.msrb.mxu0 %v3971_v13 }
  0x47   : > { %1069 = vmatpush.bf16.msrb.mxu1 %v3982_v17 }
  0x48   : > { %1083 = vmatpush.bf16.msrb.mxu2 %v3993_v21 }
  0x49   : > { %600 = vmatmul.bf16.gmra.mxu0 %v3191_v9  ;;  %1097 = vmatpush.bf16.msrb.mxu3 %v3984_v18 }
  0x4a   : > { %649 = vmatmul.bf16.gmra.mxu1 %v3191_v9  ;;  %1056 = vmatpush.bf16.msrb.mxu0 %v4008_v26 }
  0x4b   : > { %698 = vmatmul.bf16.gmra.mxu2 %v3191_v9  ;;  %1070 = vmatpush.bf16.msrb.mxu1 %v4019_v30 }
  0x4c   : > { %747 = vmatmul.bf16.gmra.mxu3 %v3191_v9  ;;  %1084 = vmatpush.bf16.msrb.mxu2 %v4030_v34  ;;  %v3195_v9 = vld [vmem:[%s3640_s11 + $0x28] sm:$0xff] }
  0x4d   : > { %1098 = vmatpush.bf16.msrb.mxu3 %v4021_v31 }
  0x4e   : > { %1057 = vmatpush.bf16.msrb.mxu0 %v4045_v39 }
  0x4f   : > { %1071 = vmatpush.bf16.msrb.mxu1 %v4056_v44 }
  0x50   : > { %1085 = vmatpush.bf16.msrb.mxu2 %v4067_v49 }
  0x51   : > { %1099 = vmatpush.bf16.msrb.mxu3 %v4058_v46 }
  0x52   : > { %1058 = vmatpush.bf16.msrb.mxu0 %v4082_v58 }
  0x53   : > { %1072 = vmatpush.bf16.msrb.mxu1 %v4093_v1 }
  0x54   : > { %1086 = vmatpush.bf16.msrb.mxu2 %v4104_v6 }
  0x55   : > { %1100 = vmatpush.bf16.msrb.mxu3 %v4095_v2 }
  0x56   : > { %1059 = vmatpush.bf16.msrb.mxu0 %v4119_v14 }
  0x57   : > { %1073 = vmatpush.bf16.msrb.mxu1 %v4130_v20 }
  0x58   : > { %1087 = vmatpush.bf16.msrb.mxu2 %v4150_v27 }
  0x59   : > { %605 = vmatmul.bf16.gmra.mxu0 %v3192_v22 }
  0x5a   : > { %654 = vmatmul.bf16.gmra.mxu1 %v3192_v22  ;;  %1264 = vmatpush.bf16.msra.mxu0 %v3865_v41 }
  0x5b   : > { %703 = vmatmul.bf16.gmra.mxu2 %v3192_v22  ;;  %1278 = vmatpush.bf16.msra.mxu1 %v3876_v45 }
  0x5c   : > { %752 = vmatmul.bf16.gmra.mxu3 %v3192_v22  ;;  %v4132_v22 = vor.u32 %v3231_v16, %v3007_v19  ;;  %1292 = vmatpush.bf16.msra.mxu2 %v3893_v51 }
  0x5e   : > { %1101 = vmatpush.bf16.msrb.mxu3 %v4132_v22  ;;  %1265 = vmatpush.bf16.msra.mxu0 %v3898_v53 }
  0x5f   : > { %1279 = vmatpush.bf16.msra.mxu1 %v3907_v56 }
  0x60   : > { %1293 = vmatpush.bf16.msra.mxu2 %v3916_v59 }
  0x62   : > { %1306 = vmatpush.bf16.msra.mxu3 %v3896_v52  ;;  %1266 = vmatpush.bf16.msra.mxu0 %v3931_v0 }
  0x63   : > { %1280 = vmatpush.bf16.msra.mxu1 %v3940_v3 }
  0x64   : > { %1294 = vmatpush.bf16.msra.mxu2 %v3952_v7 }
  0x66   : > { %1307 = vmatpush.bf16.msra.mxu3 %v3929_v63  ;;  %1267 = vmatpush.bf16.msra.mxu0 %v3971_v13 }
  0x67   : > { %1281 = vmatpush.bf16.msra.mxu1 %v3982_v17 }
  0x68   : > { %1295 = vmatpush.bf16.msra.mxu2 %v3993_v21 }
  0x69   : > { %610 = vmatmul.bf16.gmra.mxu0 %v3193_v35 }
  0x6a   : > { %659 = vmatmul.bf16.gmra.mxu1 %v3193_v35  ;;  %1308 = vmatpush.bf16.msra.mxu3 %v3956_v8 }
  0x6b   : > { %708 = vmatmul.bf16.gmra.mxu2 %v3193_v35  ;;  %1268 = vmatpush.bf16.msra.mxu0 %v4008_v26 }
  0x6c   : > { %757 = vmatmul.bf16.gmra.mxu3 %v3193_v35  ;;  %1282 = vmatpush.bf16.msra.mxu1 %v4019_v30 }
  0x6d   : > { %1296 = vmatpush.bf16.msra.mxu2 %v4030_v34 }
  0x6e   : > { %1309 = vmatpush.bf16.msra.mxu3 %v3984_v18 }
  0x6f   : > { %1269 = vmatpush.bf16.msra.mxu0 %v4045_v39 }
  0x70   : > { %1283 = vmatpush.bf16.msra.mxu1 %v4056_v44 }
  0x71   : > { %1297 = vmatpush.bf16.msra.mxu2 %v4067_v49 }
  0x72   : > { %1310 = vmatpush.bf16.msra.mxu3 %v4021_v31 }
  0x73   : > { %1270 = vmatpush.bf16.msra.mxu0 %v4082_v58 }
  0x74   : > { %1284 = vmatpush.bf16.msra.mxu1 %v4093_v1 }
  0x75   : > { %1298 = vmatpush.bf16.msra.mxu2 %v4104_v6 }
  0x76   : > { %1311 = vmatpush.bf16.msra.mxu3 %v4058_v46 }
  0x77   : > { %1271 = vmatpush.bf16.msra.mxu0 %v4119_v14 }
  0x78   : > { %1285 = vmatpush.bf16.msra.mxu1 %v4130_v20 }
  0x79   : > { %615 = vmatmul.bf16.gmra.mxu0 %v3194_v50  ;;  %1299 = vmatpush.bf16.msra.mxu2 %v4150_v27 }
  0x7a   : > { %664 = vmatmul.bf16.gmra.mxu1 %v3194_v50  ;;  %1312 = vmatpush.bf16.msra.mxu3 %v4095_v2 }
  0x7b   : > { %713 = vmatmul.bf16.gmra.mxu2 %v3194_v50 }
  0x7c   : > { %762 = vmatmul.bf16.gmra.mxu3 %v3194_v50 }
  0x7e   : > { %1313 = vmatpush.bf16.msra.mxu3 %v4132_v22 }
  0x89   : > { %620 = vmatmul.bf16.gmra.mxu0 %v3195_v9 }
  0x8a   : > { %669 = vmatmul.bf16.gmra.mxu1 %v3195_v9 }
  0x8b   : > { %718 = vmatmul.bf16.gmra.mxu2 %v3195_v9 }
  0x8c   : > { %767 = vmatmul.bf16.gmra.mxu3 %v3195_v9 }
  0x99   : > { %625 = vmatmul.bf16.gmra.mxu0 %v3196_v23 }
  0x9a   : > { %674 = vmatmul.bf16.gmra.mxu1 %v3196_v23 }
  0x9b   : > { %723 = vmatmul.bf16.gmra.mxu2 %v3196_v23 }
  0x9c   : > { %772 = vmatmul.bf16.gmra.mxu3 %v3196_v23 }
  0xa9   : > { %630 = vmatmul.bf16.gmra.mxu0 %v3197_v28 }
  0xaa   : > { %679 = vmatmul.bf16.gmra.mxu1 %v3197_v28 }
  0xab   : > { %728 = vmatmul.bf16.gmra.mxu2 %v3197_v28 }
  0xac   : > { %777 = vmatmul.bf16.gmra.mxu3 %v3197_v28 }
  0xb6   : > { %v4180_v35 = vpop.f32.mrf.mxu0 }
  0xb7   : > { %v4182_v36 = vpop.f32.mrf.mxu1 }
  0xb9   : > { %1060 = vmatmul.bf16.vlgmr.msrb.gmra.mxu0 %v891_v33 }
  0xba   : > { %1074 = vmatmul.bf16.vlgmr.msrb.gmra.mxu1 %v891_v33  ;;  %1477 = vmatpush.bf16.msrb.mxu0 %v3865_v41 }
  0xbb   : > { %1088 = vmatmul.bf16.vlgmr.msrb.gmra.mxu2 %v891_v33  ;;  %1491 = vmatpush.bf16.msrb.mxu1 %v3876_v45 }
  0xbc   : > { %1102 = vmatmul.bf16.vlgmr.msrb.gmra.mxu3 %v891_v33  ;;  %1505 = vmatpush.bf16.msrb.mxu2 %v3893_v51 }
  0xbd   : > { %1519 = vmatpush.bf16.msrb.mxu3 %v3896_v52 }
  0xbe   : > { %v4187_v37 = vpop.f32.mrf.mxu2  ;;  %v4192_v40 = vpop.f32.mrf.mxu0  ;;  %1478 = vmatpush.bf16.msrb.mxu0 %v3898_v53 }
  0xbf   : > { %v4190_v38 = vpop.f32.mrf.mxu3  ;;  %v4194_v42 = vpop.f32.mrf.mxu1  ;;  %1492 = vmatpush.bf16.msrb.mxu1 %v3907_v56 }
  0xc0   : > { %1506 = vmatpush.bf16.msrb.mxu2 %v3916_v59 }
  0xc1   : > { %1520 = vmatpush.bf16.msrb.mxu3 %v3929_v63 }
  0xc2   : > { %1479 = vmatpush.bf16.msrb.mxu0 %v3931_v0 }
  0xc3   : > { %1493 = vmatpush.bf16.msrb.mxu1 %v3940_v3 }
  0xc4   : > { %1507 = vmatpush.bf16.msrb.mxu2 %v3952_v7 }
  0xc5   : > { %1521 = vmatpush.bf16.msrb.mxu3 %v3956_v8 }
  0xc6   : > { %v4203_v43 = vpop.f32.mrf.mxu2  ;;  %v4208_v48 = vpop.f32.mrf.mxu0  ;;  %1480 = vmatpush.bf16.msrb.mxu0 %v3971_v13 }
  0xc7   : > { %v4206_v47 = vpop.f32.mrf.mxu3  ;;  %v4210_v50 = vpop.f32.mrf.mxu1  ;;  %1494 = vmatpush.bf16.msrb.mxu1 %v3982_v17 }
  0xc8   : > { %4985 = vst [vmem:[#allocation5_spill] sm:$0xff] %v4210_v50  ;;  %1508 = vmatpush.bf16.msrb.mxu2 %v3993_v21 }
  0xc9   : > { %1522 = vmatpush.bf16.msrb.mxu3 %v3984_v18 }
  0xca   : > { %1481 = vmatpush.bf16.msrb.mxu0 %v4008_v26 }
  0xcb   : > { %1495 = vmatpush.bf16.msrb.mxu1 %v4019_v30 }
  0xcc   : > { %1509 = vmatpush.bf16.msrb.mxu2 %v4030_v34 }
  0xcd   : > { %1523 = vmatpush.bf16.msrb.mxu3 %v4021_v31 }
  0xce   : > { %v4219_v54 = vpop.f32.mrf.mxu2  ;;  %v4224_v57 = vpop.f32.mrf.mxu0  ;;  %1482 = vmatpush.bf16.msrb.mxu0 %v4045_v39 }
  0xcf   : > { %4986 = vst [vmem:[#allocation6_spill] sm:$0xff] %v4219_v54  ;;  %v4222_v55 = vpop.f32.mrf.mxu3  ;;  %v4226_v60 = vpop.f32.mrf.mxu1  ;;  %1496 = vmatpush.bf16.msrb.mxu1 %v4056_v44 }
  0xd0   : > { %4987 = vst [vmem:[#allocation7_spill] sm:$0xff] %v4222_v55  ;;  %1510 = vmatpush.bf16.msrb.mxu2 %v4067_v49 }
  0xd1   : > { %4988 = vst [vmem:[#allocation8_spill] sm:$0xff] %v4224_v57  ;;  %1524 = vmatpush.bf16.msrb.mxu3 %v4058_v46 }
  0xd2   : > { %4989 = vst [vmem:[#allocation9_spill] sm:$0xff] %v4226_v60  ;;  %1483 = vmatpush.bf16.msrb.mxu0 %v4082_v58  ;;  %v881_v60 = vld [vmem:[#allocation3 + $0x8] sm:$0xff] }
  0xd3   : > { %1497 = vmatpush.bf16.msrb.mxu1 %v4093_v1 }
  0xd4   : > { %1511 = vmatpush.bf16.msrb.mxu2 %v4104_v6 }
  0xd5   : > { %1525 = vmatpush.bf16.msrb.mxu3 %v4095_v2 }
  0xd6   : > { %v4235_v61 = vpop.f32.mrf.mxu2  ;;  %v4240_v4 = vpop.f32.mrf.mxu0  ;;  %1484 = vmatpush.bf16.msrb.mxu0 %v4119_v14 }
  0xd7   : > { %4990 = vst [vmem:[#allocation10_spill] sm:$0xff] %v4235_v61  ;;  %v4238_v62 = vpop.f32.mrf.mxu3  ;;  %v4242_v5 = vpop.f32.mrf.mxu1  ;;  %1498 = vmatpush.bf16.msrb.mxu1 %v4130_v20 }
  0xd8   : > { %4991 = vst [vmem:[#allocation11_spill] sm:$0xff] %v4238_v62  ;;  %1512 = vmatpush.bf16.msrb.mxu2 %v4150_v27 }
  0xd9   : > { %4992 = vst [vmem:[#allocation12_spill] sm:$0xff] %v4240_v4  ;;  %1526 = vmatpush.bf16.msrb.mxu3 %v4132_v22 }
  0xda   : > { %4993 = vst [vmem:[#allocation13_spill] sm:$0xff] %v4242_v5 }
  0xde   : > { %v4248_v9 = vpop.f32.mrf.mxu2  ;;  %v4252_v11 = vpop.f32.mrf.mxu0 }
  0xdf   : > { %4994 = vst [vmem:[#allocation14_spill] sm:$0xff] %v4248_v9  ;;  %v4250_v10 = vpop.f32.mrf.mxu3  ;;  %v4254_v12 = vpop.f32.mrf.mxu1 }
  0xe0   : > { %4995 = vst [vmem:[#allocation15_spill] sm:$0xff] %v4250_v10 }
  0xe1   : > { %4996 = vst [vmem:[#allocation16_spill] sm:$0xff] %v4252_v11 }
  0xe2   : > { %4997 = vst [vmem:[#allocation17_spill] sm:$0xff] %v4254_v12 }
  0xe6   : > { %v4256_v15 = vpop.f32.mrf.mxu2  ;;  %v4260_v19 = vpop.f32.mrf.mxu0 }
  0xe7   : > { %4998 = vst [vmem:[#allocation18_spill] sm:$0xff] %v4256_v15  ;;  %v4258_v16 = vpop.f32.mrf.mxu3  ;;  %v4262_v23 = vpop.f32.mrf.mxu1 }
  0xe8   : > { %4999 = vst [vmem:[#allocation19_spill] sm:$0xff] %v4258_v16 }
  0xe9   : > { %5000 = vst [vmem:[#allocation20_spill] sm:$0xff] %v4260_v19 }
  0xea   : > { %5001 = vst [vmem:[#allocation21_spill] sm:$0xff] %v4262_v23 }
  0xee   : > { %v4264_v24 = vpop.f32.mrf.mxu2  ;;  %v4268_v28 = vpop.f32.mrf.mxu0 }
  0xef   : > { %5002 = vst [vmem:[#allocation22_spill] sm:$0xff] %v4264_v24  ;;  %v4266_v25 = vpop.f32.mrf.mxu3  ;;  %v4270_v29 = vpop.f32.mrf.mxu1 }
  0xf0   : > { %5003 = vst [vmem:[#allocation23_spill] sm:$0xff] %v4266_v25 }
  0xf1   : > { %5004 = vst [vmem:[#allocation24_spill] sm:$0xff] %v4268_v28 }
  0xf2   : > { %5005 = vst [vmem:[#allocation25_spill] sm:$0xff] %v4270_v29 }
  0xf6   : > { %v4272_v32 = vpop.f32.mrf.mxu2  ;;  %v4276_v9 = vpop.f32.mrf.mxu0 }
  0xf7   : > { %5006 = vst [vmem:[#allocation26_spill] sm:$0xff] %v4272_v32  ;;  %v4274_v33 = vpop.f32.mrf.mxu3  ;;  %v4278_v15 = vpop.f32.mrf.mxu1 }
  0xf8   : > { %5007 = vst [vmem:[#allocation27_spill] sm:$0xff] %v4274_v33 }
  0xf9   : > { %5008 = vst [vmem:[#allocation28_spill] sm:$0xff] %v4276_v9 }
  0xfa   : > { %5009 = vst [vmem:[#allocation29_spill] sm:$0xff] %v4278_v15 }
  0xfe   : > { %v4280_v16 = vpop.f32.mrf.mxu2  ;;  %v4284_v23 = vpop.f32.mrf.mxu0 }
  0xff   : > { %5010 = vst [vmem:[#allocation30_spill] sm:$0xff] %v4280_v16  ;;  %v4282_v19 = vpop.f32.mrf.mxu3  ;;  %v4286_v24 = vpop.f32.mrf.mxu1 }
 0x100   : > { %5011 = vst [vmem:[#allocation31_spill] sm:$0xff] %v4282_v19 }
 0x101   : > { %5012 = vst [vmem:[#allocation32_spill] sm:$0xff] %v4284_v23 }
 0x102   : > { %5013 = vst [vmem:[#allocation33_spill] sm:$0xff] %v4286_v24 }
 0x106   : > { %v4288_v25 = vpop.f32.mrf.mxu2  ;;  %v4292_v29 = vpop.f32.mrf.mxu0 }
 0x107   : > { %5014 = vst [vmem:[#allocation34_spill] sm:$0xff] %v4288_v25  ;;  %v4290_v28 = vpop.f32.mrf.mxu3  ;;  %v4294_v32 = vpop.f32.mrf.mxu1 }
 0x108   : > { %5015 = vst [vmem:[#allocation35_spill] sm:$0xff] %v4290_v28 }
 0x109   : > { %5016 = vst [vmem:[#allocation36_spill] sm:$0xff] %v4292_v29 }
 0x10a   : > { %5017 = vst [vmem:[#allocation37_spill] sm:$0xff] %v4294_v32 }
 0x10e   : > { %v4296_v33 = vpop.f32.mrf.mxu2  ;;  %v4300_v15 = vpop.f32.mrf.mxu0 }
 0x10f   : > { %5018 = vst [vmem:[#allocation38_spill] sm:$0xff] %v4296_v33  ;;  %v4298_v9 = vpop.f32.mrf.mxu3  ;;  %v4302_v16 = vpop.f32.mrf.mxu1 }
 0x110   : > { %5019 = vst [vmem:[#allocation39_spill] sm:$0xff] %v4298_v9 }
 0x111   : > { %5020 = vst [vmem:[#allocation40_spill] sm:$0xff] %v4300_v15 }
 0x112   : > { %5021 = vst [vmem:[#allocation41_spill] sm:$0xff] %v4302_v16 }
 0x116   : > { %v4304_v19 = vpop.f32.mrf.mxu2  ;;  %v4308_v24 = vpop.f32.mrf.mxu0 }
 0x117   : > { %5022 = vst [vmem:[#allocation42_spill] sm:$0xff] %v4304_v19  ;;  %v4306_v23 = vpop.f32.mrf.mxu3  ;;  %v4310_v25 = vpop.f32.mrf.mxu1 }
 0x118   : > { %5023 = vst [vmem:[#allocation43_spill] sm:$0xff] %v4306_v23 }
 0x119   : > { %5024 = vst [vmem:[#allocation44_spill] sm:$0xff] %v4308_v24 }
 0x11a   : > { %5025 = vst [vmem:[#allocation45_spill] sm:$0xff] %v4310_v25  ;;  %v369_v25 = vld [vmem:[%s4963_s5] sm:$0xf] }
 0x11b   : > { %v4349_v11 = vperm.slane %v369_v25, 3  ;;  %v4359_v61 = vperm.slane %v369_v25, 2 }
 0x11d   : > { %5040 = vst [vmem:[#allocation60_spill] sm:$0xff] %v4349_v11 }
 0x11e   : > { %v4312_v28 = vpop.f32.mrf.mxu2  ;;  %v4316_v32 = vpop.f32.mrf.mxu0  ;;  %5042 = vst [vmem:[#allocation62_spill] sm:$0xff] %v4359_v61 }
 0x11f   : > { %5026 = vst [vmem:[#allocation46_spill] sm:$0xff] %v4312_v28  ;;  %v4314_v29 = vpop.f32.mrf.mxu3  ;;  %v4318_v33 = vpop.f32.mrf.mxu1 }
 0x120   : > { %5027 = vst [vmem:[#allocation47_spill] sm:$0xff] %v4314_v29 }
 0x121   : > { %5028 = vst [vmem:[#allocation48_spill] sm:$0xff] %v4316_v32  ;;  %v4337_v32 = vperm.slane %v369_v25, 0 }
 0x122   : > { %5029 = vst [vmem:[#allocation49_spill] sm:$0xff] %v4318_v33  ;;  %v4339_v33 = vperm.slane %v369_v25, 1 }
 0x124   : > { %5037 = vst [vmem:[#allocation57_spill] sm:$0xff] %v4339_v33 }
 0x126   : > { %v4322_v15 = vpop.f32.mrf.mxu0  ;;  %v4326_v19 = vpop.f32.mrf.mxu2 }
 0x127   : > { %v4320_v9 = vpop.f32.mrf.mxu3  ;;  %5031 = vst [vmem:[#allocation51_spill] sm:$0xff] %v4322_v15  ;;  %v4324_v16 = vpop.f32.mrf.mxu1  ;;  %v646_v15 = vadd.f32 %v4182_v36, %v4339_v33  ;;  %v599_v36 = vadd.f32 %v4192_v40, %v4337_v32  ;;  %v746_v40 = vadd.f32 %v4206_v47, %v4349_v11 }
 0x128   : > { %5030 = vst [vmem:[#allocation50_spill] sm:$0xff] %v4320_v9 }
 0x129   : > { %5032 = vst [vmem:[#allocation52_spill] sm:$0xff] %v4324_v16  ;;  %v597_v16 = vadd.f32 %v4180_v35, %v4337_v32  ;;  %v744_v35 = vadd.f32 %v4190_v38, %v4349_v11 }
 0x12a   : > { %5033 = vst [vmem:[#allocation53_spill] sm:$0xff] %v4326_v19 }
 0x12e   : > { %v4333_v28 = vpop.f32.mrf.mxu0  ;;  %v4341_v9 = vpop.f32.mrf.mxu2 }
 0x12f   : > { %v4331_v24 = vpop.f32.mrf.mxu3  ;;  %5035 = vst [vmem:[#allocation55_spill] sm:$0xff] %v4333_v28  ;;  %v4335_v29 = vpop.f32.mrf.mxu1 }
 0x130   : > { %5034 = vst [vmem:[#allocation54_spill] sm:$0xff] %v4331_v24 }
 0x131   : > { %5036 = vst [vmem:[#allocation56_spill] sm:$0xff] %v4335_v29 }
 0x132   : > { %5038 = vst [vmem:[#allocation58_spill] sm:$0xff] %v4341_v9 }
 0x136   : > { %v1061_v23 = vpop.f32.mrf.mxu0  ;;  %v4351_v5 = vpop.f32.mrf.mxu2 }
 0x137   : > { %v4347_v19 = vpop.f32.mrf.mxu3  ;;  %v1108_v24 = vadd.f32 %v1061_v23, %v597_v16  ;;  %v1075_v12 = vpop.f32.mrf.mxu1  ;;  %5041 = vst [vmem:[#allocation61_spill] sm:$0xff] %v4351_v5 }
 0x138   : > { %5039 = vst [vmem:[#allocation59_spill] sm:$0xff] %v4347_v19  ;;  %v1109_v28 = vadd.f32 %v1075_v12, %v646_v15  ;;  %v648_v19 = vadd.f32 %v4194_v42, %v4339_v33 }
 0x139   : > { %v3123_v29 = vmul.f32 -1.442695, %v1108_v24 }
 0x13a   : > { %v3125_v10 = vmul.f32 -1.442695, %v1109_v28 }
 0x13b   : > { %3317 = vpow2.f32 %v3123_v29 }
 0x13c   : > { %3319 = vpow2.f32 %v3125_v10 }
 0x13e   : > { %v1063_v23 = vpop.f32.mrf.mxu0  ;;  %v1089_v42 = vpop.f32.mrf.mxu2 }
 0x13f   : > { %v1103_v16 = vpop.f32.mrf.mxu3  ;;  %v1112_v15 = vadd.f32 %v1063_v23, %v599_v36  ;;  %v1077_v9 = vpop.f32.mrf.mxu1 }
 0x140   : > { %v1111_v12 = vadd.f32 %v1103_v16, %v744_v35  ;;  %v1113_v24 = vadd.f32 %v1077_v9, %v648_v19  ;;  %v695_v9 = vadd.f32 %v4187_v37, %v4359_v61 }
 0x141   : > { %v3318_v28 = vpop.eup %3317  ;;  %v3124_v10 = vmul.f32 -1.442695, %v1112_v15 }
 0x142   : > { %v3127_v29 = vmul.f32 -1.442695, %v1111_v12  ;;  %v3320_v4 = vpop.eup %3319  ;;  %v1122_v5 = vadd.f32 1.0, %v3318_v28  ;;  %v3126_v62 = vmul.f32 -1.442695, %v1113_v24  ;;  %v1110_v16 = vadd.f32 %v1089_v42, %v695_v9 }
 0x143   : > { %v1160_v38 = vadd.f32 1.0, %v3320_v4 }
 0x144   : > { %3321 = vpow2.f32 %v3127_v29  ;;  %vm1129_vm2 = vweird.f32 %v1122_v5 }
 0x145   : > { %3323 = vrcp.f32 %v1122_v5  ;;  %v1173_v42 = vand.u32 2147483648, %v1160_v38  ;;  %vm1167_vm3 = vweird.f32 %v1160_v38 }
 0x146   : > { %3325 = vrcp.f32 %v1160_v38 }
 0x147   : > { %3327 = vpow2.f32 %v3124_v10  ;;  %v1105_v35 = vpop.f32.mrf.mxu3  ;;  %v1133_v10 = vand.u32 2147483647, %v1122_v5 }
 0x148   : > { %3329 = vpow2.f32 %v3126_v62  ;;  %v1115_v19 = vadd.f32 %v1105_v35, %v746_v40  ;;  %v1135_v62 = vand.u32 2147483648, %v1122_v5 }
 0x149   : > { %vm1134_vm6 = vcmp.eq.f32.partialorder %v1133_v10, 8.507059e+37 }
 0x14a   : > { %v3322_v36 = vpop.eup %3321  ;;  %v3128_v25 = vmul.f32 -1.442695, %v1115_v19  ;;  %v1171_v19 = vand.u32 2147483647, %v1160_v38 }
 0x14b   : > { %v3324_v23 = vpop.eup %3323  ;;  %v4365_v4 = vadd.f32 1.0, %v3322_v36 }
 0x14c   : > { %v3326_v12 = vpop.eup %3325  ;;  %v1125_v15 = vmul.f32 %v3324_v23, %v1122_v5  ;;  %3331 = vpow2.f32 %v3128_v25  ;;  %vm1130_vm0 = vweird.f32 %v3324_v23  ;;  %v1136_v25 = vor.u32 1.1754944e-38, %v1135_v62 }
 0x14d   : > { %v3328_v24 = vpop.eup %3327  ;;  %v1163_v47 = vmul.f32 %v3326_v12, %v1160_v38  ;;  %3333 = vtanh.f32 %v1110_v16  ;;  %vm1168_vm1 = vweird.f32 %v3326_v12  ;;  %vm1131_vm4 = vmor %vm1129_vm2, %vm1130_vm0  ;;  %vm1172_vm7 = vcmp.eq.f32.partialorder %v1171_v19, 8.507059e+37 }
 0x14e   : > { %v3330_v28 = vpop.eup %3329  ;;  %v1126_v29 = vsub.f32 1.0, %v1125_v15  ;;  %v4367_v54 = vadd.f32 1.0, %v3328_v24  ;;  %3335 = vrcp.f32 %v4365_v4  ;;  %v1091_v24 = vpop.f32.mrf.mxu2  ;;  %vm1169_vm5 = vmor %vm1167_vm3, %vm1168_vm1  ;;  %vm1207_vm2 = vweird.f32 %v4365_v4 }
 0x14f   : > { %v1164_v37 = vsub.f32 1.0, %v1163_v47  ;;  %v4370_v40 = vadd.f32 1.0, %v3330_v28 }
 0x150   : > { %v1127_v35 = vmul.f32 %v3324_v23, %v1126_v29  ;;  %3337 = vrcp.f32 %v4367_v54  ;;  %v697_v29 = vadd.f32 %v4203_v43, %v4359_v61  ;;  %v1150_v10 = vand.u32 2147483648, %v4367_v54 }
 0x151   : > { %v1165_v9 = vmul.f32 %v3326_v12, %v1164_v37  ;;  %3339 = vrcp.f32 %v4370_v40  ;;  %v1174_v37 = vor.u32 1.1754944e-38, %v1173_v42  ;;  %v1188_v19 = vand.u32 2147483648, %v4370_v40 }
 0x152   : > { %v3332_v36 = vpop.eup %3331  ;;  %v1128_v16 = vadd.f32 %v3324_v23, %v1127_v35  ;;  %v1114_v11 = vadd.f32 %v1091_v24, %v697_v29  ;;  %vm1144_vm10 = vweird.f32 %v4367_v54  ;;  %vm1182_vm11 = vweird.f32 %v4370_v40 }
 0x153   : > { %v1166_v15 = vadd.f32 %v3326_v12, %v1165_v9  ;;  %v4374_v47 = vadd.f32 1.0, %v3332_v36  ;;  %v3334_v28 = vpop.eup %3333 }
 0x154   : > { %v1132_v57 = vsel %vm1131_vm4, %v3324_v23, %v1128_v16  ;;  %v4378_v55 = vpop.eup %3335 }
 0x155   : > { %v1137_v35 = vsel %vm1134_vm6, %v1136_v25, %v1132_v57  ;;  %v1170_v5 = vsel %vm1169_vm5, %v3326_v12, %v1166_v15  ;;  %3341 = vrcp.f32 %v4374_v47  ;;  %v1203_v23 = vmul.f32 %v4378_v55, %v4365_v4 }
 0x156   : > { %v3338_v38 = vpop.eup %3337  ;;  %v1175_v62 = vsel %vm1172_vm7, %v1174_v37, %v1170_v5  ;;  %v1234_v9 = vmul.f32 %v3334_v28, %v1137_v35  ;;  %3343 = vtanh.f32 %v1114_v11  ;;  %v1151_v11 = vor.u32 1.1754944e-38, %v1150_v10  ;;  %v882_v5 = vld [vmem:[#allocation3] sm:$0xff] }
 0x157   : > { %v3340_v36 = vpop.eup %3339  ;;  %v1232_v50 = vmul.f32 %v1175_v62, %v881_v60  ;;  %v1140_v43 = vmul.f32 %v3338_v38, %v4367_v54  ;;  %vm1145_vm8 = vweird.f32 %v3338_v38  ;;  %v1148_v60 = vand.u32 2147483647, %v4367_v54 }
 0x158   : > { %v1178_v42 = vmul.f32 %v3340_v36, %v4370_v40  ;;  %vm1183_vm9 = vweird.f32 %v3340_v36  ;;  %v1204_v24 = vsub.f32 1.0, %v1203_v23  ;;  %vm1146_vm12 = vmor %vm1144_vm10, %vm1145_vm8  ;;  %v1189_v35 = vor.u32 1.1754944e-38, %v1188_v19 }
 0x159   : > { %v4383_v61 = vadd.f32 %v1234_v9, %v1232_v50  ;;  %v1141_v57 = vsub.f32 1.0, %v1140_v43  ;;  %v1186_v50 = vand.u32 2147483647, %v4370_v40  ;;  %vm1184_vm13 = vmor %vm1182_vm11, %vm1183_vm9  ;;  %vm1149_vm14 = vcmp.eq.f32.partialorder %v1148_v60, 8.507059e+37 }
 0x15a   : > { %v1179_v12 = vsub.f32 1.0, %v1178_v42  ;;  %v1205_v23 = vmul.f32 %v4378_v55, %v1204_v24  ;;  %vm1208_vm0 = vweird.f32 %v4378_v55  ;;  %v1228_v19 = vand.u32 2147483648, %v4374_v47 }
 0x15b   : > { %v1142_v16 = vmul.f32 %v3338_v38, %v1141_v57  ;;  %v3342_v25 = vpop.eup %3341  ;;  %vm1187_vm15 = vcmp.eq.f32.partialorder %v1186_v50, 8.507059e+37  ;;  %3345 = vtanh.f32 %v4383_v61  ;;  %vm1209_vm3 = vmor %vm1207_vm2, %vm1208_vm0  ;;  %v1211_v60 = vand.u32 2147483647, %v4365_v4 }
 0x15c   : > { %v1180_v15 = vmul.f32 %v3340_v36, %v1179_v12  ;;  %v1218_v29 = vmul.f32 %v3342_v25, %v4374_v47  ;;  %v3344_v43 = vpop.eup %3343  ;;  %vm1223_vm1 = vweird.f32 %v3342_v25  ;;  %vm1222_vm4 = vweird.f32 %v4374_v47 }
 0x15d   : > { %v1143_v28 = vadd.f32 %v3338_v38, %v1142_v16  ;;  %vm1224_vm5 = vmor %vm1222_vm4, %vm1223_vm1  ;;  %vm1212_vm6 = vcmp.eq.f32.partialorder %v1211_v60, 8.507059e+37  ;;  %v5048_v60 = vld [vmem:[#allocation9_spill] sm:$0xff] }
 0x15e   : > { %v1181_v37 = vadd.f32 %v3340_v36, %v1180_v15  ;;  %v1219_v9 = vsub.f32 1.0, %v1218_v29  ;;  %v1229_v29 = vor.u32 1.1754944e-38, %v1228_v19 }
 0x15f   : > { %v1147_v62 = vsel %vm1146_vm12, %v3338_v38, %v1143_v28  ;;  %v1206_v38 = vadd.f32 %v4378_v55, %v1205_v23 }
 0x160   : > { %v1152_v42 = vsel %vm1149_vm14, %v1151_v11, %v1147_v62  ;;  %v1185_v57 = vsel %vm1184_vm13, %v3340_v36, %v1181_v37  ;;  %v1220_v16 = vmul.f32 %v3342_v25, %v1219_v9  ;;  %v1213_v36 = vand.u32 2147483648, %v4365_v4 }
 0x161   : > { %v1190_v54 = vsel %vm1187_vm15, %v1189_v35, %v1185_v57  ;;  %v1235_v12 = vmul.f32 %v3344_v43, %v1152_v42  ;;  %v1210_v15 = vsel %vm1209_vm3, %v4378_v55, %v1206_v38  ;;  %v3346_v24 = vpop.eup %3345  ;;  %v602_v55 = vadd.f32 %v4208_v48, %v4337_v32  ;;  %v5046_v38 = vld [vmem:[#allocation7_spill] sm:$0xff] }
 0x162   : > { %v1233_v33 = vmul.f32 %v1190_v54, %v882_v5  ;;  %v1221_v10 = vadd.f32 %v3342_v25, %v1220_v16  ;;  %v1214_v28 = vor.u32 1.1754944e-38, %v1213_v36  ;;  %v5045_v16 = vld [vmem:[#allocation60_spill] sm:$0xff] }
 0x163   : > { %v5047_v36 = vld [vmem:[#allocation8_spill] sm:$0xff] }
 0x164   : > { %v4397_v40 = vadd.f32 %v1235_v12, %v1233_v33  ;;  %v1226_v33 = vand.u32 2147483647, %v4374_v47  ;;  %v1225_v50 = vsel %vm1224_vm5, %v3342_v25, %v1221_v10  ;;  %v1215_v37 = vsel %vm1212_vm6, %v1214_v28, %v1210_v15  ;;  %v5043_v47 = vld [vmem:[#allocation57_spill] sm:$0xff] }
 0x165   : > { %v1240_v5 = vmul.f32 %v3346_v24, %v1215_v37  ;;  %v5044_v25 = vld [vmem:[#allocation5_spill] sm:$0xff]  ;;  %v749_v10 = vadd.f32 %v5046_v38, %v5045_v16  ;;  %v604_v19 = vadd.f32 %v5047_v36, %v4337_v32  ;;  %v653_v48 = vadd.f32 %v5048_v60, %v5043_v47 }
 0x166   : > { %3347 = vtanh.f32 %v4397_v40  ;;  %vm1227_vm7 = vcmp.eq.f32.partialorder %v1226_v33, 8.507059e+37  ;;  %v651_v9 = vadd.f32 %v5044_v25, %v5043_v47 }
 0x167   : > { %v1230_v35 = vsel %vm1227_vm7, %v1229_v29, %v1225_v50 }
 0x16c   : > { %v3348_v11 = vpop.eup %3347 }
 0x16d   : > { %v1241_v62 = vmul.f32 %v3348_v11, %v1230_v35 }
 0x16f   : > { %v3265_v4 = vpack.c.bf16 %v1241_v62, %v1240_v5 }
 0x171   : > { %3266 = vst [vmem:[%s3645_s14] sm:$0xff] %v3265_v4   ;;  %1272 = vmatmul.bf16.vlgmr.msra.gmra.mxu0 %v3265_v4  ;;  %1286 = vmatmul.bf16.vlgmr.msra.gmra.mxu1 %v3265_v4 }
 0x172   : > { %1300 = vmatmul.bf16.vlgmr.msra.gmra.mxu2 %v3265_v4  ;;  %1314 = vmatmul.bf16.vlgmr.msra.gmra.mxu3 %v3265_v4 }
 0x173   : > { %1690 = vmatpush.bf16.msra.mxu0 %v3865_v41  ;;  %1704 = vmatpush.bf16.msra.mxu1 %v3876_v45 }
 0x174   : > { %1718 = vmatpush.bf16.msra.mxu2 %v3893_v51  ;;  %1732 = vmatpush.bf16.msra.mxu3 %v3896_v52 }
 0x177   : > { %1691 = vmatpush.bf16.msra.mxu0 %v3898_v53  ;;  %1705 = vmatpush.bf16.msra.mxu1 %v3907_v56 }
 0x178   : > { %1719 = vmatpush.bf16.msra.mxu2 %v3916_v59  ;;  %1733 = vmatpush.bf16.msra.mxu3 %v3929_v63 }
 0x17b   : > { %1692 = vmatpush.bf16.msra.mxu0 %v3931_v0  ;;  %1706 = vmatpush.bf16.msra.mxu1 %v3940_v3 }
 0x17c   : > { %1720 = vmatpush.bf16.msra.mxu2 %v3952_v7  ;;  %1734 = vmatpush.bf16.msra.mxu3 %v3956_v8 }
 0x17f   : > { %1693 = vmatpush.bf16.msra.mxu0 %v3971_v13  ;;  %1707 = vmatpush.bf16.msra.mxu1 %v3982_v17 }
 0x180   : > { %1721 = vmatpush.bf16.msra.mxu2 %v3993_v21  ;;  %1735 = vmatpush.bf16.msra.mxu3 %v3984_v18 }
 0x183   : > { %1694 = vmatpush.bf16.msra.mxu0 %v4008_v26  ;;  %1708 = vmatpush.bf16.msra.mxu1 %v4019_v30 }
 0x184   : > { %1722 = vmatpush.bf16.msra.mxu2 %v4030_v34  ;;  %1736 = vmatpush.bf16.msra.mxu3 %v4021_v31 }
 0x187   : > { %1695 = vmatpush.bf16.msra.mxu0 %v4045_v39  ;;  %1709 = vmatpush.bf16.msra.mxu1 %v4056_v44 }
 0x188   : > { %1723 = vmatpush.bf16.msra.mxu2 %v4067_v49  ;;  %1737 = vmatpush.bf16.msra.mxu3 %v4058_v46 }
 0x18b   : > { %1696 = vmatpush.bf16.msra.mxu0 %v4082_v58  ;;  %1710 = vmatpush.bf16.msra.mxu1 %v4093_v1 }
 0x18c   : > { %1724 = vmatpush.bf16.msra.mxu2 %v4104_v6  ;;  %1738 = vmatpush.bf16.msra.mxu3 %v4095_v2 }
 0x18f   : > { %1697 = vmatpush.bf16.msra.mxu0 %v4119_v14  ;;  %1711 = vmatpush.bf16.msra.mxu1 %v4130_v20 }
 0x190   : > { %1725 = vmatpush.bf16.msra.mxu2 %v4150_v27  ;;  %1739 = vmatpush.bf16.msra.mxu3 %v4132_v22 }
 0x1ee   : > { %v1273_v43 = vpop.f32.mrf.mxu0  ;;  %v1287_v42 = vpop.f32.mrf.mxu1 }
 0x1ef   : > { %v1320_v57 = vadd.f32 %v1273_v43, %v602_v55  ;;  %v1321_v23 = vadd.f32 %v1287_v42, %v651_v9  ;;  %v5049_v9 = vld [vmem:[#allocation62_spill] sm:$0xff] }
 0x1f0   : > { %v5050_v43 = vld [vmem:[#allocation6_spill] sm:$0xff] }
 0x1f1   : > { %v3129_v54 = vmul.f32 -1.442695, %v1320_v57  ;;  %v3131_v12 = vmul.f32 -1.442695, %v1321_v23  ;;  %v700_v42 = vadd.f32 %v5050_v43, %v5049_v9  ;;  %v5051_v23 = vld [vmem:[#allocation11_spill] sm:$0xff] }
 0x1f3   : > { %3349 = vpow2.f32 %v3129_v54  ;;  %v751_v54 = vadd.f32 %v5051_v23, %v5045_v16  ;;  %v5052_v23 = vld [vmem:[#allocation10_spill] sm:$0xff] }
 0x1f4   : > { %3351 = vpow2.f32 %v3131_v12 }
 0x1f5   : > { %v1315_v33 = vpop.f32.mrf.mxu3  ;;  %v1301_v25 = vpop.f32.mrf.mxu2 }
 0x1f6   : > { %v1323_v15 = vadd.f32 %v1315_v33, %v749_v10  ;;  %v1275_v50 = vpop.f32.mrf.mxu0  ;;  %v1289_v24 = vpop.f32.mrf.mxu1  ;;  %v1322_v38 = vadd.f32 %v1301_v25, %v700_v42 }
 0x1f7   : > { %v1324_v28 = vadd.f32 %v1275_v50, %v604_v19  ;;  %v1325_v29 = vadd.f32 %v1289_v24, %v653_v48 }
 0x1f8   : > { %v3133_v11 = vmul.f32 -1.442695, %v1323_v15 }
 0x1f9   : > { %v3350_v37 = vpop.eup %3349  ;;  %v3130_v35 = vmul.f32 -1.442695, %v1324_v28  ;;  %v3132_v4 = vmul.f32 -1.442695, %v1325_v29 }
 0x1fa   : > { %v3352_v5 = vpop.eup %3351  ;;  %v1334_v62 = vadd.f32 1.0, %v3350_v37  ;;  %3353 = vpow2.f32 %v3133_v11 }
 0x1fb   : > { %v1372_v55 = vadd.f32 1.0, %v3352_v5  ;;  %3355 = vpow2.f32 %v3130_v35 }
 0x1fc   : > { %3357 = vrcp.f32 %v1334_v62  ;;  %v1345_v35 = vand.u32 2147483647, %v1334_v62  ;;  %v1347_v5 = vand.u32 2147483648, %v1334_v62  ;;  %vm1341_vm10 = vweird.f32 %v1334_v62 }
 0x1fd   : > { %3359 = vrcp.f32 %v1372_v55  ;;  %v1317_v57 = vpop.f32.mrf.mxu3  ;;  %v1383_v42 = vand.u32 2147483647, %v1372_v55  ;;  %vm1379_vm11 = vweird.f32 %v1372_v55 }
 0x1fe   : > { %3361 = vpow2.f32 %v3132_v4  ;;  %v1327_v36 = vadd.f32 %v1317_v57, %v751_v54  ;;  %v1385_v4 = vand.u32 2147483648, %v1372_v55  ;;  %v1303_v57 = vpop.f32.mrf.mxu2  ;;  %v702_v54 = vadd.f32 %v5052_v23, %v5049_v9 }
 0x1ff   : > { %3363 = vtanh.f32 %v1322_v38  ;;  %vm1346_vm14 = vcmp.eq.f32.partialorder %v1345_v35, 8.507059e+37  ;;  %vm1384_vm15 = vcmp.eq.f32.partialorder %v1383_v42, 8.507059e+37 }
 0x200   : > { %v3354_v12 = vpop.eup %3353  ;;  %v3134_v11 = vmul.f32 -1.442695, %v1327_v36 }
 0x201   : > { %v3356_v10 = vpop.eup %3355  ;;  %v4455_v60 = vadd.f32 1.0, %v3354_v12 }
 0x202   : > { %v3358_v19 = vpop.eup %3357  ;;  %v4457_v48 = vadd.f32 1.0, %v3356_v10  ;;  %v1348_v10 = vor.u32 1.1754944e-38, %v1347_v5 }
 0x203   : > { %v3360_v33 = vpop.eup %3359  ;;  %v1337_v15 = vmul.f32 %v3358_v19, %v1334_v62  ;;  %vm1342_vm8 = vweird.f32 %v3358_v19 }
 0x204   : > { %v3362_v50 = vpop.eup %3361  ;;  %v1375_v24 = vmul.f32 %v3360_v33, %v1372_v55  ;;  %3365 = vrcp.f32 %v4457_v48  ;;  %vm1380_vm9 = vweird.f32 %v3360_v33  ;;  %vm1343_vm12 = vmor %vm1341_vm10, %vm1342_vm8  ;;  %v1360_v35 = vand.u32 2147483647, %v4457_v48 }
 0x205   : > { %v1338_v28 = vsub.f32 1.0, %v1337_v15  ;;  %v4460_v29 = vadd.f32 1.0, %v3362_v50  ;;  %3367 = vrcp.f32 %v4455_v60  ;;  %v3364_v38 = vpop.eup %3363  ;;  %vm1381_vm13 = vmor %vm1379_vm11, %vm1380_vm9  ;;  %v1386_v50 = vor.u32 1.1754944e-38, %v1385_v4 }
 0x206   : > { %v1376_v37 = vsub.f32 1.0, %v1375_v24  ;;  %v1362_v4 = vand.u32 2147483648, %v4457_v48  ;;  %vm1356_vm1 = vweird.f32 %v4457_v48  ;;  %vm1361_vm5 = vcmp.eq.f32.partialorder %v1360_v35, 8.507059e+37 }
 0x207   : > { %v1339_v25 = vmul.f32 %v3358_v19, %v1338_v28  ;;  %3369 = vrcp.f32 %v4460_v29  ;;  %v1326_v28 = vadd.f32 %v1303_v57, %v702_v54  ;;  %vm1394_vm3 = vweird.f32 %v4460_v29 }
 0x208   : > { %v1377_v43 = vmul.f32 %v3360_v33, %v1376_v37  ;;  %3371 = vpow2.f32 %v3134_v11  ;;  %vm1419_vm9 = vweird.f32 %v4455_v60 }
 0x209   : > { %v1340_v12 = vadd.f32 %v3358_v19, %v1339_v25  ;;  %3373 = vtanh.f32 %v1326_v28 }
 0x20a   : > { %v1378_v36 = vadd.f32 %v3360_v33, %v1377_v43  ;;  %v3366_v15 = vpop.eup %3365 }
 0x20b   : > { %v1344_v24 = vsel %vm1343_vm12, %v3358_v19, %v1340_v12  ;;  %v4466_v37 = vpop.eup %3367  ;;  %v1352_v25 = vmul.f32 %v3366_v15, %v4457_v48  ;;  %vm1357_vm0 = vweird.f32 %v3366_v15  ;;  %v1398_v12 = vand.u32 2147483647, %v4460_v29 }
 0x20c   : > { %v1349_v16 = vsel %vm1346_vm14, %v1348_v10, %v1344_v24  ;;  %v1382_v47 = vsel %vm1381_vm13, %v3360_v33, %v1378_v36  ;;  %v1415_v19 = vmul.f32 %v4466_v37, %v4455_v60  ;;  %vm1358_vm4 = vmor %vm1356_vm1, %vm1357_vm0  ;;  %vm1420_vm8 = vweird.f32 %v4466_v37 }
 0x20d   : > { %v3370_v62 = vpop.eup %3369  ;;  %v1387_v11 = vsel %vm1384_vm15, %v1386_v50, %v1382_v47  ;;  %v1446_v23 = vmul.f32 %v3364_v38, %v1349_v16  ;;  %v1353_v5 = vsub.f32 1.0, %v1352_v25  ;;  %v1400_v47 = vand.u32 2147483648, %v4460_v29  ;;  %vm1421_vm11 = vmor %vm1419_vm9, %vm1420_vm8 }
 0x20e   : > { %v1444_v55 = vmul.f32 %v1387_v11, %v4383_v61  ;;  %v1390_v43 = vmul.f32 %v3370_v62, %v4460_v29  ;;  %v3372_v9 = vpop.eup %3371  ;;  %vm1395_vm2 = vweird.f32 %v3370_v62  ;;  %v1363_v38 = vor.u32 1.1754944e-38, %v1362_v4 }
 0x20f   : > { %v1354_v57 = vmul.f32 %v3366_v15, %v1353_v5  ;;  %v1413_v61 = vadd.f32 1.0, %v3372_v9  ;;  %v1416_v10 = vsub.f32 1.0, %v1415_v19  ;;  %v3374_v24 = vpop.eup %3373  ;;  %vm1396_vm6 = vmor %vm1394_vm3, %vm1395_vm2  ;;  %v1401_v28 = vor.u32 1.1754944e-38, %v1400_v47 }
 0x210   : > { %v4475_v33 = vadd.f32 %v1446_v23, %v1444_v55  ;;  %v1391_v42 = vsub.f32 1.0, %v1390_v43  ;;  %vm1399_vm7 = vcmp.eq.f32.partialorder %v1398_v12, 8.507059e+37  ;;  %v1425_v19 = vand.u32 2147483648, %v4455_v60 }
 0x211   : > { %v1355_v54 = vadd.f32 %v3366_v15, %v1354_v57  ;;  %3375 = vrcp.f32 %v1413_v61  ;;  %v1417_v23 = vmul.f32 %v4466_v37, %v1416_v10  ;;  %v1440_v35 = vand.u32 2147483648, %v1413_v61 }
 0x212   : > { %v1392_v16 = vmul.f32 %v3370_v62, %v1391_v42  ;;  %3377 = vtanh.f32 %v4475_v33  ;;  %v1438_v42 = vand.u32 2147483647, %v1413_v61  ;;  %vm1434_vm12 = vweird.f32 %v1413_v61 }
 0x213   : > { %v1359_v36 = vsel %vm1358_vm4, %v3366_v15, %v1355_v54  ;;  %v1418_v15 = vadd.f32 %v4466_v37, %v1417_v23  ;;  %v1426_v54 = vor.u32 1.1754944e-38, %v1425_v19  ;;  %v1441_v12 = vor.u32 1.1754944e-38, %v1440_v35  ;;  %v5057_v19 = vld [vmem:[#allocation15_spill] sm:$0xff] }
 0x214   : > { %v1393_v50 = vadd.f32 %v3370_v62, %v1392_v16  ;;  %v1364_v25 = vsel %vm1361_vm5, %v1363_v38, %v1359_v36  ;;  %vm1439_vm15 = vcmp.eq.f32.partialorder %v1438_v42, 8.507059e+37  ;;  %v5059_v42 = vld [vmem:[#allocation17_spill] sm:$0xff] }
 0x215   : > { %v1447_v9 = vmul.f32 %v3374_v24, %v1364_v25  ;;  %v1422_v57 = vsel %vm1421_vm11, %v4466_v37, %v1418_v15  ;;  %v5053_v37 = vld [vmem:[#allocation12_spill] sm:$0xff]  ;;  %v5054_v25 = vld [vmem:[#allocation57_spill] sm:$0xff] }
 0x216   : > { %v1397_v48 = vsel %vm1396_vm6, %v3370_v62, %v1393_v50 }
 0x217   : > { %v1402_v11 = vsel %vm1399_vm7, %v1401_v28, %v1397_v48  ;;  %v3376_v29 = vpop.eup %3375  ;;  %v5055_v48 = vld [vmem:[#allocation13_spill] sm:$0xff] }
 0x218   : > { %v1445_v55 = vmul.f32 %v1402_v11, %v4397_v40  ;;  %v1430_v43 = vmul.f32 %v3376_v29, %v1413_v61  ;;  %v1423_v40 = vand.u32 2147483647, %v4455_v60  ;;  %vm1435_vm10 = vweird.f32 %v3376_v29  ;;  %v3378_v16 = vpop.eup %3377 }
 0x219   : > { %vm1436_vm13 = vmor %vm1434_vm12, %vm1435_vm10  ;;  %v607_v61 = vadd.f32 %v5053_v37, %v4337_v32 }
 0x21a   : > { %v4483_v5 = vadd.f32 %v1447_v9, %v1445_v55  ;;  %v1431_v62 = vsub.f32 1.0, %v1430_v43  ;;  %vm1424_vm14 = vcmp.eq.f32.partialorder %v1423_v40, 8.507059e+37  ;;  %v656_v9 = vadd.f32 %v5055_v48, %v5054_v25  ;;  %v5058_v40 = vld [vmem:[#allocation16_spill] sm:$0xff] }
 0x21b   : > { %v1427_v36 = vsel %vm1424_vm14, %v1426_v54, %v1422_v57  ;;  %v658_v57 = vadd.f32 %v5059_v42, %v5054_v25 }
 0x21c   : > { %3379 = vtanh.f32 %v4483_v5  ;;  %v1432_v4 = vmul.f32 %v3376_v29, %v1431_v62  ;;  %v1452_v60 = vmul.f32 %v3378_v16, %v1427_v36  ;;  %v5056_v62 = vld [vmem:[#allocation60_spill] sm:$0xff] }
 0x21d   : > { %v754_v35 = vadd.f32 %v5057_v19, %v5056_v62 }
 0x21e   : > { %v1433_v47 = vadd.f32 %v3376_v29, %v1432_v4  ;;  %v609_v4 = vadd.f32 %v5058_v40, %v4337_v32 }
 0x220   : > { %v1437_v10 = vsel %vm1436_vm13, %v3376_v29, %v1433_v47 }
 0x221   : > { %v1442_v50 = vsel %vm1439_vm15, %v1441_v12, %v1437_v10 }
 0x222   : > { %v3380_v38 = vpop.eup %3379 }
 0x223   : > { %v1453_v24 = vmul.f32 %v3380_v38, %v1442_v50 }
 0x225   : > { %v3270_v28 = vpack.c.bf16 %v1453_v24, %v1452_v60 }
 0x227   : > { %3302 = vst [vmem:[%s3645_s14 + $0x8] sm:$0xff] %v3270_v28   ;;  %1485 = vmatmul.bf16.vlgmr.msrb.gmra.mxu0 %v3270_v28  ;;  %1499 = vmatmul.bf16.vlgmr.msrb.gmra.mxu1 %v3270_v28 }
 0x228   : > { %1513 = vmatmul.bf16.vlgmr.msrb.gmra.mxu2 %v3270_v28  ;;  %1527 = vmatmul.bf16.vlgmr.msrb.gmra.mxu3 %v3270_v28 }
 0x229   : > { %1903 = vmatpush.bf16.msrb.mxu0 %v3865_v41  ;;  %1917 = vmatpush.bf16.msrb.mxu1 %v3876_v45 }
 0x22a   : > { %1931 = vmatpush.bf16.msrb.mxu2 %v3893_v51  ;;  %1945 = vmatpush.bf16.msrb.mxu3 %v3896_v52 }
 0x22d   : > { %1904 = vmatpush.bf16.msrb.mxu0 %v3898_v53  ;;  %1918 = vmatpush.bf16.msrb.mxu1 %v3907_v56 }
 0x22e   : > { %1932 = vmatpush.bf16.msrb.mxu2 %v3916_v59  ;;  %1946 = vmatpush.bf16.msrb.mxu3 %v3929_v63 }
 0x231   : > { %1905 = vmatpush.bf16.msrb.mxu0 %v3931_v0  ;;  %1919 = vmatpush.bf16.msrb.mxu1 %v3940_v3 }
 0x232   : > { %1933 = vmatpush.bf16.msrb.mxu2 %v3952_v7  ;;  %1947 = vmatpush.bf16.msrb.mxu3 %v3956_v8 }
 0x235   : > { %1906 = vmatpush.bf16.msrb.mxu0 %v3971_v13  ;;  %1920 = vmatpush.bf16.msrb.mxu1 %v3982_v17 }
 0x236   : > { %1934 = vmatpush.bf16.msrb.mxu2 %v3993_v21  ;;  %1948 = vmatpush.bf16.msrb.mxu3 %v3984_v18 }
 0x239   : > { %1907 = vmatpush.bf16.msrb.mxu0 %v4008_v26  ;;  %1921 = vmatpush.bf16.msrb.mxu1 %v4019_v30 }
 0x23a   : > { %1935 = vmatpush.bf16.msrb.mxu2 %v4030_v34  ;;  %1949 = vmatpush.bf16.msrb.mxu3 %v4021_v31 }
 0x23d   : > { %1908 = vmatpush.bf16.msrb.mxu0 %v4045_v39  ;;  %1922 = vmatpush.bf16.msrb.mxu1 %v4056_v44 }
 0x23e   : > { %1936 = vmatpush.bf16.msrb.mxu2 %v4067_v49  ;;  %1950 = vmatpush.bf16.msrb.mxu3 %v4058_v46 }
 0x241   : > { %1909 = vmatpush.bf16.msrb.mxu0 %v4082_v58  ;;  %1923 = vmatpush.bf16.msrb.mxu1 %v4093_v1 }
 0x242   : > { %1937 = vmatpush.bf16.msrb.mxu2 %v4104_v6  ;;  %1951 = vmatpush.bf16.msrb.mxu3 %v4095_v2 }
 0x245   : > { %1910 = vmatpush.bf16.msrb.mxu0 %v4119_v14  ;;  %1924 = vmatpush.bf16.msrb.mxu1 %v4130_v20 }
 0x246   : > { %1938 = vmatpush.bf16.msrb.mxu2 %v4150_v27  ;;  %1952 = vmatpush.bf16.msrb.mxu3 %v4132_v22 }
 0x2a4   : > { %v1486_v11 = vpop.f32.mrf.mxu0  ;;  %v1500_v23 = vpop.f32.mrf.mxu1 }
 0x2a5   : > { %v1533_v55 = vadd.f32 %v1486_v11, %v607_v61  ;;  %v1534_v29 = vadd.f32 %v1500_v23, %v656_v9  ;;  %v5060_v9 = vld [vmem:[#allocation62_spill] sm:$0xff] }
 0x2a6   : > { %v5061_v11 = vld [vmem:[#allocation14_spill] sm:$0xff] }
 0x2a7   : > { %v3137_v43 = vmul.f32 -1.442695, %v1533_v55  ;;  %v3139_v15 = vmul.f32 -1.442695, %v1534_v29  ;;  %v705_v23 = vadd.f32 %v5061_v11, %v5060_v9  ;;  %v5062_v29 = vld [vmem:[#allocation19_spill] sm:$0xff] }
 0x2a9   : > { %3381 = vpow2.f32 %v3137_v43  ;;  %v756_v43 = vadd.f32 %v5062_v29, %v5056_v62  ;;  %v5063_v29 = vld [vmem:[#allocation18_spill] sm:$0xff] }
 0x2aa   : > { %3383 = vpow2.f32 %v3139_v15 }
 0x2ab   : > { %v1528_v47 = vpop.f32.mrf.mxu3  ;;  %v1514_v48 = vpop.f32.mrf.mxu2 }
 0x2ac   : > { %v1536_v16 = vadd.f32 %v1528_v47, %v754_v35  ;;  %v1488_v54 = vpop.f32.mrf.mxu0  ;;  %v1502_v12 = vpop.f32.mrf.mxu1  ;;  %v1535_v19 = vadd.f32 %v1514_v48, %v705_v23 }
 0x2ad   : > { %v1537_v38 = vadd.f32 %v1488_v54, %v609_v4  ;;  %v1538_v10 = vadd.f32 %v1502_v12, %v658_v57 }
 0x2ae   : > { %v3141_v36 = vmul.f32 -1.442695, %v1536_v16 }
 0x2af   : > { %v3382_v50 = vpop.eup %3381  ;;  %v3138_v60 = vmul.f32 -1.442695, %v1537_v38  ;;  %v3140_v37 = vmul.f32 -1.442695, %v1538_v10 }
 0x2b0   : > { %v3384_v24 = vpop.eup %3383  ;;  %v1547_v28 = vadd.f32 1.0, %v3382_v50  ;;  %3385 = vpow2.f32 %v3141_v36 }
 0x2b1   : > { %v1585_v61 = vadd.f32 1.0, %v3384_v24  ;;  %3387 = vpow2.f32 %v3138_v60 }
 0x2b2   : > { %3389 = vrcp.f32 %v1547_v28  ;;  %v1558_v60 = vand.u32 2147483647, %v1547_v28  ;;  %v1560_v24 = vand.u32 2147483648, %v1547_v28  ;;  %vm1554_vm2 = vweird.f32 %v1547_v28 }
 0x2b3   : > { %3391 = vrcp.f32 %v1585_v61  ;;  %v1530_v55 = vpop.f32.mrf.mxu3  ;;  %v1596_v23 = vand.u32 2147483647, %v1585_v61  ;;  %vm1592_vm3 = vweird.f32 %v1585_v61 }
 0x2b4   : > { %3393 = vpow2.f32 %v3140_v37  ;;  %v1540_v40 = vadd.f32 %v1530_v55, %v756_v43  ;;  %v1598_v37 = vand.u32 2147483648, %v1585_v61  ;;  %v1516_v55 = vpop.f32.mrf.mxu2  ;;  %v707_v43 = vadd.f32 %v5063_v29, %v5060_v9 }
 0x2b5   : > { %3395 = vtanh.f32 %v1535_v19  ;;  %vm1559_vm6 = vcmp.eq.f32.partialorder %v1558_v60, 8.507059e+37  ;;  %vm1597_vm7 = vcmp.eq.f32.partialorder %v1596_v23, 8.507059e+37 }
 0x2b6   : > { %v3386_v15 = vpop.eup %3385  ;;  %v3142_v36 = vmul.f32 -1.442695, %v1540_v40 }
 0x2b7   : > { %v3388_v35 = vpop.eup %3387  ;;  %v4540_v42 = vadd.f32 1.0, %v3386_v15 }
 0x2b8   : > { %v3390_v4 = vpop.eup %3389  ;;  %v4542_v57 = vadd.f32 1.0, %v3388_v35  ;;  %v1561_v35 = vor.u32 1.1754944e-38, %v1560_v24 }
 0x2b9   : > { %v3392_v47 = vpop.eup %3391  ;;  %v1550_v16 = vmul.f32 %v3390_v4, %v1547_v28  ;;  %vm1555_vm0 = vweird.f32 %v3390_v4 }
 0x2ba   : > { %v3394_v54 = vpop.eup %3393  ;;  %v1588_v12 = vmul.f32 %v3392_v47, %v1585_v61  ;;  %3397 = vrcp.f32 %v4542_v57  ;;  %vm1593_vm1 = vweird.f32 %v3392_v47  ;;  %vm1556_vm4 = vmor %vm1554_vm2, %vm1555_vm0  ;;  %v1573_v60 = vand.u32 2147483647, %v4542_v57 }
 0x2bb   : > { %v1551_v38 = vsub.f32 1.0, %v1550_v16  ;;  %v4545_v10 = vadd.f32 1.0, %v3394_v54  ;;  %3399 = vrcp.f32 %v4540_v42  ;;  %v3396_v19 = vpop.eup %3395  ;;  %vm1594_vm5 = vmor %vm1592_vm3, %vm1593_vm1  ;;  %v1599_v54 = vor.u32 1.1754944e-38, %v1598_v37 }
 0x2bc   : > { %v1589_v50 = vsub.f32 1.0, %v1588_v12  ;;  %v1575_v37 = vand.u32 2147483648, %v4542_v57  ;;  %vm1569_vm9 = vweird.f32 %v4542_v57  ;;  %vm1574_vm13 = vcmp.eq.f32.partialorder %v1573_v60, 8.507059e+37 }
 0x2bd   : > { %v1552_v48 = vmul.f32 %v3390_v4, %v1551_v38  ;;  %3401 = vrcp.f32 %v4545_v10  ;;  %v1539_v38 = vadd.f32 %v1516_v55, %v707_v43  ;;  %vm1607_vm11 = vweird.f32 %v4545_v10 }
 0x2be   : > { %v1590_v11 = vmul.f32 %v3392_v47, %v1589_v50  ;;  %3403 = vpow2.f32 %v3142_v36  ;;  %vm1632_vm1 = vweird.f32 %v4540_v42 }
 0x2bf   : > { %v1553_v15 = vadd.f32 %v3390_v4, %v1552_v48  ;;  %3405 = vtanh.f32 %v1539_v38 }
 0x2c0   : > { %v1591_v40 = vadd.f32 %v3392_v47, %v1590_v11  ;;  %v3398_v16 = vpop.eup %3397 }
 0x2c1   : > { %v1557_v12 = vsel %vm1556_vm4, %v3390_v4, %v1553_v15  ;;  %v4551_v50 = vpop.eup %3399  ;;  %v1565_v48 = vmul.f32 %v3398_v16, %v4542_v57  ;;  %vm1570_vm8 = vweird.f32 %v3398_v16  ;;  %v1611_v15 = vand.u32 2147483647, %v4545_v10 }
 0x2c2   : > { %v1562_v62 = vsel %vm1559_vm6, %v1561_v35, %v1557_v12  ;;  %v1595_v25 = vsel %vm1594_vm5, %v3392_v47, %v1591_v40  ;;  %v1628_v4 = vmul.f32 %v4551_v50, %v4540_v42  ;;  %vm1571_vm12 = vmor %vm1569_vm9, %vm1570_vm8  ;;  %vm1633_vm0 = vweird.f32 %v4551_v50 }
 0x2c3   : > { %v3402_v28 = vpop.eup %3401  ;;  %v1600_v36 = vsel %vm1597_vm7, %v1599_v54, %v1595_v25  ;;  %v1659_v29 = vmul.f32 %v3396_v19, %v1562_v62  ;;  %v1566_v24 = vsub.f32 1.0, %v1565_v48  ;;  %v1613_v25 = vand.u32 2147483648, %v4545_v10  ;;  %vm1634_vm3 = vmor %vm1632_vm1, %vm1633_vm0 }
 0x2c4   : > { %v1657_v61 = vmul.f32 %v1600_v36, %v4475_v33  ;;  %v1603_v11 = vmul.f32 %v3402_v28, %v4545_v10  ;;  %v3404_v9 = vpop.eup %3403  ;;  %vm1608_vm10 = vweird.f32 %v3402_v28  ;;  %v1576_v19 = vor.u32 1.1754944e-38, %v1575_v37 }
 0x2c5   : > { %v1567_v55 = vmul.f32 %v3398_v16, %v1566_v24  ;;  %v1626_v33 = vadd.f32 1.0, %v3404_v9  ;;  %v1629_v35 = vsub.f32 1.0, %v1628_v4  ;;  %v3406_v12 = vpop.eup %3405  ;;  %vm1609_vm14 = vmor %vm1607_vm11, %vm1608_vm10  ;;  %v1614_v38 = vor.u32 1.1754944e-38, %v1613_v25 }
 0x2c6   : > { %v4560_v47 = vadd.f32 %v1659_v29, %v1657_v61  ;;  %v1604_v23 = vsub.f32 1.0, %v1603_v11  ;;  %vm1612_vm15 = vcmp.eq.f32.partialorder %v1611_v15, 8.507059e+37  ;;  %v1638_v4 = vand.u32 2147483648, %v4540_v42 }
 0x2c7   : > { %v1568_v43 = vadd.f32 %v3398_v16, %v1567_v55  ;;  %3407 = vrcp.f32 %v1626_v33  ;;  %v1630_v29 = vmul.f32 %v4551_v50, %v1629_v35  ;;  %v1653_v60 = vand.u32 2147483648, %v1626_v33 }
 0x2c8   : > { %v1605_v62 = vmul.f32 %v3402_v28, %v1604_v23  ;;  %3409 = vtanh.f32 %v4560_v47  ;;  %v1651_v23 = vand.u32 2147483647, %v1626_v33  ;;  %vm1647_vm4 = vweird.f32 %v1626_v33 }
 0x2c9   : > { %v1572_v40 = vsel %vm1571_vm12, %v3398_v16, %v1568_v43  ;;  %v1631_v16 = vadd.f32 %v4551_v50, %v1630_v29  ;;  %v1639_v43 = vor.u32 1.1754944e-38, %v1638_v4  ;;  %v1654_v15 = vor.u32 1.1754944e-38, %v1653_v60  ;;  %v5068_v4 = vld [vmem:[#allocation23_spill] sm:$0xff] }
 0x2ca   : > { %v1606_v54 = vadd.f32 %v3402_v28, %v1605_v62  ;;  %v1577_v48 = vsel %vm1574_vm13, %v1576_v19, %v1572_v40  ;;  %vm1652_vm7 = vcmp.eq.f32.partialorder %v1651_v23, 8.507059e+37  ;;  %v5070_v23 = vld [vmem:[#allocation25_spill] sm:$0xff] }
 0x2cb   : > { %v1660_v9 = vmul.f32 %v3406_v12, %v1577_v48  ;;  %v1635_v55 = vsel %vm1634_vm3, %v4551_v50, %v1631_v16  ;;  %v5064_v50 = vld [vmem:[#allocation20_spill] sm:$0xff]  ;;  %v5065_v48 = vld [vmem:[#allocation57_spill] sm:$0xff] }
 0x2cc   : > { %v1610_v57 = vsel %vm1609_vm14, %v3402_v28, %v1606_v54 }
 0x2cd   : > { %v1615_v36 = vsel %vm1612_vm15, %v1614_v38, %v1610_v57  ;;  %v3408_v10 = vpop.eup %3407  ;;  %v5066_v57 = vld [vmem:[#allocation21_spill] sm:$0xff] }
 0x2ce   : > { %v1658_v61 = vmul.f32 %v1615_v36, %v4483_v5  ;;  %v1643_v11 = vmul.f32 %v3408_v10, %v1626_v33  ;;  %v1636_v5 = vand.u32 2147483647, %v4540_v42  ;;  %vm1648_vm2 = vweird.f32 %v3408_v10  ;;  %v3410_v62 = vpop.eup %3409 }
 0x2cf   : > { %vm1649_vm5 = vmor %vm1647_vm4, %vm1648_vm2  ;;  %v612_v33 = vadd.f32 %v5064_v50, %v4337_v32 }
 0x2d0   : > { %v4568_v24 = vadd.f32 %v1660_v9, %v1658_v61  ;;  %v1644_v28 = vsub.f32 1.0, %v1643_v11  ;;  %vm1637_vm6 = vcmp.eq.f32.partialorder %v1636_v5, 8.507059e+37  ;;  %v661_v9 = vadd.f32 %v5066_v57, %v5065_v48  ;;  %v5069_v5 = vld [vmem:[#allocation24_spill] sm:$0xff] }
 0x2d1   : > { %v1640_v40 = vsel %vm1637_vm6, %v1639_v43, %v1635_v55  ;;  %v663_v55 = vadd.f32 %v5070_v23, %v5065_v48 }
 0x2d2   : > { %3411 = vtanh.f32 %v4568_v24  ;;  %v1645_v37 = vmul.f32 %v3408_v10, %v1644_v28  ;;  %v1665_v42 = vmul.f32 %v3410_v62, %v1640_v40  ;;  %v5067_v28 = vld [vmem:[#allocation60_spill] sm:$0xff] }
 0x2d3   : > { %v759_v60 = vadd.f32 %v5068_v4, %v5067_v28 }
 0x2d4   : > { %v1646_v25 = vadd.f32 %v3408_v10, %v1645_v37  ;;  %v614_v37 = vadd.f32 %v5069_v5, %v4337_v32 }
 0x2d6   : > { %v1650_v35 = vsel %vm1649_vm5, %v3408_v10, %v1646_v25 }
 0x2d7   : > { %v1655_v54 = vsel %vm1652_vm7, %v1654_v15, %v1650_v35 }
 0x2d8   : > { %v3412_v19 = vpop.eup %3411 }
 0x2d9   : > { %v1666_v12 = vmul.f32 %v3412_v19, %v1655_v54 }
 0x2db   : > { %v3275_v38 = vpack.c.bf16 %v1666_v12, %v1665_v42 }
 0x2dd   : > { %3303 = vst [vmem:[%s3645_s14 + $0x10] sm:$0xff] %v3275_v38   ;;  %1698 = vmatmul.bf16.vlgmr.msra.gmra.mxu0 %v3275_v38  ;;  %1712 = vmatmul.bf16.vlgmr.msra.gmra.mxu1 %v3275_v38 }
 0x2de   : > { %1726 = vmatmul.bf16.vlgmr.msra.gmra.mxu2 %v3275_v38  ;;  %1740 = vmatmul.bf16.vlgmr.msra.gmra.mxu3 %v3275_v38 }
 0x2df   : > { %2116 = vmatpush.bf16.msra.mxu0 %v3865_v41  ;;  %2130 = vmatpush.bf16.msra.mxu1 %v3876_v45 }
 0x2e0   : > { %2144 = vmatpush.bf16.msra.mxu2 %v3893_v51  ;;  %2158 = vmatpush.bf16.msra.mxu3 %v3896_v52 }
 0x2e3   : > { %2117 = vmatpush.bf16.msra.mxu0 %v3898_v53  ;;  %2131 = vmatpush.bf16.msra.mxu1 %v3907_v56 }
 0x2e4   : > { %2145 = vmatpush.bf16.msra.mxu2 %v3916_v59  ;;  %2159 = vmatpush.bf16.msra.mxu3 %v3929_v63 }
 0x2e7   : > { %2118 = vmatpush.bf16.msra.mxu0 %v3931_v0  ;;  %2132 = vmatpush.bf16.msra.mxu1 %v3940_v3 }
 0x2e8   : > { %2146 = vmatpush.bf16.msra.mxu2 %v3952_v7  ;;  %2160 = vmatpush.bf16.msra.mxu3 %v3956_v8 }
 0x2eb   : > { %2119 = vmatpush.bf16.msra.mxu0 %v3971_v13  ;;  %2133 = vmatpush.bf16.msra.mxu1 %v3982_v17 }
 0x2ec   : > { %2147 = vmatpush.bf16.msra.mxu2 %v3993_v21  ;;  %2161 = vmatpush.bf16.msra.mxu3 %v3984_v18 }
 0x2ef   : > { %2120 = vmatpush.bf16.msra.mxu0 %v4008_v26  ;;  %2134 = vmatpush.bf16.msra.mxu1 %v4019_v30 }
 0x2f0   : > { %2148 = vmatpush.bf16.msra.mxu2 %v4030_v34  ;;  %2162 = vmatpush.bf16.msra.mxu3 %v4021_v31 }
 0x2f3   : > { %2121 = vmatpush.bf16.msra.mxu0 %v4045_v39  ;;  %2135 = vmatpush.bf16.msra.mxu1 %v4056_v44 }
 0x2f4   : > { %2149 = vmatpush.bf16.msra.mxu2 %v4067_v49  ;;  %2163 = vmatpush.bf16.msra.mxu3 %v4058_v46 }
 0x2f7   : > { %2122 = vmatpush.bf16.msra.mxu0 %v4082_v58  ;;  %2136 = vmatpush.bf16.msra.mxu1 %v4093_v1 }
 0x2f8   : > { %2150 = vmatpush.bf16.msra.mxu2 %v4104_v6  ;;  %2164 = vmatpush.bf16.msra.mxu3 %v4095_v2 }
 0x2fb   : > { %2123 = vmatpush.bf16.msra.mxu0 %v4119_v14  ;;  %2137 = vmatpush.bf16.msra.mxu1 %v4130_v20 }
 0x2fc   : > { %2151 = vmatpush.bf16.msra.mxu2 %v4150_v27  ;;  %2165 = vmatpush.bf16.msra.mxu3 %v4132_v22 }
 0x35a   : > { %v1699_v36 = vpop.f32.mrf.mxu0  ;;  %v1713_v29 = vpop.f32.mrf.mxu1 }
 0x35b   : > { %v1746_v61 = vadd.f32 %v1699_v36, %v612_v33  ;;  %v1747_v10 = vadd.f32 %v1713_v29, %v661_v9  ;;  %v5071_v9 = vld [vmem:[#allocation62_spill] sm:$0xff] }
 0x35c   : > { %v5072_v36 = vld [vmem:[#allocation22_spill] sm:$0xff] }
 0x35d   : > { %v3145_v11 = vmul.f32 -1.442695, %v1746_v61  ;;  %v3147_v16 = vmul.f32 -1.442695, %v1747_v10  ;;  %v710_v29 = vadd.f32 %v5072_v36, %v5071_v9  ;;  %v5073_v10 = vld [vmem:[#allocation27_spill] sm:$0xff] }
 0x35f   : > { %3413 = vpow2.f32 %v3145_v11  ;;  %v761_v11 = vadd.f32 %v5073_v10, %v5067_v28  ;;  %v5074_v10 = vld [vmem:[#allocation26_spill] sm:$0xff] }
 0x360   : > { %3415 = vpow2.f32 %v3147_v16 }
 0x361   : > { %v1741_v25 = vpop.f32.mrf.mxu3  ;;  %v1727_v57 = vpop.f32.mrf.mxu2 }
 0x362   : > { %v1749_v62 = vadd.f32 %v1741_v25, %v759_v60  ;;  %v1701_v43 = vpop.f32.mrf.mxu0  ;;  %v1715_v15 = vpop.f32.mrf.mxu1  ;;  %v1748_v4 = vadd.f32 %v1727_v57, %v710_v29 }
 0x363   : > { %v1750_v19 = vadd.f32 %v1701_v43, %v614_v37  ;;  %v1751_v35 = vadd.f32 %v1715_v15, %v663_v55 }
 0x364   : > { %v3149_v40 = vmul.f32 -1.442695, %v1749_v62 }
 0x365   : > { %v3414_v54 = vpop.eup %3413  ;;  %v3146_v42 = vmul.f32 -1.442695, %v1750_v19  ;;  %v3148_v50 = vmul.f32 -1.442695, %v1751_v35 }
 0x366   : > { %v3416_v12 = vpop.eup %3415  ;;  %v1760_v38 = vadd.f32 1.0, %v3414_v54  ;;  %3417 = vpow2.f32 %v3149_v40 }
 0x367   : > { %v1798_v33 = vadd.f32 1.0, %v3416_v12  ;;  %3419 = vpow2.f32 %v3146_v42 }
 0x368   : > { %3421 = vrcp.f32 %v1760_v38  ;;  %v1771_v42 = vand.u32 2147483647, %v1760_v38  ;;  %v1773_v12 = vand.u32 2147483648, %v1760_v38  ;;  %vm1767_vm10 = vweird.f32 %v1760_v38 }
 0x369   : > { %3423 = vrcp.f32 %v1798_v33  ;;  %v1743_v61 = vpop.f32.mrf.mxu3  ;;  %v1809_v29 = vand.u32 2147483647, %v1798_v33  ;;  %vm1805_vm11 = vweird.f32 %v1798_v33 }
 0x36a   : > { %3425 = vpow2.f32 %v3148_v50  ;;  %v1753_v5 = vadd.f32 %v1743_v61, %v761_v11  ;;  %v1811_v50 = vand.u32 2147483648, %v1798_v33  ;;  %v1729_v61 = vpop.f32.mrf.mxu2  ;;  %v712_v11 = vadd.f32 %v5074_v10, %v5071_v9 }
 0x36b   : > { %3427 = vtanh.f32 %v1748_v4  ;;  %vm1772_vm14 = vcmp.eq.f32.partialorder %v1771_v42, 8.507059e+37  ;;  %vm1810_vm15 = vcmp.eq.f32.partialorder %v1809_v29, 8.507059e+37 }
 0x36c   : > { %v3418_v16 = vpop.eup %3417  ;;  %v3150_v40 = vmul.f32 -1.442695, %v1753_v5 }
 0x36d   : > { %v3420_v60 = vpop.eup %3419  ;;  %v4625_v23 = vadd.f32 1.0, %v3418_v16 }
 0x36e   : > { %v3422_v37 = vpop.eup %3421  ;;  %v4627_v55 = vadd.f32 1.0, %v3420_v60  ;;  %v1774_v60 = vor.u32 1.1754944e-38, %v1773_v12 }
 0x36f   : > { %v3424_v25 = vpop.eup %3423  ;;  %v1763_v62 = vmul.f32 %v3422_v37, %v1760_v38  ;;  %vm1768_vm8 = vweird.f32 %v3422_v37 }
 0x370   : > { %v3426_v43 = vpop.eup %3425  ;;  %v1801_v15 = vmul.f32 %v3424_v25, %v1798_v33  ;;  %3429 = vrcp.f32 %v4627_v55  ;;  %vm1806_vm9 = vweird.f32 %v3424_v25  ;;  %vm1769_vm12 = vmor %vm1767_vm10, %vm1768_vm8  ;;  %v1786_v42 = vand.u32 2147483647, %v4627_v55 }
 0x371   : > { %v1764_v19 = vsub.f32 1.0, %v1763_v62  ;;  %v4630_v35 = vadd.f32 1.0, %v3426_v43  ;;  %3431 = vrcp.f32 %v4625_v23  ;;  %v3428_v4 = vpop.eup %3427  ;;  %vm1807_vm13 = vmor %vm1805_vm11, %vm1806_vm9  ;;  %v1812_v43 = vor.u32 1.1754944e-38, %v1811_v50 }
 0x372   : > { %v1802_v54 = vsub.f32 1.0, %v1801_v15  ;;  %v1788_v50 = vand.u32 2147483648, %v4627_v55  ;;  %vm1782_vm1 = vweird.f32 %v4627_v55  ;;  %vm1787_vm5 = vcmp.eq.f32.partialorder %v1786_v42, 8.507059e+37 }
 0x373   : > { %v1765_v57 = vmul.f32 %v3422_v37, %v1764_v19  ;;  %3433 = vrcp.f32 %v4630_v35  ;;  %v1752_v19 = vadd.f32 %v1729_v61, %v712_v11  ;;  %vm1820_vm3 = vweird.f32 %v4630_v35 }
 0x374   : > { %v1803_v36 = vmul.f32 %v3424_v25, %v1802_v54  ;;  %3435 = vpow2.f32 %v3150_v40  ;;  %vm1845_vm9 = vweird.f32 %v4625_v23 }
 0x375   : > { %v1766_v16 = vadd.f32 %v3422_v37, %v1765_v57  ;;  %3437 = vtanh.f32 %v1752_v19 }
 0x376   : > { %v1804_v5 = vadd.f32 %v3424_v25, %v1803_v36  ;;  %v3430_v62 = vpop.eup %3429 }
 0x377   : > { %v1770_v15 = vsel %vm1769_vm12, %v3422_v37, %v1766_v16  ;;  %v4636_v54 = vpop.eup %3431  ;;  %v1778_v57 = vmul.f32 %v3430_v62, %v4627_v55  ;;  %vm1783_vm0 = vweird.f32 %v3430_v62  ;;  %v1824_v16 = vand.u32 2147483647, %v4630_v35 }
 0x378   : > { %v1775_v28 = vsel %vm1772_vm14, %v1774_v60, %v1770_v15  ;;  %v1808_v48 = vsel %vm1807_vm13, %v3424_v25, %v1804_v5  ;;  %v1841_v37 = vmul.f32 %v4636_v54, %v4625_v23  ;;  %vm1784_vm4 = vmor %vm1782_vm1, %vm1783_vm0  ;;  %vm1846_vm8 = vweird.f32 %v4636_v54 }
 0x379   : > { %v3434_v38 = vpop.eup %3433  ;;  %v1813_v40 = vsel %vm1810_vm15, %v1812_v43, %v1808_v48  ;;  %v1872_v10 = vmul.f32 %v3428_v4, %v1775_v28  ;;  %v1779_v12 = vsub.f32 1.0, %v1778_v57  ;;  %v1826_v48 = vand.u32 2147483648, %v4630_v35  ;;  %vm1847_vm11 = vmor %vm1845_vm9, %vm1846_vm8 }
 0x37a   : > { %v1870_v33 = vmul.f32 %v1813_v40, %v4560_v47  ;;  %v1816_v36 = vmul.f32 %v3434_v38, %v4630_v35  ;;  %v3436_v9 = vpop.eup %3435  ;;  %vm1821_vm2 = vweird.f32 %v3434_v38  ;;  %v1789_v4 = vor.u32 1.1754944e-38, %v1788_v50 }
 0x37b   : > { %v1780_v61 = vmul.f32 %v3430_v62, %v1779_v12  ;;  %v1839_v47 = vadd.f32 1.0, %v3436_v9  ;;  %v1842_v60 = vsub.f32 1.0, %v1841_v37  ;;  %v3438_v15 = vpop.eup %3437  ;;  %vm1822_vm6 = vmor %vm1820_vm3, %vm1821_vm2  ;;  %v1827_v19 = vor.u32 1.1754944e-38, %v1826_v48 }
 0x37c   : > { %v4645_v25 = vadd.f32 %v1872_v10, %v1870_v33  ;;  %v1817_v29 = vsub.f32 1.0, %v1816_v36  ;;  %vm1825_vm7 = vcmp.eq.f32.partialorder %v1824_v16, 8.507059e+37  ;;  %v1851_v37 = vand.u32 2147483648, %v4625_v23 }
 0x37d   : > { %v1781_v11 = vadd.f32 %v3430_v62, %v1780_v61  ;;  %3439 = vrcp.f32 %v1839_v47  ;;  %v1843_v10 = vmul.f32 %v4636_v54, %v1842_v60  ;;  %v1866_v42 = vand.u32 2147483648, %v1839_v47 }
 0x37e   : > { %v1818_v28 = vmul.f32 %v3434_v38, %v1817_v29  ;;  %3441 = vtanh.f32 %v4645_v25  ;;  %v1864_v29 = vand.u32 2147483647, %v1839_v47  ;;  %vm1860_vm12 = vweird.f32 %v1839_v47 }
 0x37f   : > { %v1785_v5 = vsel %vm1784_vm4, %v3430_v62, %v1781_v11  ;;  %v1844_v62 = vadd.f32 %v4636_v54, %v1843_v10  ;;  %v1852_v11 = vor.u32 1.1754944e-38, %v1851_v37  ;;  %v1867_v16 = vor.u32 1.1754944e-38, %v1866_v42  ;;  %v5079_v37 = vld [vmem:[#allocation31_spill] sm:$0xff] }
 0x380   : > { %v1819_v43 = vadd.f32 %v3434_v38, %v1818_v28  ;;  %v1790_v57 = vsel %vm1787_vm5, %v1789_v4, %v1785_v5  ;;  %vm1865_vm15 = vcmp.eq.f32.partialorder %v1864_v29, 8.507059e+37  ;;  %v5081_v29 = vld [vmem:[#allocation33_spill] sm:$0xff] }
 0x381   : > { %v1873_v9 = vmul.f32 %v3438_v15, %v1790_v57  ;;  %v1848_v61 = vsel %vm1847_vm11, %v4636_v54, %v1844_v62  ;;  %v5075_v54 = vld [vmem:[#allocation28_spill] sm:$0xff]  ;;  %v5076_v57 = vld [vmem:[#allocation57_spill] sm:$0xff] }
 0x382   : > { %v1823_v55 = vsel %vm1822_vm6, %v3434_v38, %v1819_v43 }
 0x383   : > { %v1828_v40 = vsel %vm1825_vm7, %v1827_v19, %v1823_v55  ;;  %v3440_v35 = vpop.eup %3439  ;;  %v5077_v55 = vld [vmem:[#allocation29_spill] sm:$0xff] }
 0x384   : > { %v1871_v33 = vmul.f32 %v1828_v40, %v4568_v24  ;;  %v1856_v36 = vmul.f32 %v3440_v35, %v1839_v47  ;;  %v1849_v24 = vand.u32 2147483647, %v4625_v23  ;;  %vm1861_vm10 = vweird.f32 %v3440_v35  ;;  %v3442_v28 = vpop.eup %3441 }
 0x385   : > { %vm1862_vm13 = vmor %vm1860_vm12, %vm1861_vm10  ;;  %v617_v47 = vadd.f32 %v5075_v54, %v4337_v32 }
 0x386   : > { %v4653_v12 = vadd.f32 %v1873_v9, %v1871_v33  ;;  %v1857_v38 = vsub.f32 1.0, %v1856_v36  ;;  %vm1850_vm14 = vcmp.eq.f32.partialorder %v1849_v24, 8.507059e+37  ;;  %v666_v9 = vadd.f32 %v5077_v55, %v5076_v57  ;;  %v5080_v24 = vld [vmem:[#allocation32_spill] sm:$0xff] }
 0x387   : > { %v1853_v5 = vsel %vm1850_vm14, %v1852_v11, %v1848_v61  ;;  %v668_v61 = vadd.f32 %v5081_v29, %v5076_v57 }
 0x388   : > { %3443 = vtanh.f32 %v4653_v12  ;;  %v1858_v50 = vmul.f32 %v3440_v35, %v1857_v38  ;;  %v1878_v23 = vmul.f32 %v3442_v28, %v1853_v5  ;;  %v5078_v38 = vld [vmem:[#allocation60_spill] sm:$0xff] }
 0x389   : > { %v764_v42 = vadd.f32 %v5079_v37, %v5078_v38 }
 0x38a   : > { %v1859_v48 = vadd.f32 %v3440_v35, %v1858_v50  ;;  %v619_v50 = vadd.f32 %v5080_v24, %v4337_v32 }
 0x38c   : > { %v1863_v60 = vsel %vm1862_vm13, %v3440_v35, %v1859_v48 }
 0x38d   : > { %v1868_v43 = vsel %vm1865_vm15, %v1867_v16, %v1863_v60 }
 0x38e   : > { %v3444_v4 = vpop.eup %3443 }
 0x38f   : > { %v1879_v15 = vmul.f32 %v3444_v4, %v1868_v43 }
 0x391   : > { %v3280_v19 = vpack.c.bf16 %v1879_v15, %v1878_v23 }
 0x393   : > { %3304 = vst [vmem:[%s3645_s14 + $0x18] sm:$0xff] %v3280_v19   ;;  %1911 = vmatmul.bf16.vlgmr.msrb.gmra.mxu0 %v3280_v19  ;;  %1925 = vmatmul.bf16.vlgmr.msrb.gmra.mxu1 %v3280_v19 }
 0x394   : > { %1939 = vmatmul.bf16.vlgmr.msrb.gmra.mxu2 %v3280_v19  ;;  %1953 = vmatmul.bf16.vlgmr.msrb.gmra.mxu3 %v3280_v19 }
 0x395   : > { %2329 = vmatpush.bf16.msrb.mxu0 %v3865_v41  ;;  %2343 = vmatpush.bf16.msrb.mxu1 %v3876_v45 }
 0x396   : > { %2357 = vmatpush.bf16.msrb.mxu2 %v3893_v51  ;;  %2371 = vmatpush.bf16.msrb.mxu3 %v3896_v52 }
 0x399   : > { %2330 = vmatpush.bf16.msrb.mxu0 %v3898_v53  ;;  %2344 = vmatpush.bf16.msrb.mxu1 %v3907_v56 }
 0x39a   : > { %2358 = vmatpush.bf16.msrb.mxu2 %v3916_v59  ;;  %2372 = vmatpush.bf16.msrb.mxu3 %v3929_v63 }
 0x39d   : > { %2331 = vmatpush.bf16.msrb.mxu0 %v3931_v0  ;;  %2345 = vmatpush.bf16.msrb.mxu1 %v3940_v3 }
 0x39e   : > { %2359 = vmatpush.bf16.msrb.mxu2 %v3952_v7  ;;  %2373 = vmatpush.bf16.msrb.mxu3 %v3956_v8 }
 0x3a1   : > { %2332 = vmatpush.bf16.msrb.mxu0 %v3971_v13  ;;  %2346 = vmatpush.bf16.msrb.mxu1 %v3982_v17 }
 0x3a2   : > { %2360 = vmatpush.bf16.msrb.mxu2 %v3993_v21  ;;  %2374 = vmatpush.bf16.msrb.mxu3 %v3984_v18 }
 0x3a5   : > { %2333 = vmatpush.bf16.msrb.mxu0 %v4008_v26  ;;  %2347 = vmatpush.bf16.msrb.mxu1 %v4019_v30 }
 0x3a6   : > { %2361 = vmatpush.bf16.msrb.mxu2 %v4030_v34  ;;  %2375 = vmatpush.bf16.msrb.mxu3 %v4021_v31 }
 0x3a9   : > { %2334 = vmatpush.bf16.msrb.mxu0 %v4045_v39  ;;  %2348 = vmatpush.bf16.msrb.mxu1 %v4056_v44 }
 0x3aa   : > { %2362 = vmatpush.bf16.msrb.mxu2 %v4067_v49  ;;  %2376 = vmatpush.bf16.msrb.mxu3 %v4058_v46 }
 0x3ad   : > { %2335 = vmatpush.bf16.msrb.mxu0 %v4082_v58  ;;  %2349 = vmatpush.bf16.msrb.mxu1 %v4093_v1 }
 0x3ae   : > { %2363 = vmatpush.bf16.msrb.mxu2 %v4104_v6  ;;  %2377 = vmatpush.bf16.msrb.mxu3 %v4095_v2 }
 0x3b1   : > { %2336 = vmatpush.bf16.msrb.mxu0 %v4119_v14  ;;  %2350 = vmatpush.bf16.msrb.mxu1 %v4130_v20 }
 0x3b2   : > { %2364 = vmatpush.bf16.msrb.mxu2 %v4150_v27  ;;  %2378 = vmatpush.bf16.msrb.mxu3 %v4132_v22 }
 0x410   : > { %v1912_v40 = vpop.f32.mrf.mxu0  ;;  %v1926_v10 = vpop.f32.mrf.mxu1 }
 0x411   : > { %v1959_v33 = vadd.f32 %v1912_v40, %v617_v47  ;;  %v1960_v35 = vadd.f32 %v1926_v10, %v666_v9  ;;  %v5082_v9 = vld [vmem:[#allocation62_spill] sm:$0xff] }
 0x412   : > { %v5083_v40 = vld [vmem:[#allocation30_spill] sm:$0xff] }
 0x413   : > { %v3153_v36 = vmul.f32 -1.442695, %v1959_v33  ;;  %v3155_v62 = vmul.f32 -1.442695, %v1960_v35  ;;  %v715_v10 = vadd.f32 %v5083_v40, %v5082_v9  ;;  %v5084_v35 = vld [vmem:[#allocation35_spill] sm:$0xff] }
 0x415   : > { %3445 = vpow2.f32 %v3153_v36  ;;  %v766_v36 = vadd.f32 %v5084_v35, %v5078_v38  ;;  %v5085_v35 = vld [vmem:[#allocation34_spill] sm:$0xff] }
 0x416   : > { %3447 = vpow2.f32 %v3155_v62 }
 0x417   : > { %v1954_v48 = vpop.f32.mrf.mxu3  ;;  %v1940_v55 = vpop.f32.mrf.mxu2 }
 0x418   : > { %v1962_v28 = vadd.f32 %v1954_v48, %v764_v42  ;;  %v1914_v11 = vpop.f32.mrf.mxu0  ;;  %v1928_v16 = vpop.f32.mrf.mxu1  ;;  %v1961_v37 = vadd.f32 %v1940_v55, %v715_v10 }
 0x419   : > { %v1963_v4 = vadd.f32 %v1914_v11, %v619_v50  ;;  %v1964_v60 = vadd.f32 %v1928_v16, %v668_v61 }
 0x41a   : > { %v3157_v5 = vmul.f32 -1.442695, %v1962_v28 }
 0x41b   : > { %v3446_v43 = vpop.eup %3445  ;;  %v3154_v23 = vmul.f32 -1.442695, %v1963_v4  ;;  %v3156_v54 = vmul.f32 -1.442695, %v1964_v60 }
 0x41c   : > { %v3448_v15 = vpop.eup %3447  ;;  %v1973_v19 = vadd.f32 1.0, %v3446_v43  ;;  %3449 = vpow2.f32 %v3157_v5 }
 0x41d   : > { %v2011_v47 = vadd.f32 1.0, %v3448_v15  ;;  %3451 = vpow2.f32 %v3154_v23 }
 0x41e   : > { %3453 = vrcp.f32 %v1973_v19  ;;  %v1984_v23 = vand.u32 2147483647, %v1973_v19  ;;  %v1986_v15 = vand.u32 2147483648, %v1973_v19  ;;  %vm1980_vm2 = vweird.f32 %v1973_v19 }
 0x41f   : > { %3455 = vrcp.f32 %v2011_v47  ;;  %v1956_v33 = vpop.f32.mrf.mxu3  ;;  %v2022_v10 = vand.u32 2147483647, %v2011_v47  ;;  %vm2018_vm3 = vweird.f32 %v2011_v47 }
 0x420   : > { %3457 = vpow2.f32 %v3156_v54  ;;  %v1966_v24 = vadd.f32 %v1956_v33, %v766_v36  ;;  %v2024_v54 = vand.u32 2147483648, %v2011_v47  ;;  %v1942_v33 = vpop.f32.mrf.mxu2  ;;  %v717_v36 = vadd.f32 %v5085_v35, %v5082_v9 }
 0x421   : > { %3459 = vtanh.f32 %v1961_v37  ;;  %vm1985_vm6 = vcmp.eq.f32.partialorder %v1984_v23, 8.507059e+37  ;;  %vm2023_vm7 = vcmp.eq.f32.partialorder %v2022_v10, 8.507059e+37 }
 0x422   : > { %v3450_v62 = vpop.eup %3449  ;;  %v3158_v5 = vmul.f32 -1.442695, %v1966_v24 }
 0x423   : > { %v3452_v42 = vpop.eup %3451  ;;  %v4710_v29 = vadd.f32 1.0, %v3450_v62 }
 0x424   : > { %v3454_v50 = vpop.eup %3453  ;;  %v4712_v61 = vadd.f32 1.0, %v3452_v42  ;;  %v1987_v42 = vor.u32 1.1754944e-38, %v1986_v15 }
 0x425   : > { %v3456_v48 = vpop.eup %3455  ;;  %v1976_v28 = vmul.f32 %v3454_v50, %v1973_v19  ;;  %vm1981_vm0 = vweird.f32 %v3454_v50 }
 0x426   : > { %v3458_v11 = vpop.eup %3457  ;;  %v2014_v16 = vmul.f32 %v3456_v48, %v2011_v47  ;;  %3461 = vrcp.f32 %v4712_v61  ;;  %vm2019_vm1 = vweird.f32 %v3456_v48  ;;  %vm1982_vm4 = vmor %vm1980_vm2, %vm1981_vm0  ;;  %v1999_v23 = vand.u32 2147483647, %v4712_v61 }
 0x427   : > { %v1977_v4 = vsub.f32 1.0, %v1976_v28  ;;  %v4715_v60 = vadd.f32 1.0, %v3458_v11  ;;  %3463 = vrcp.f32 %v4710_v29  ;;  %v3460_v37 = vpop.eup %3459  ;;  %vm2020_vm5 = vmor %vm2018_vm3, %vm2019_vm1  ;;  %v2025_v11 = vor.u32 1.1754944e-38, %v2024_v54 }
 0x428   : > { %v2015_v43 = vsub.f32 1.0, %v2014_v16  ;;  %v2001_v54 = vand.u32 2147483648, %v4712_v61  ;;  %vm1995_vm9 = vweird.f32 %v4712_v61  ;;  %vm2000_vm13 = vcmp.eq.f32.partialorder %v1999_v23, 8.507059e+37 }
 0x429   : > { %v1978_v55 = vmul.f32 %v3454_v50, %v1977_v4  ;;  %3465 = vrcp.f32 %v4715_v60  ;;  %v1965_v4 = vadd.f32 %v1942_v33, %v717_v36  ;;  %vm2033_vm11 = vweird.f32 %v4715_v60 }
 0x42a   : > { %v2016_v40 = vmul.f32 %v3456_v48, %v2015_v43  ;;  %3467 = vpow2.f32 %v3158_v5  ;;  %vm2058_vm1 = vweird.f32 %v4710_v29 }
 0x42b   : > { %v1979_v62 = vadd.f32 %v3454_v50, %v1978_v55  ;;  %3469 = vtanh.f32 %v1965_v4 }
 0x42c   : > { %v2017_v24 = vadd.f32 %v3456_v48, %v2016_v40  ;;  %v3462_v28 = vpop.eup %3461 }
 0x42d   : > { %v1983_v16 = vsel %vm1982_vm4, %v3454_v50, %v1979_v62  ;;  %v4721_v43 = vpop.eup %3463  ;;  %v1991_v55 = vmul.f32 %v3462_v28, %v4712_v61  ;;  %vm1996_vm8 = vweird.f32 %v3462_v28  ;;  %v2037_v62 = vand.u32 2147483647, %v4715_v60 }
 0x42e   : > { %v1988_v38 = vsel %vm1985_vm6, %v1987_v42, %v1983_v16  ;;  %v2021_v57 = vsel %vm2020_vm5, %v3456_v48, %v2017_v24  ;;  %v2054_v50 = vmul.f32 %v4721_v43, %v4710_v29  ;;  %vm1997_vm12 = vmor %vm1995_vm9, %vm1996_vm8  ;;  %vm2059_vm0 = vweird.f32 %v4721_v43 }
 0x42f   : > { %v3466_v19 = vpop.eup %3465  ;;  %v2026_v5 = vsel %vm2023_vm7, %v2025_v11, %v2021_v57  ;;  %v2085_v35 = vmul.f32 %v3460_v37, %v1988_v38  ;;  %v1992_v15 = vsub.f32 1.0, %v1991_v55  ;;  %v2039_v57 = vand.u32 2147483648, %v4715_v60  ;;  %vm2060_vm3 = vmor %vm2058_vm1, %vm2059_vm0 }
 0x430   : > { %v2083_v47 = vmul.f32 %v2026_v5, %v4645_v25  ;;  %v2029_v40 = vmul.f32 %v3466_v19, %v4715_v60  ;;  %v3468_v9 = vpop.eup %3467  ;;  %vm2034_vm10 = vweird.f32 %v3466_v19  ;;  %v2002_v37 = vor.u32 1.1754944e-38, %v2001_v54 }
 0x431   : > { %v1993_v33 = vmul.f32 %v3462_v28, %v1992_v15  ;;  %v2052_v25 = vadd.f32 1.0, %v3468_v9  ;;  %v2055_v42 = vsub.f32 1.0, %v2054_v50  ;;  %v3470_v16 = vpop.eup %3469  ;;  %vm2035_vm14 = vmor %vm2033_vm11, %vm2034_vm10  ;;  %v2040_v4 = vor.u32 1.1754944e-38, %v2039_v57 }
 0x432   : > { %v4730_v48 = vadd.f32 %v2085_v35, %v2083_v47  ;;  %v2030_v10 = vsub.f32 1.0, %v2029_v40  ;;  %vm2038_vm15 = vcmp.eq.f32.partialorder %v2037_v62, 8.507059e+37  ;;  %v2064_v50 = vand.u32 2147483648, %v4710_v29 }
 0x433   : > { %v1994_v36 = vadd.f32 %v3462_v28, %v1993_v33  ;;  %3471 = vrcp.f32 %v2052_v25  ;;  %v2056_v35 = vmul.f32 %v4721_v43, %v2055_v42  ;;  %v2079_v23 = vand.u32 2147483648, %v2052_v25 }
 0x434   : > { %v2031_v38 = vmul.f32 %v3466_v19, %v2030_v10  ;;  %3473 = vtanh.f32 %v4730_v48  ;;  %v2077_v10 = vand.u32 2147483647, %v2052_v25  ;;  %vm2073_vm4 = vweird.f32 %v2052_v25 }
 0x435   : > { %v1998_v24 = vsel %vm1997_vm12, %v3462_v28, %v1994_v36  ;;  %v2057_v28 = vadd.f32 %v4721_v43, %v2056_v35  ;;  %v2065_v36 = vor.u32 1.1754944e-38, %v2064_v50  ;;  %v2080_v62 = vor.u32 1.1754944e-38, %v2079_v23 }
 0x436   : > { %v2032_v11 = vadd.f32 %v3466_v19, %v2031_v38  ;;  %v2003_v55 = vsel %vm2000_vm13, %v2002_v37, %v1998_v24  ;;  %vm2078_vm7 = vcmp.eq.f32.partialorder %v2077_v10, 8.507059e+37 }
 0x437   : > { %v2086_v9 = vmul.f32 %v3470_v16, %v2003_v55  ;;  %v2061_v33 = vsel %vm2060_vm3, %v4721_v43, %v2057_v28  ;;  %v5093_v43 = vld [vmem:[#allocation62_spill] sm:$0xff] }
 0x438   : > { %v2036_v61 = vsel %vm2035_vm14, %v3466_v19, %v2032_v11 }
 0x439   : > { %v2041_v5 = vsel %vm2038_vm15, %v2040_v4, %v2036_v61  ;;  %v3472_v60 = vpop.eup %3471 }
 0x43a   : > { %v2084_v47 = vmul.f32 %v2041_v5, %v4653_v12  ;;  %v2069_v40 = vmul.f32 %v3472_v60, %v2052_v25  ;;  %v2062_v12 = vand.u32 2147483647, %v4710_v29  ;;  %vm2074_vm2 = vweird.f32 %v3472_v60  ;;  %v3474_v38 = vpop.eup %3473  ;;  %v5094_v25 = vld [vmem:[#allocation38_spill] sm:$0xff] }
 0x43b   : > { %vm2075_vm5 = vmor %vm2073_vm4, %vm2074_vm2  ;;  %v720_v55 = vadd.f32 %v5094_v25, %v5093_v43 }
 0x43c   : > { %v4738_v15 = vadd.f32 %v2086_v9, %v2084_v47  ;;  %v2070_v19 = vsub.f32 1.0, %v2069_v40  ;;  %vm2063_vm6 = vcmp.eq.f32.partialorder %v2062_v12, 8.507059e+37  ;;  %v5095_v9 = vld [vmem:[#allocation43_spill] sm:$0xff] }
 0x43d   : > { %v2066_v24 = vsel %vm2063_vm6, %v2065_v36, %v2061_v33 }
 0x43e   : > { %3475 = vtanh.f32 %v4738_v15  ;;  %v2071_v54 = vmul.f32 %v3472_v60, %v2070_v19  ;;  %v2091_v29 = vmul.f32 %v3474_v38, %v2066_v24 }
 0x440   : > { %v2072_v57 = vadd.f32 %v3472_v60, %v2071_v54 }
 0x442   : > { %v2076_v42 = vsel %vm2075_vm5, %v3472_v60, %v2072_v57 }
 0x443   : > { %v2081_v11 = vsel %vm2078_vm7, %v2080_v62, %v2076_v42 }
 0x444   : > { %v3476_v37 = vpop.eup %3475 }
 0x445   : > { %v2092_v16 = vmul.f32 %v3476_v37, %v2081_v11 }
 0x447   : > { %v3285_v4 = vpack.c.bf16 %v2092_v16, %v2091_v29 }
 0x449   : > { %3305 = vst [vmem:[%s3645_s14 + $0x20] sm:$0xff] %v3285_v4   ;;  %2124 = vmatmul.bf16.vlgmr.msra.gmra.mxu0 %v3285_v4  ;;  %2138 = vmatmul.bf16.vlgmr.msra.gmra.mxu1 %v3285_v4 }
 0x44a   : > { %2152 = vmatmul.bf16.vlgmr.msra.gmra.mxu2 %v3285_v4  ;;  %2166 = vmatmul.bf16.vlgmr.msra.gmra.mxu3 %v3285_v4  ;;  %v5096_v4 = vld [vmem:[#allocation42_spill] sm:$0xff] }
 0x44b   : > { %2542 = vmatpush.bf16.msra.mxu0 %v3865_v41  ;;  %2556 = vmatpush.bf16.msra.mxu1 %v3876_v45  ;;  %v5086_v41 = vld [vmem:[#allocation36_spill] sm:$0xff] }
 0x44c   : > { %2570 = vmatpush.bf16.msra.mxu2 %v3893_v51  ;;  %2584 = vmatpush.bf16.msra.mxu3 %v3896_v52  ;;  %v622_v45 = vadd.f32 %v5086_v41, %v4337_v32  ;;  %v5087_v51 = vld [vmem:[#allocation57_spill] sm:$0xff]  ;;  %v722_v41 = vadd.f32 %v5096_v4, %v5093_v43 }
 0x44d   : > { %v5088_v52 = vld [vmem:[#allocation37_spill] sm:$0xff] }
 0x44f   : > { %2543 = vmatpush.bf16.msra.mxu0 %v3898_v53  ;;  %2557 = vmatpush.bf16.msra.mxu1 %v3907_v56  ;;  %v671_v53 = vadd.f32 %v5088_v52, %v5087_v51 }
 0x450   : > { %2571 = vmatpush.bf16.msra.mxu2 %v3916_v59  ;;  %2585 = vmatpush.bf16.msra.mxu3 %v3929_v63 }
 0x453   : > { %2544 = vmatpush.bf16.msra.mxu0 %v3931_v0  ;;  %2558 = vmatpush.bf16.msra.mxu1 %v3940_v3 }
 0x454   : > { %2572 = vmatpush.bf16.msra.mxu2 %v3952_v7  ;;  %2586 = vmatpush.bf16.msra.mxu3 %v3956_v8  ;;  %v5089_v8 = vld [vmem:[#allocation60_spill] sm:$0xff] }
 0x455   : > { %v771_v5 = vadd.f32 %v5095_v9, %v5089_v8 }
 0x457   : > { %2545 = vmatpush.bf16.msra.mxu0 %v3971_v13  ;;  %2559 = vmatpush.bf16.msra.mxu1 %v3982_v17  ;;  %v5090_v13 = vld [vmem:[#allocation39_spill] sm:$0xff] }
 0x458   : > { %2573 = vmatpush.bf16.msra.mxu2 %v3993_v21  ;;  %2587 = vmatpush.bf16.msra.mxu3 %v3984_v18  ;;  %v769_v17 = vadd.f32 %v5090_v13, %v5089_v8  ;;  %v5091_v18 = vld [vmem:[#allocation40_spill] sm:$0xff] }
 0x459   : > { %v624_v21 = vadd.f32 %v5091_v18, %v4337_v32 }
 0x45b   : > { %2546 = vmatpush.bf16.msra.mxu0 %v4008_v26  ;;  %2560 = vmatpush.bf16.msra.mxu1 %v4019_v30  ;;  %v5092_v26 = vld [vmem:[#allocation41_spill] sm:$0xff] }
 0x45c   : > { %2574 = vmatpush.bf16.msra.mxu2 %v4030_v34  ;;  %2588 = vmatpush.bf16.msra.mxu3 %v4021_v31  ;;  %v673_v30 = vadd.f32 %v5092_v26, %v5087_v51 }
 0x45f   : > { %2547 = vmatpush.bf16.msra.mxu0 %v4045_v39  ;;  %2561 = vmatpush.bf16.msra.mxu1 %v4056_v44 }
 0x460   : > { %2575 = vmatpush.bf16.msra.mxu2 %v4067_v49  ;;  %2589 = vmatpush.bf16.msra.mxu3 %v4058_v46 }
 0x463   : > { %2548 = vmatpush.bf16.msra.mxu0 %v4082_v58  ;;  %2562 = vmatpush.bf16.msra.mxu1 %v4093_v1 }
 0x464   : > { %2576 = vmatpush.bf16.msra.mxu2 %v4104_v6  ;;  %2590 = vmatpush.bf16.msra.mxu3 %v4095_v2 }
 0x467   : > { %2549 = vmatpush.bf16.msra.mxu0 %v4119_v14  ;;  %2563 = vmatpush.bf16.msra.mxu1 %v4130_v20 }
 0x468   : > { %2577 = vmatpush.bf16.msra.mxu2 %v4150_v27  ;;  %2591 = vmatpush.bf16.msra.mxu3 %v4132_v22 }
 0x4c6   : > { %v2125_v56 = vpop.f32.mrf.mxu0  ;;  %v2139_v59 = vpop.f32.mrf.mxu1 }
 0x4c7   : > { %v2172_v63 = vadd.f32 %v2125_v56, %v622_v45  ;;  %v2173_v0 = vadd.f32 %v2139_v59, %v671_v53 }
 0x4c9   : > { %v3161_v3 = vmul.f32 -1.442695, %v2172_v63  ;;  %v3163_v7 = vmul.f32 -1.442695, %v2173_v0 }
 0x4cb   : > { %3477 = vpow2.f32 %v3161_v3 }
 0x4cc   : > { %3479 = vpow2.f32 %v3163_v7 }
 0x4cd   : > { %v2167_v31 = vpop.f32.mrf.mxu3  ;;  %v2153_v27 = vpop.f32.mrf.mxu2 }
 0x4ce   : > { %v2175_v34 = vadd.f32 %v2167_v31, %v769_v17  ;;  %v2127_v39 = vpop.f32.mrf.mxu0  ;;  %v2141_v44 = vpop.f32.mrf.mxu1  ;;  %v2174_v47 = vadd.f32 %v2153_v27, %v720_v55 }
 0x4cf   : > { %v2176_v46 = vadd.f32 %v2127_v39, %v624_v21  ;;  %v2177_v49 = vadd.f32 %v2141_v44, %v673_v30 }
 0x4d0   : > { %v3165_v58 = vmul.f32 -1.442695, %v2175_v34 }
 0x4d1   : > { %v3478_v1 = vpop.eup %3477  ;;  %v3162_v2 = vmul.f32 -1.442695, %v2176_v46  ;;  %v3164_v20 = vmul.f32 -1.442695, %v2177_v49 }
 0x4d2   : > { %v3480_v6 = vpop.eup %3479  ;;  %v2186_v14 = vadd.f32 1.0, %v3478_v1  ;;  %3481 = vpow2.f32 %v3165_v58 }
 0x4d3   : > { %v2224_v22 = vadd.f32 1.0, %v3480_v6  ;;  %3483 = vpow2.f32 %v3162_v2 }
 0x4d4   : > { %3485 = vrcp.f32 %v2186_v14  ;;  %v2197_v62 = vand.u32 2147483647, %v2186_v14  ;;  %v2199_v37 = vand.u32 2147483648, %v2186_v14  ;;  %vm2193_vm10 = vweird.f32 %v2186_v14 }
 0x4d5   : > { %3487 = vrcp.f32 %v2224_v22  ;;  %v2169_v61 = vpop.f32.mrf.mxu3  ;;  %v2237_v42 = vand.u32 2147483648, %v2224_v22  ;;  %v2235_v29 = vand.u32 2147483647, %v2224_v22  ;;  %v2155_v16 = vpop.f32.mrf.mxu2  ;;  %vm2231_vm11 = vweird.f32 %v2224_v22 }
 0x4d6   : > { %3489 = vpow2.f32 %v3164_v20  ;;  %v2179_v40 = vadd.f32 %v2169_v61, %v771_v5  ;;  %v2200_v53 = vor.u32 1.1754944e-38, %v2199_v37  ;;  %vm2198_vm14 = vcmp.eq.f32.partialorder %v2197_v62, 8.507059e+37 }
 0x4d7   : > { %3491 = vtanh.f32 %v2174_v47  ;;  %v2238_v63 = vor.u32 1.1754944e-38, %v2237_v42  ;;  %v2178_v3 = vadd.f32 %v2155_v16, %v722_v41  ;;  %vm2236_vm15 = vcmp.eq.f32.partialorder %v2235_v29, 8.507059e+37 }
 0x4d8   : > { %v3482_v35 = vpop.eup %3481  ;;  %v3166_v38 = vmul.f32 -1.442695, %v2179_v40 }
 0x4d9   : > { %v3484_v60 = vpop.eup %3483  ;;  %v4795_v19 = vadd.f32 1.0, %v3482_v35 }
 0x4da   : > { %v3486_v28 = vpop.eup %3485  ;;  %v4797_v50 = vadd.f32 1.0, %v3484_v60 }
 0x4db   : > { %v3488_v23 = vpop.eup %3487  ;;  %v2189_v12 = vmul.f32 %v3486_v28, %v2186_v14  ;;  %vm2194_vm8 = vweird.f32 %v3486_v28 }
 0x4dc   : > { %v3490_v54 = vpop.eup %3489  ;;  %v2227_v10 = vmul.f32 %v3488_v23, %v2224_v22  ;;  %3493 = vrcp.f32 %v4797_v50  ;;  %vm2232_vm9 = vweird.f32 %v3488_v23  ;;  %vm2195_vm12 = vmor %vm2193_vm10, %vm2194_vm8  ;;  %v2212_v49 = vand.u32 2147483647, %v4797_v50 }
 0x4dd   : > { %v2190_v33 = vsub.f32 1.0, %v2189_v12  ;;  %v4800_v57 = vadd.f32 1.0, %v3490_v54  ;;  %3495 = vrcp.f32 %v4795_v19  ;;  %v3492_v52 = vpop.eup %3491  ;;  %vm2233_vm13 = vmor %vm2231_vm11, %vm2232_vm9  ;;  %v2214_v58 = vand.u32 2147483648, %v4797_v50 }
 0x4de   : > { %v2228_v36 = vsub.f32 1.0, %v2227_v10  ;;  %vm2208_vm1 = vweird.f32 %v4797_v50  ;;  %vm2213_vm5 = vcmp.eq.f32.partialorder %v2212_v49, 8.507059e+37  ;;  %vm2271_vm9 = vweird.f32 %v4795_v19 }
 0x4df   : > { %v2191_v24 = vmul.f32 %v3486_v28, %v2190_v33  ;;  %3497 = vrcp.f32 %v4800_v57  ;;  %v2252_v14 = vand.u32 2147483648, %v4800_v57  ;;  %v2250_v27 = vand.u32 2147483647, %v4800_v57 }
 0x4e0   : > { %v2229_v11 = vmul.f32 %v3488_v23, %v2228_v36  ;;  %3499 = vpow2.f32 %v3166_v38  ;;  %vm2246_vm3 = vweird.f32 %v4800_v57  ;;  %v2215_v25 = vor.u32 1.1754944e-38, %v2214_v58 }
 0x4e1   : > { %v2192_v45 = vadd.f32 %v3486_v28, %v2191_v24  ;;  %3501 = vtanh.f32 %v2178_v3  ;;  %v2253_v35 = vor.u32 1.1754944e-38, %v2252_v14  ;;  %vm2251_vm7 = vcmp.eq.f32.partialorder %v2250_v27, 8.507059e+37 }
 0x4e2   : > { %v2230_v56 = vadd.f32 %v3488_v23, %v2229_v11  ;;  %v3494_v59 = vpop.eup %3493  ;;  %v2277_v38 = vand.u32 2147483648, %v4795_v19 }
 0x4e3   : > { %v2196_v0 = vsel %vm2195_vm12, %v3486_v28, %v2192_v45  ;;  %v4806_v7 = vpop.eup %3495  ;;  %v2204_v18 = vmul.f32 %v3494_v59, %v4797_v50  ;;  %vm2209_vm0 = vweird.f32 %v3494_v59 }
 0x4e4   : > { %v2201_v13 = vsel %vm2198_vm14, %v2200_v53, %v2196_v0  ;;  %v2234_v17 = vsel %vm2233_vm13, %v3488_v23, %v2230_v56  ;;  %v2267_v46 = vmul.f32 %v4806_v7, %v4795_v19  ;;  %vm2210_vm4 = vmor %vm2208_vm1, %vm2209_vm0  ;;  %vm2272_vm8 = vweird.f32 %v4806_v7  ;;  %v5098_v0 = vld [vmem:[#allocation45_spill] sm:$0xff] }
 0x4e5   : > { %v3498_v21 = vpop.eup %3497  ;;  %v2239_v26 = vsel %vm2236_vm15, %v2238_v63, %v2234_v17  ;;  %v2298_v30 = vmul.f32 %v3492_v52, %v2201_v13  ;;  %v2205_v34 = vsub.f32 1.0, %v2204_v18  ;;  %vm2273_vm11 = vmor %vm2271_vm9, %vm2272_vm8  ;;  %v2278_v29 = vor.u32 1.1754944e-38, %v2277_v38 }
 0x4e6   : > { %v2296_v31 = vmul.f32 %v2239_v26, %v4730_v48  ;;  %v2242_v39 = vmul.f32 %v3498_v21, %v4800_v57  ;;  %v3500_v44 = vpop.eup %3499  ;;  %vm2247_vm2 = vweird.f32 %v3498_v21  ;;  %v2268_v55 = vsub.f32 1.0, %v2267_v46 }
 0x4e7   : > { %v2206_v6 = vmul.f32 %v3494_v59, %v2205_v34  ;;  %v2265_v48 = vadd.f32 1.0, %v3500_v44  ;;  %v3502_v5 = vpop.eup %3501  ;;  %vm2248_vm6 = vmor %vm2246_vm3, %vm2247_vm2  ;;  %v676_v3 = vadd.f32 %v5098_v0, %v5087_v51  ;;  %v5100_v34 = vld [vmem:[#allocation48_spill] sm:$0xff]  ;;  %v5101_v44 = vld [vmem:[#allocation49_spill] sm:$0xff] }
 0x4e8   : > { %v4815_v1 = vadd.f32 %v2298_v30, %v2296_v31  ;;  %v2243_v2 = vsub.f32 1.0, %v2242_v39  ;;  %v2269_v50 = vmul.f32 %v4806_v7, %v2268_v55  ;;  %v5099_v30 = vld [vmem:[#allocation47_spill] sm:$0xff]  ;;  %v629_v39 = vadd.f32 %v5100_v34, %v4337_v32 }
 0x4e9   : > { %v2207_v22 = vadd.f32 %v3494_v59, %v2206_v6  ;;  %3503 = vrcp.f32 %v2265_v48  ;;  %v2292_v36 = vand.u32 2147483648, %v2265_v48  ;;  %v2290_v37 = vand.u32 2147483647, %v2265_v48 }
 0x4ea   : > { %v2244_v20 = vmul.f32 %v3498_v21, %v2243_v2  ;;  %3505 = vtanh.f32 %v4815_v1  ;;  %v2270_v33 = vadd.f32 %v4806_v7, %v2269_v50  ;;  %vm2286_vm12 = vweird.f32 %v2265_v48 }
 0x4eb   : > { %v2211_v61 = vsel %vm2210_vm4, %v3494_v59, %v2207_v22  ;;  %v2293_v16 = vor.u32 1.1754944e-38, %v2292_v36  ;;  %vm2291_vm15 = vcmp.eq.f32.partialorder %v2290_v37, 8.507059e+37  ;;  %v5097_v59 = vld [vmem:[#allocation44_spill] sm:$0xff]  ;;  %v774_v31 = vadd.f32 %v5099_v30, %v5089_v8 }
 0x4ec   : > { %v2245_v9 = vadd.f32 %v3498_v21, %v2244_v20  ;;  %v2216_v47 = vsel %vm2213_vm5, %v2215_v25, %v2211_v61  ;;  %v2274_v42 = vsel %vm2273_vm11, %v4806_v7, %v2270_v33  ;;  %v627_v63 = vadd.f32 %v5097_v59, %v4337_v32 }
 0x4ed   : > { %v2299_v40 = vmul.f32 %v3502_v5, %v2216_v47  ;;  %v678_v46 = vadd.f32 %v5101_v44, %v5087_v51 }
 0x4ee   : > { %v2249_v60 = vsel %vm2248_vm6, %v3498_v21, %v2245_v9 }
 0x4ef   : > { %v2254_v28 = vsel %vm2251_vm7, %v2253_v35, %v2249_v60  ;;  %v3504_v12 = vpop.eup %3503  ;;  %v5102_v35 = vld [vmem:[#allocation46_spill] sm:$0xff] }
 0x4f0   : > { %v2297_v23 = vmul.f32 %v2254_v28, %v4738_v15  ;;  %v2282_v10 = vmul.f32 %v3504_v12, %v2265_v48  ;;  %v2275_v15 = vand.u32 2147483647, %v4795_v19  ;;  %vm2287_vm10 = vweird.f32 %v3504_v12  ;;  %v3506_v11 = vpop.eup %3505 }
 0x4f1   : > { %vm2288_vm13 = vmor %vm2286_vm12, %vm2287_vm10  ;;  %v725_v47 = vadd.f32 %v5102_v35, %v5093_v43 }
 0x4f2   : > { %v4823_v54 = vadd.f32 %v2299_v40, %v2297_v23  ;;  %v2283_v57 = vsub.f32 1.0, %v2282_v10  ;;  %vm2276_vm14 = vcmp.eq.f32.partialorder %v2275_v15, 8.507059e+37  ;;  %v5103_v40 = vld [vmem:[#allocation50_spill] sm:$0xff] }
 0x4f3   : > { %v2279_v45 = vsel %vm2276_vm14, %v2278_v29, %v2274_v42  ;;  %v776_v28 = vadd.f32 %v5103_v40, %v5089_v8 }
 0x4f4   : > { %3507 = vtanh.f32 %v4823_v54  ;;  %v2284_v62 = vmul.f32 %v3504_v12, %v2283_v57  ;;  %v2304_v19 = vmul.f32 %v3506_v11, %v2279_v45 }
 0x4f6   : > { %v2285_v24 = vadd.f32 %v3504_v12, %v2284_v62 }
 0x4f8   : > { %v2289_v41 = vsel %vm2288_vm13, %v3504_v12, %v2285_v24 }
 0x4f9   : > { %v2294_v52 = vsel %vm2291_vm15, %v2293_v16, %v2289_v41 }
 0x4fa   : > { %v3508_v4 = vpop.eup %3507 }
 0x4fb   : > { %v2305_v53 = vmul.f32 %v3508_v4, %v2294_v52 }
 0x4fd   : > { %v3290_v56 = vpack.c.bf16 %v2305_v53, %v2304_v19 }
 0x4ff   : > { %3306 = vst [vmem:[%s3645_s14 + $0x28] sm:$0xff] %v3290_v56   ;;  %2337 = vmatmul.bf16.vlgmr.msrb.gmra.mxu0 %v3290_v56  ;;  %2351 = vmatmul.bf16.vlgmr.msrb.gmra.mxu1 %v3290_v56 }
 0x500   : > { %2365 = vmatmul.bf16.vlgmr.msrb.gmra.mxu2 %v3290_v56  ;;  %2379 = vmatmul.bf16.vlgmr.msrb.gmra.mxu3 %v3290_v56  ;;  %v5104_v56 = vld [vmem:[#allocation53_spill] sm:$0xff] }
 0x501   : > { %v727_v59 = vadd.f32 %v5104_v56, %v5093_v43 }
 0x57c   : > { %v2338_v7 = vpop.f32.mrf.mxu0  ;;  %v2352_v13 = vpop.f32.mrf.mxu1 }
 0x57d   : > { %v2385_v17 = vadd.f32 %v2338_v7, %v627_v63  ;;  %v2386_v18 = vadd.f32 %v2352_v13, %v676_v3 }
 0x57f   : > { %v3169_v21 = vmul.f32 -1.442695, %v2385_v17  ;;  %v3171_v26 = vmul.f32 -1.442695, %v2386_v18 }
 0x581   : > { %3509 = vpow2.f32 %v3169_v21 }
 0x582   : > { %3511 = vpow2.f32 %v3171_v26 }
 0x583   : > { %v2380_v49 = vpop.f32.mrf.mxu3  ;;  %v2366_v5 = vpop.f32.mrf.mxu2 }
 0x584   : > { %v2388_v58 = vadd.f32 %v2380_v49, %v774_v31  ;;  %v2340_v2 = vpop.f32.mrf.mxu0  ;;  %v2354_v6 = vpop.f32.mrf.mxu1  ;;  %v2387_v23 = vadd.f32 %v2366_v5, %v725_v47 }
 0x585   : > { %v2389_v14 = vadd.f32 %v2340_v2, %v629_v39  ;;  %v2390_v48 = vadd.f32 %v2354_v6, %v678_v46 }
 0x586   : > { %v3173_v20 = vmul.f32 -1.442695, %v2388_v58 }
 0x587   : > { %v3510_v22 = vpop.eup %3509  ;;  %v3170_v27 = vmul.f32 -1.442695, %v2389_v14  ;;  %v3172_v61 = vmul.f32 -1.442695, %v2390_v48 }
 0x588   : > { %v3512_v25 = vpop.eup %3511  ;;  %v2399_v55 = vadd.f32 1.0, %v3510_v22  ;;  %3513 = vpow2.f32 %v3173_v20 }
 0x589   : > { %v2437_v9 = vadd.f32 1.0, %v3512_v25  ;;  %3515 = vpow2.f32 %v3170_v27 }
 0x58a   : > { %3517 = vrcp.f32 %v2399_v55  ;;  %v2410_v16 = vand.u32 2147483647, %v2399_v55  ;;  %v2412_v4 = vand.u32 2147483648, %v2399_v55  ;;  %vm2406_vm2 = vweird.f32 %v2399_v55 }
 0x58b   : > { %3519 = vrcp.f32 %v2437_v9  ;;  %v2382_v60 = vpop.f32.mrf.mxu3  ;;  %v2450_v41 = vand.u32 2147483648, %v2437_v9  ;;  %v2448_v19 = vand.u32 2147483647, %v2437_v9  ;;  %v2368_v53 = vpop.f32.mrf.mxu2  ;;  %vm2444_vm3 = vweird.f32 %v2437_v9 }
 0x58c   : > { %3521 = vpow2.f32 %v3172_v61  ;;  %v2392_v10 = vadd.f32 %v2382_v60, %v776_v28  ;;  %v2413_v3 = vor.u32 1.1754944e-38, %v2412_v4  ;;  %vm2411_vm6 = vcmp.eq.f32.partialorder %v2410_v16, 8.507059e+37 }
 0x58d   : > { %3523 = vtanh.f32 %v2387_v23  ;;  %v2451_v17 = vor.u32 1.1754944e-38, %v2450_v41  ;;  %v2391_v21 = vadd.f32 %v2368_v53, %v727_v59  ;;  %vm2449_vm7 = vcmp.eq.f32.partialorder %v2448_v19, 8.507059e+37 }
 0x58e   : > { %v3514_v50 = vpop.eup %3513  ;;  %v3174_v11 = vmul.f32 -1.442695, %v2392_v10 }
 0x58f   : > { %v3516_v12 = vpop.eup %3515  ;;  %v4848_v57 = vadd.f32 1.0, %v3514_v50 }
 0x590   : > { %v3518_v33 = vpop.eup %3517  ;;  %v4850_v38 = vadd.f32 1.0, %v3516_v12 }
 0x591   : > { %v3520_v36 = vpop.eup %3519  ;;  %v2402_v15 = vmul.f32 %v3518_v33, %v2399_v55  ;;  %vm2407_vm0 = vweird.f32 %v3518_v33 }
 0x592   : > { %v3522_v62 = vpop.eup %3521  ;;  %v2440_v37 = vmul.f32 %v3520_v36, %v2437_v9  ;;  %3525 = vrcp.f32 %v4850_v38  ;;  %vm2445_vm1 = vweird.f32 %v3520_v36  ;;  %vm2408_vm4 = vmor %vm2406_vm2, %vm2407_vm0  ;;  %v2425_v48 = vand.u32 2147483647, %v4850_v38 }
 0x593   : > { %v2403_v42 = vsub.f32 1.0, %v2402_v15  ;;  %v4853_v24 = vadd.f32 1.0, %v3522_v62  ;;  %3527 = vrcp.f32 %v4848_v57  ;;  %v3524_v0 = vpop.eup %3523  ;;  %vm2446_vm5 = vmor %vm2444_vm3, %vm2445_vm1  ;;  %v2427_v20 = vand.u32 2147483648, %v4850_v38 }
 0x594   : > { %v2441_v29 = vsub.f32 1.0, %v2440_v37  ;;  %vm2421_vm9 = vweird.f32 %v4850_v38  ;;  %vm2426_vm13 = vcmp.eq.f32.partialorder %v2425_v48, 8.507059e+37  ;;  %vm2484_vm1 = vweird.f32 %v4848_v57 }
 0x595   : > { %v2404_v45 = vmul.f32 %v3518_v33, %v2403_v42  ;;  %3529 = vrcp.f32 %v4853_v24  ;;  %v2465_v55 = vand.u32 2147483648, %v4853_v24  ;;  %v2463_v5 = vand.u32 2147483647, %v4853_v24 }
 0x596   : > { %v2442_v52 = vmul.f32 %v3520_v36, %v2441_v29  ;;  %3531 = vpow2.f32 %v3174_v11  ;;  %vm2459_vm11 = vweird.f32 %v4853_v24  ;;  %v2428_v35 = vor.u32 1.1754944e-38, %v2427_v20 }
 0x597   : > { %v2405_v63 = vadd.f32 %v3518_v33, %v2404_v45  ;;  %3533 = vtanh.f32 %v2391_v21  ;;  %v2466_v50 = vor.u32 1.1754944e-38, %v2465_v55  ;;  %vm2464_vm15 = vcmp.eq.f32.partialorder %v2463_v5, 8.507059e+37 }
 0x598   : > { %v2443_v7 = vadd.f32 %v3520_v36, %v2442_v52  ;;  %v3526_v13 = vpop.eup %3525  ;;  %v2490_v11 = vand.u32 2147483648, %v4848_v57 }
 0x599   : > { %v2409_v18 = vsel %vm2408_vm4, %v3518_v33, %v2405_v63  ;;  %v4859_v26 = vpop.eup %3527  ;;  %v2417_v34 = vmul.f32 %v3526_v13, %v4850_v38  ;;  %vm2422_vm8 = vweird.f32 %v3526_v13 }
 0x59a   : > { %v2414_v30 = vsel %vm2411_vm6, %v2413_v3, %v2409_v18  ;;  %v2447_v31 = vsel %vm2446_vm5, %v3520_v36, %v2443_v7  ;;  %v2480_v14 = vmul.f32 %v4859_v26, %v4848_v57  ;;  %vm2423_vm12 = vmor %vm2421_vm9, %vm2422_vm8  ;;  %vm2485_vm0 = vweird.f32 %v4859_v26  ;;  %v5106_v18 = vld [vmem:[#allocation52_spill] sm:$0xff] }
 0x59b   : > { %v3530_v39 = vpop.eup %3529  ;;  %v2452_v44 = vsel %vm2449_vm7, %v2451_v17, %v2447_v31  ;;  %v2511_v46 = vmul.f32 %v3524_v0, %v2414_v30  ;;  %v2418_v58 = vsub.f32 1.0, %v2417_v34  ;;  %vm2486_vm3 = vmor %vm2484_vm1, %vm2485_vm0  ;;  %v2491_v19 = vor.u32 1.1754944e-38, %v2490_v11 }
 0x59c   : > { %v2509_v49 = vmul.f32 %v2452_v44, %v4815_v1  ;;  %v2455_v2 = vmul.f32 %v3530_v39, %v4853_v24  ;;  %v3532_v6 = vpop.eup %3531  ;;  %vm2460_vm10 = vweird.f32 %v3530_v39  ;;  %v2481_v47 = vsub.f32 1.0, %v2480_v14 }
 0x59d   : > { %v2419_v25 = vmul.f32 %v3526_v13, %v2418_v58  ;;  %v2478_v1 = vadd.f32 1.0, %v3532_v6  ;;  %v3534_v28 = vpop.eup %3533  ;;  %vm2461_vm14 = vmor %vm2459_vm11, %vm2460_vm10  ;;  %v681_v21 = vadd.f32 %v5106_v18, %v5087_v51  ;;  %v5108_v58 = vld [vmem:[#allocation55_spill] sm:$0xff]  ;;  %v5109_v6 = vld [vmem:[#allocation56_spill] sm:$0xff] }
 0x59e   : > { %v4868_v22 = vadd.f32 %v2511_v46, %v2509_v49  ;;  %v2456_v27 = vsub.f32 1.0, %v2455_v2  ;;  %v2482_v38 = vmul.f32 %v4859_v26, %v2481_v47  ;;  %v5107_v46 = vld [vmem:[#allocation54_spill] sm:$0xff]  ;;  %v634_v2 = vadd.f32 %v5108_v58, %v4337_v32 }
 0x59f   : > { %v2420_v9 = vadd.f32 %v3526_v13, %v2419_v25  ;;  %3535 = vrcp.f32 %v2478_v1  ;;  %v2505_v29 = vand.u32 2147483648, %v2478_v1  ;;  %v2503_v4 = vand.u32 2147483647, %v2478_v1 }
 0x5a0   : > { %v2457_v61 = vmul.f32 %v3530_v39, %v2456_v27  ;;  %3537 = vtanh.f32 %v4868_v22  ;;  %v2483_v42 = vadd.f32 %v4859_v26, %v2482_v38  ;;  %vm2499_vm4 = vweird.f32 %v2478_v1 }
 0x5a1   : > { %v2424_v60 = vsel %vm2423_vm12, %v3526_v13, %v2420_v9  ;;  %v2506_v53 = vor.u32 1.1754944e-38, %v2505_v29  ;;  %vm2504_vm7 = vcmp.eq.f32.partialorder %v2503_v4, 8.507059e+37  ;;  %v5105_v13 = vld [vmem:[#allocation51_spill] sm:$0xff]  ;;  %v779_v49 = vadd.f32 %v5107_v46, %v5089_v8 }
 0x5a2   : > { %v2458_v40 = vadd.f32 %v3530_v39, %v2457_v61  ;;  %v2429_v23 = vsel %vm2426_vm13, %v2428_v35, %v2424_v60  ;;  %v2487_v41 = vsel %vm2486_vm3, %v4859_v26, %v2483_v42  ;;  %v632_v17 = vadd.f32 %v5105_v13, %v4337_v32 }
 0x5a3   : > { %v2512_v10 = vmul.f32 %v3534_v28, %v2429_v23  ;;  %v683_v14 = vadd.f32 %v5109_v6, %v5087_v51  ;;  %v5110_v51 = vld [vmem:[#allocation58_spill] sm:$0xff]  ;;  %v5111_v23 = vld [vmem:[#allocation59_spill] sm:$0xff] }
 0x5a4   : > { %v2462_v12 = vsel %vm2461_vm14, %v3530_v39, %v2458_v40  ;;  %v730_v28 = vadd.f32 %v5110_v51, %v5093_v43 }
 0x5a5   : > { %v2467_v33 = vsel %vm2464_vm15, %v2466_v50, %v2462_v12  ;;  %v3536_v15 = vpop.eup %3535  ;;  %v781_v12 = vadd.f32 %v5111_v23, %v5089_v8 }
 0x5a6   : > { %v2510_v36 = vmul.f32 %v2467_v33, %v4823_v54  ;;  %v2495_v37 = vmul.f32 %v3536_v15, %v2478_v1  ;;  %v2488_v54 = vand.u32 2147483647, %v4848_v57  ;;  %vm2500_vm2 = vweird.f32 %v3536_v15  ;;  %v3538_v52 = vpop.eup %3537 }
 0x5a7   : > { %vm2501_vm5 = vmor %vm2499_vm4, %vm2500_vm2 }
 0x5a8   : > { %v4876_v62 = vadd.f32 %v2512_v10, %v2510_v36  ;;  %v2496_v24 = vsub.f32 1.0, %v2495_v37  ;;  %vm2489_vm6 = vcmp.eq.f32.partialorder %v2488_v54, 8.507059e+37  ;;  %v5112_v54 = vld [vmem:[#allocation61_spill] sm:$0xff] }
 0x5a9   : > { %v2492_v63 = vsel %vm2489_vm6, %v2491_v19, %v2487_v41 }
 0x5aa   : > { %3539 = vtanh.f32 %v4876_v62  ;;  %v2497_v16 = vmul.f32 %v3536_v15, %v2496_v24  ;;  %v2517_v57 = vmul.f32 %v3538_v52, %v2492_v63 }
 0x5ac   : > { %v2498_v45 = vadd.f32 %v3536_v15, %v2497_v16  ;;  %v732_v16 = vadd.f32 %v5112_v54, %v5093_v43 }
 0x5ae   : > { %v2502_v59 = vsel %vm2501_vm5, %v3536_v15, %v2498_v45 }
 0x5af   : > { %v2507_v0 = vsel %vm2504_vm7, %v2506_v53, %v2502_v59 }
 0x5b0   : > { %v3540_v56 = vpop.eup %3539 }
 0x5b1   : > { %v2518_v3 = vmul.f32 %v3540_v56, %v2507_v0 }
 0x5b3   : > { %v3295_v7 = vpack.c.bf16 %v2518_v3, %v2517_v57 }
 0x5b5   : > { %3307 = vst [vmem:[%s3645_s14 + $0x30] sm:$0xff] %v3295_v7   ;;  %2550 = vmatmul.bf16.vlgmr.msra.gmra.mxu0 %v3295_v7  ;;  %2564 = vmatmul.bf16.vlgmr.msra.gmra.mxu1 %v3295_v7 }
 0x5b6   : > { %2578 = vmatmul.bf16.vlgmr.msra.gmra.mxu2 %v3295_v7  ;;  %2592 = vmatmul.bf16.vlgmr.msra.gmra.mxu3 %v3295_v7 }
 0x632   : > { %v2551_v26 = vpop.f32.mrf.mxu0  ;;  %v2565_v30 = vpop.f32.mrf.mxu1 }
 0x633   : > { %v2598_v31 = vadd.f32 %v2551_v26, %v632_v17  ;;  %v2599_v34 = vadd.f32 %v2565_v30, %v681_v21 }
 0x635   : > { %v3177_v39 = vmul.f32 -1.442695, %v2598_v31  ;;  %v3179_v44 = vmul.f32 -1.442695, %v2599_v34 }
 0x637   : > { %3541 = vpow2.f32 %v3177_v39 }
 0x638   : > { %3543 = vpow2.f32 %v3179_v44 }
 0x639   : > { %v2593_v48 = vpop.f32.mrf.mxu3  ;;  %v2579_v32 = vpop.f32.mrf.mxu2 }
 0x63a   : > { %v2601_v20 = vadd.f32 %v2593_v48, %v779_v49  ;;  %v2553_v27 = vpop.f32.mrf.mxu0  ;;  %v2567_v25 = vpop.f32.mrf.mxu1  ;;  %v2600_v33 = vadd.f32 %v2579_v32, %v730_v28 }
 0x63b   : > { %v2602_v55 = vadd.f32 %v2553_v27, %v634_v2  ;;  %v2603_v1 = vadd.f32 %v2567_v25, %v683_v14 }
 0x63c   : > { %v3181_v61 = vmul.f32 -1.442695, %v2601_v20 }
 0x63d   : > { %v3542_v9 = vpop.eup %3541  ;;  %v3178_v5 = vmul.f32 -1.442695, %v2602_v55  ;;  %v3180_v60 = vmul.f32 -1.442695, %v2603_v1 }
 0x63e   : > { %v3544_v35 = vpop.eup %3543  ;;  %v2612_v47 = vadd.f32 1.0, %v3542_v9  ;;  %3545 = vpow2.f32 %v3181_v61 }
 0x63f   : > { %v2650_v40 = vadd.f32 1.0, %v3544_v35  ;;  %3547 = vpow2.f32 %v3178_v5 }
 0x640   : > { %3549 = vrcp.f32 %v2612_v47  ;;  %v2623_v53 = vand.u32 2147483647, %v2612_v47  ;;  %v2625_v56 = vand.u32 2147483648, %v2612_v47  ;;  %vm2619_vm10 = vweird.f32 %v2612_v47 }
 0x641   : > { %3551 = vrcp.f32 %v2650_v40  ;;  %v2595_v50 = vpop.f32.mrf.mxu3  ;;  %v2663_v19 = vand.u32 2147483648, %v2650_v40  ;;  %v2581_v59 = vpop.f32.mrf.mxu2  ;;  %v2661_v0 = vand.u32 2147483647, %v2650_v40  ;;  %vm2657_vm11 = vweird.f32 %v2650_v40 }
 0x642   : > { %3553 = vpow2.f32 %v3180_v60  ;;  %v2605_v15 = vadd.f32 %v2595_v50, %v781_v12  ;;  %v2604_v7 = vadd.f32 %v2581_v59, %v732_v16  ;;  %v2626_v17 = vor.u32 1.1754944e-38, %v2625_v56 }
 0x643   : > { %v2664_v30 = vor.u32 1.1754944e-38, %v2663_v19  ;;  %vm2624_vm14 = vcmp.eq.f32.partialorder %v2623_v53, 8.507059e+37  ;;  %vm2662_vm15 = vcmp.eq.f32.partialorder %v2661_v0, 8.507059e+37 }
 0x644   : > { %v3546_v10 = vpop.eup %3545  ;;  %v3182_v45 = vmul.f32 -1.442695, %v2605_v15 }
 0x645   : > { %v3548_v38 = vpop.eup %3547  ;;  %v4901_v36 = vadd.f32 1.0, %v3546_v10 }
 0x646   : > { %v3550_v37 = vpop.eup %3549  ;;  %v4903_v42 = vadd.f32 1.0, %v3548_v38 }
 0x647   : > { %v3552_v24 = vpop.eup %3551  ;;  %v2615_v11 = vmul.f32 %v3550_v37, %v2612_v47  ;;  %3555 = vrcp.f32 %v4901_v36  ;;  %vm2620_vm8 = vweird.f32 %v3550_v37  ;;  %v2703_v6 = vand.u32 2147483648, %v4901_v36 }
 0x648   : > { %v3554_v29 = vpop.eup %3553  ;;  %v2653_v4 = vmul.f32 %v3552_v24, %v2650_v40  ;;  %3557 = vtanh.f32 %v2600_v33  ;;  %vm2658_vm9 = vweird.f32 %v3552_v24  ;;  %vm2621_vm12 = vmor %vm2619_vm10, %vm2620_vm8  ;;  %vm2634_vm0 = vweird.f32 %v4903_v42 }
 0x649   : > { %v2616_v8 = vsub.f32 1.0, %v2615_v11  ;;  %3559 = vrcp.f32 %v4903_v42  ;;  %v4909_v41 = vadd.f32 1.0, %v3554_v29  ;;  %vm2659_vm13 = vmor %vm2657_vm11, %vm2658_vm9  ;;  %v2638_v1 = vand.u32 2147483647, %v4903_v42 }
 0x64a   : > { %v2654_v52 = vsub.f32 1.0, %v2653_v4  ;;  %v2640_v61 = vand.u32 2147483648, %v4903_v42  ;;  %vm2697_vm4 = vweird.f32 %v4901_v36  ;;  %v2701_v28 = vand.u32 2147483647, %v4901_v36 }
 0x64b   : > { %v2617_v63 = vmul.f32 %v3550_v37, %v2616_v8  ;;  %3561 = vrcp.f32 %v4909_v41  ;;  %v2678_v55 = vand.u32 2147483648, %v4909_v41  ;;  %v2676_v47 = vand.u32 2147483647, %v4909_v41 }
 0x64c   : > { %v2655_v57 = vmul.f32 %v3552_v24, %v2654_v52  ;;  %3563 = vpow2.f32 %v3182_v45  ;;  %v2641_v50 = vor.u32 1.1754944e-38, %v2640_v61  ;;  %vm2672_vm7 = vweird.f32 %v4909_v41 }
 0x64d   : > { %v4912_v43 = vpop.eup %3555  ;;  %v2618_v3 = vadd.f32 %v3550_v37, %v2617_v63  ;;  %3565 = vtanh.f32 %v2604_v7  ;;  %vm2639_vm8 = vcmp.eq.f32.partialorder %v2638_v1, 8.507059e+37  ;;  %v2679_v38 = vor.u32 1.1754944e-38, %v2678_v55 }
 0x64e   : > { %v3558_v13 = vpop.eup %3557  ;;  %v2656_v18 = vadd.f32 %v3552_v24, %v2655_v57  ;;  %v2693_v21 = vmul.f32 %v4912_v43, %v4901_v36  ;;  %vm2698_vm2 = vweird.f32 %v4912_v43  ;;  %v2704_v15 = vor.u32 1.1754944e-38, %v2703_v6 }
 0x64f   : > { %v3560_v26 = vpop.eup %3559  ;;  %v2622_v31 = vsel %vm2621_vm12, %v3550_v37, %v2618_v3  ;;  %vm4932_vm6 = vmor %vm2697_vm4, %vm2698_vm2  ;;  %vm2677_vm10 = vcmp.eq.f32.partialorder %v2676_v47, 8.507059e+37  ;;  %vm2702_vm11 = vcmp.eq.f32.partialorder %v2701_v28, 8.507059e+37 }
 0x650   : > { %v2627_v34 = vsel %vm2624_vm14, %v2626_v17, %v2622_v31  ;;  %v2660_v39 = vsel %vm2659_vm13, %v3552_v24, %v2656_v18  ;;  %v2694_v44 = vsub.f32 1.0, %v2693_v21  ;;  %v2630_v46 = vmul.f32 %v3560_v26, %v4903_v42 }
 0x651   : > { %v3562_v49 = vpop.eup %3561  ;;  %v2665_v58 = vsel %vm2662_vm15, %v2664_v30, %v2660_v39  ;;  %v2724_v2 = vmul.f32 %v3558_v13, %v2627_v34  ;;  %vm2635_vm1 = vweird.f32 %v3560_v26 }
 0x652   : > { %v2722_v14 = vmul.f32 %v2665_v58, %v4868_v22  ;;  %v2695_v48 = vmul.f32 %v4912_v43, %v2694_v44  ;;  %v2631_v20 = vsub.f32 1.0, %v2630_v46  ;;  %v2668_v27 = vmul.f32 %v3562_v49, %v4909_v41  ;;  %v3564_v25 = vpop.eup %3563  ;;  %vm2636_vm5 = vmor %vm2634_vm0, %vm2635_vm1 }
 0x653   : > { %v2691_v60 = vadd.f32 1.0, %v3564_v25  ;;  %vm2673_vm3 = vweird.f32 %v3562_v49  ;;  %v3566_v51 = vpop.eup %3565 }
 0x654   : > { %v2726_v9 = vadd.f32 %v2724_v2, %v2722_v14  ;;  %v2669_v5 = vsub.f32 1.0, %v2668_v27  ;;  %v2632_v35 = vmul.f32 %v3560_v26, %v2631_v20  ;;  %v2696_v22 = vadd.f32 %v4912_v43, %v2695_v48  ;;  %vm2674_vm9 = vmor %vm2672_vm7, %vm2673_vm3 }
 0x655   : > { %v2718_v52 = vand.u32 2147483648, %v2691_v60  ;;  %v2716_v53 = vand.u32 2147483647, %v2691_v60  ;;  %vm2712_vm13 = vweird.f32 %v2691_v60 }
 0x656   : > { %3567 = vtanh.f32 %v2726_v9  ;;  %2734 = vst [vmem:[#allocation3 + $0x8] sm:$0xff] %v2726_v9  ;;  %v2670_v40 = vmul.f32 %v3562_v49, %v2669_v5  ;;  %v2633_v32 = vadd.f32 %v3560_v26, %v2632_v35  ;;  %v2700_v33 = vsel %vm4932_vm6, %v4912_v43, %v2696_v22 }
 0x657   : > { %3569 = vrcp.f32 %v2691_v60  ;;  %v2705_v29 = vsel %vm2702_vm11, %v2704_v15, %v2700_v33  ;;  %v2719_v59 = vor.u32 1.1754944e-38, %v2718_v52  ;;  %vm2717_vm15 = vcmp.eq.f32.partialorder %v2716_v53, 8.507059e+37 }
 0x658   : > { %v2637_v12 = vsel %vm2636_vm5, %v3560_v26, %v2633_v32  ;;  %v2671_v10 = vadd.f32 %v3562_v49, %v2670_v40 }
 0x659   : > { %v2642_v36 = vsel %vm2639_vm8, %v2641_v50, %v2637_v12 }
 0x65a   : > { %v2675_v37 = vsel %vm2674_vm9, %v3562_v49, %v2671_v10  ;;  %v2725_v42 = vmul.f32 %v3566_v51, %v2642_v36 }
 0x65b   : > { %v2680_v24 = vsel %vm2677_vm10, %v2679_v38, %v2675_v37 }
 0x65c   : > { %v3568_v11 = vpop.eup %3567  ;;  %v2723_v54 = vmul.f32 %v2680_v24, %v4876_v62 }
 0x65d   : > { %v3570_v16 = vpop.eup %3569  ;;  %v2730_v4 = vmul.f32 %v3568_v11, %v2705_v29 }
 0x65e   : > { %v2727_v8 = vadd.f32 %v2725_v42, %v2723_v54  ;;  %v2708_v41 = vmul.f32 %v3570_v16, %v2691_v60  ;;  %vm2713_vm12 = vweird.f32 %v3570_v16 }
 0x65f   : > { %2732 = vst [vmem:[#allocation2] sm:$0xff] %v2730_v4  ;;  %vm2714_vm14 = vmor %vm2712_vm13, %vm2713_vm12 }
 0x660   : > { %3571 = vtanh.f32 %v2727_v8  ;;  %2735 = vst [vmem:[#allocation3] sm:$0xff] %v2727_v8  ;;  %v2709_v45 = vsub.f32 1.0, %v2708_v41 }
 0x662   : > { %v2710_v19 = vmul.f32 %v3570_v16, %v2709_v45 }
 0x664   : > { %v2711_v56 = vadd.f32 %v3570_v16, %v2710_v19 }
 0x666   : > { %v3572_v63 = vpop.eup %3571  ;;  %v2715_v0 = vsel %vm2714_vm14, %v3570_v16, %v2711_v56 }
 0x667   : > { %v2720_v62 = vsel %vm2717_vm15, %v2719_v59, %v2715_v0 }
 0x668   : > { %v2731_v57 = vmul.f32 %v3572_v63, %v2720_v62  ;;  %2744 = sbr.rel (%p3185_p5) target bundleno = 1651 (0x673), region = 52 }
 0x66a   : > { %2733 = vst [vmem:[#allocation2 + $0x8] sm:$0xff] %v2731_v57  ;;  %v3300_v43 = vpack.c.bf16 %v2731_v57, %v2730_v4 }
 0x66c   : > { %3308 = vst [vmem:[%s3645_s14 + $0x38] sm:$0xff] %v3300_v43  }
 0x66d   : > { %v2745_v3 = vld [vmem:[#allocation2] sm:$0xff]  ;;  %v2749_v13 = vld [vmem:[#allocation3 + $0x8] sm:$0xff]  ;;  %v2750_v17 = vld [vmem:[#allocation3] sm:$0xff] }
 0x66e   : > { %2747 = vst [vmem:[%s4965_s7] sm:$0xff] %v2745_v3 }
 0x66f   : > { %2751 = vst [vmem:[%s4966_s8] sm:$0xff] %v2749_v13 }
 0x670   : > { %2752 = vst [vmem:[%s4966_s8 + $0x8] sm:$0xff] %v2750_v17 }
 0x671   : > { %v2746_v7 = vld [vmem:[#allocation2 + $0x8] sm:$0xff] }
 0x672   : > { %2748 = vst [vmem:[%s4965_s7 + $0x8] sm:$0xff] %v2746_v7 }
 0x673 PF: > { %s19_s27 = sadd.s32 1, %s3579_s27  }
 0x674   : > { %p16_p6 = scmp.ge.s32.totalorder %s19_s27, 4  }
 0x676   :  { %18 = sbr.rel (!%p16_p6) target bundleno = 1 (0x1), region = 112 }

</bundles_post_ra>
